<compile_context>
chip_gen: v5e
topology: v5e:2x2
jax: 0.10.0
libtpu: 0.0.40
codegen_flags: <defaults>
</compile_context>

<pallas_src>
import functools

import jax
import jax.numpy as jnp
from jax.experimental import pallas as pl
from jax.experimental.pallas import tpu as pltpu

_LANE = 128


def _round_up(x, m):
    return ((x + m - 1) // m) * m


# ----------------------------------------------------------------------------
# Pallas kernels
# ----------------------------------------------------------------------------
def _conv_row_kernel(x_ref, w_ref, s_ref, b_ref, o_ref, acc_ref, *,
                     kw, stride, wo, relu):
    """One output row (n, ho); grid axis 2 = kh row taps (reduction)."""
    i = pl.program_id(2)

    @pl.when(i == 0)
    def _init():
        acc_ref[...] = jnp.zeros_like(acc_ref)

    contrib = None
    for j in range(kw):                      # static unroll over column taps
        jr, jb = j % stride, j // stride
        win = x_ref[0, 0, jr, jb:jb + wo, :]             # (wo, Cin) bf16
        d = jnp.dot(win, w_ref[i, j], preferred_element_type=jnp.float32)
        contrib = d if contrib is None else contrib + d
    acc_ref[...] += contrib

    @pl.when(i == pl.num_programs(2) - 1)
    def _fin():
        y = acc_ref[...] * s_ref[...] + b_ref[...]       # folded BN, f32
        if relu:
            y = jnp.maximum(y, 0.0)
        o_ref[0, 0] = y.astype(o_ref.dtype)


def _conv_row_res_kernel(x_ref, w_ref, s_ref, b_ref, r_ref, o_ref, acc_ref, *,
                         kw, stride, wo, relu):
    """Same as _conv_row_kernel but fuses a residual add before the ReLU."""
    i = pl.program_id(2)

    @pl.when(i == 0)
    def _init():
        acc_ref[...] = jnp.zeros_like(acc_ref)

    contrib = None
    for j in range(kw):
        jr, jb = j % stride, j // stride
        win = x_ref[0, 0, jr, jb:jb + wo, :]
        d = jnp.dot(win, w_ref[i, j], preferred_element_type=jnp.float32)
        contrib = d if contrib is None else contrib + d
    acc_ref[...] += contrib

    @pl.when(i == pl.num_programs(2) - 1)
    def _fin():
        y = acc_ref[...] * s_ref[...] + b_ref[...] + r_ref[0, 0].astype(jnp.float32)
        if relu:
            y = jnp.maximum(y, 0.0)
        o_ref[0, 0] = y.astype(o_ref.dtype)


def _maxpool_row_kernel(x_ref, o_ref, acc_ref, *, kw, stride, wo):
    """3x3 max pool, one pooled output row per (n, ho); grid axis 2 = row tap."""
    i = pl.program_id(2)

    @pl.when(i == 0)
    def _init():
        # inputs are post-ReLU (>= 0) and zero padded, so 0 is a valid identity
        acc_ref[...] = jnp.zeros_like(acc_ref)

    m = acc_ref[...]
    for j in range(kw):
        jr, jb = j % stride, j // stride
        m = jnp.maximum(m, x_ref[0, 0, jr, jb:jb + wo, :].astype(m.dtype))
    acc_ref[...] = m

    @pl.when(i == pl.num_programs(2) - 1)
    def _fin():
        o_ref[0, 0] = acc_ref[...].astype(o_ref.dtype)


def _mm_kernel(x_ref, w_ref, s_ref, b_ref, o_ref, *, relu):
    acc = jnp.dot(x_ref[...], w_ref[...], preferred_element_type=jnp.float32)
    acc = acc * s_ref[...] + b_ref[...]
    if relu:
        acc = jnp.maximum(acc, 0.0)
    o_ref[...] = acc.astype(o_ref.dtype)


# ----------------------------------------------------------------------------
# Pallas wrappers
# ----------------------------------------------------------------------------
def _pad_phase_split(x, padding, stride):
    """Zero-pad spatially and split W into `stride` phases (one cheap pass).

    (N, H, W, C) -> (N, Hp, stride, Wb, C) so that the in-kernel column-tap
    gather is a contiguous sublane slice even for stride-2 convolutions.
    `padding` and `stride` must be Python ints (static).
    """
    n, h, w, c = x.shape
    hp = h + 2 * padding
    wp = _round_up(w + 2 * padding, stride)
    xp = jnp.pad(x, ((0, 0), (padding, padding),
                     (padding, wp - w - padding), (0, 0)))
    wb = wp // stride
    return xp.reshape(n, hp, wb, stride, c).transpose(0, 1, 3, 2, 4), hp, wb


def conv2d_fused(x, w, scale, bias, *, stride, padding, relu, residual=None):
    """KxK conv + folded BN (+residual) (+ReLU), no im2col materialization.

    x: (N, H, W, Cin) bf16 (Cin may already be lane-padded; extra channels 0).
    w: (kh, kw, cin_w, cout) with cin_w <= Cin.  Output: (N, Ho, Wo, Cp) bf16
    with Cp = round_up(cout, 128); padded output channels are exactly zero.
    """
    n, h, w_sp, cin = x.shape
    kh, kw, cin_w, cout = w.shape
    cp = _round_up(cout, _LANE)
    ho = (h + 2 * padding - kh) // stride + 1
    wo = (w_sp + 2 * padding - kw) // stride + 1

    wp = jnp.pad(w, ((0, 0), (0, 0), (0, cin - cin_w),
                     (0, cp - cout))).astype(jnp.bfloat16)
    sp = jnp.pad(scale.astype(jnp.float32), (0, cp - cout)).reshape(1, cp)
    bp = jnp.pad(bias.astype(jnp.float32), (0, cp - cout)).reshape(1, cp)
    xs, hp, wb = _pad_phase_split(x.astype(jnp.bfloat16), padding, stride)

    in_specs = [
        # one padded input row per step; H offset = ho*stride + row-tap i
        pl.BlockSpec((1, 1, stride, wb, cin),
                     lambda ni, hi, i: (ni, hi * stride + i, 0, 0, 0)),
        # full weights, constant index -> DMA'd once, resident in VMEM
        pl.BlockSpec((kh, kw, cin, cp), lambda ni, hi, i: (0, 0, 0, 0)),
        pl.BlockSpec((1, cp), lambda ni, hi, i: (0, 0)),
        pl.BlockSpec((1, cp), lambda ni, hi, i: (0, 0)),
    ]
    args = [xs, wp, sp, bp]
    if residual is not None:
        in_specs.append(pl.BlockSpec((1, 1, wo, cp),
                                     lambda ni, hi, i: (ni, hi, 0, 0)))
        args.append(residual.astype(jnp.bfloat16))
        kernel = functools.partial(_conv_row_res_kernel, kw=kw, stride=stride,
                                   wo=wo, relu=relu)
    else:
        kernel = functools.partial(_conv_row_kernel, kw=kw, stride=stride,
                                   wo=wo, relu=relu)

    flops = 2 * n * ho * wo * kh * kw * cin * cp
    bytes_accessed = (xs.size + wp.size + n * ho * wo * cp) * 2 + 2 * cp * 4

    return pl.pallas_call(
        kernel,
        out_shape=jax.ShapeDtypeStruct((n, ho, wo, cp), jnp.bfloat16),
        grid=(n, ho, kh),
        in_specs=in_specs,
        out_specs=pl.BlockSpec((1, 1, wo, cp), lambda ni, hi, i: (ni, hi, 0, 0)),
        scratch_shapes=[pltpu.VMEM((wo, cp), jnp.float32)],
        compiler_params=pltpu.CompilerParams(
            dimension_semantics=("parallel", "parallel", "arbitrary")),
        cost_estimate=pl.CostEstimate(flops=flops, transcendentals=0,
                                      bytes_accessed=bytes_accessed),
    )(*args)


def maxpool3x3s2_fused(x):
    """3x3 / stride 2 / pad 1 max pool, tiled per output row (no HBM tap stack)."""
    n, h, w, c = x.shape
    k, stride, pad = 3, 2, 1
    ho = (h + 2 * pad - k) // stride + 1
    wo = (w + 2 * pad - k) // stride + 1
    xs, hp, wb = _pad_phase_split(x, pad, stride)
    return pl.pallas_call(
        functools.partial(_maxpool_row_kernel, kw=k, stride=stride, wo=wo),
        out_shape=jax.ShapeDtypeStruct((n, ho, wo, c), x.dtype),
        grid=(n, ho, k),
        in_specs=[pl.BlockSpec((1, 1, stride, wb, c),
                               lambda ni, hi, i: (ni, hi * stride + i, 0, 0, 0))],
        out_specs=pl.BlockSpec((1, 1, wo, c), lambda ni, hi, i: (ni, hi, 0, 0)),
        scratch_shapes=[pltpu.VMEM((wo, c), jnp.float32)],
        compiler_params=pltpu.CompilerParams(
            dimension_semantics=("parallel", "parallel", "arbitrary")),
    )(xs)


def matmul_fused(x, w, scale, bias, *, relu=False, out_dtype=jnp.bfloat16):
    """y = [relu]((x @ w) * scale + bias); bf16 MXU, f32 epilogue.

    K and N are padded to multiples of 128 (lane-dense stores); the row tile
    is right-sized to M (>= 2 tiles when M allows, for megacore).  Returns the
    lane-padded (M, round_up(N,128)) result sliced back to M rows (padded
    columns are bias=0 -> 0).
    """
    m, k = x.shape
    _, ncol = w.shape
    kp = _round_up(k, _LANE)
    np_ = _round_up(ncol, _LANE)

    xb = jnp.pad(x.astype(jnp.bfloat16), ((0, 0), (0, kp - k)))
    wb = jnp.pad(w.astype(jnp.bfloat16), ((0, kp - k), (0, np_ - ncol)))
    s2 = jnp.pad(scale.astype(jnp.float32), (0, np_ - ncol)).reshape(1, np_)
    b2 = jnp.pad(bias.astype(jnp.float32), (0, np_ - ncol)).reshape(1, np_)

    if m >= 256:
        tm = 128
    elif m >= 16:
        tm = _round_up(-(-m // 2), 8)     # >= 2 row tiles -> both v7x cores busy
    else:
        tm = _round_up(max(m, 1), 8)
    mp = _round_up(m, tm)
    xb = jnp.pad(xb, ((0, mp - m), (0, 0)))

    out = pl.pallas_call(
        functools.partial(_mm_kernel, relu=relu),
        out_shape=jax.ShapeDtypeStruct((mp, np_), out_dtype),
        grid=(mp // tm,),
        in_specs=[
            pl.BlockSpec((tm, kp), lambda i: (i, 0)),
            pl.BlockSpec((kp, np_), lambda i: (0, 0)),
            pl.BlockSpec((1, np_), lambda i: (0, 0)),
            pl.BlockSpec((1, np_), lambda i: (0, 0)),
        ],
        out_specs=pl.BlockSpec((tm, np_), lambda i: (i, 0)),
        compiler_params=pltpu.CompilerParams(dimension_semantics=("parallel",)),
        cost_estimate=pl.CostEstimate(
            flops=2 * mp * kp * np_, transcendentals=0,
            bytes_accessed=(mp * kp + kp * np_ + mp * np_) * 2 + 2 * np_ * 4),
    )(xb, wb, s2, b2)
    return out[:m]


def pointwise_conv(x, w, scale, bias, *, stride, relu):
    """1x1 conv (+ optional spatial stride) == glue subsample + fused matmul."""
    if stride > 1:
        x = x[:, ::stride, ::stride, :]
    n, ho, wo, cin = x.shape
    _, _, cin_w, cout = w.shape
    w2 = jnp.pad(w.reshape(cin_w, cout), ((0, cin - cin_w), (0, 0)))
    y = matmul_fused(x.reshape(n * ho * wo, cin), w2, scale, bias,
                     relu=relu, out_dtype=jnp.bfloat16)
    return y.reshape(n, ho, wo, -1)


# ----------------------------------------------------------------------------
# Parameters (deterministic synthetic init; BN folded into scale/bias).
# NOTE: the params pytree contains ONLY arrays -- all strides / topology are
# recomputed statically in the forward pass (fixes the ConcretizationTypeError).
# ----------------------------------------------------------------------------
def _conv_params(key, kh, kw, cin, cout):
    k1, k2, k3 = jax.random.split(key, 3)
    fan_in = kh * kw * cin
    return {
        "w": jax.random.normal(k1, (kh, kw, cin, cout), jnp.float32) * (2.0 / fan_in) ** 0.5,
        "s": 1.0 + 0.1 * jax.random.normal(k2, (cout,), jnp.float32),  # folded BN scale
        "b": 0.1 * jax.random.normal(k3, (cout,), jnp.float32),        # folded BN bias
    }


def _block_stride(stage_idx, block_idx):
    """Static ResNet basic-block stride rule (never traced)."""
    return 2 if (stage_idx > 0 and block_idx == 0) else 1


def init_params(key, in_ch=4, widths=(16, 32, 64, 128), num_classes=10, num_views=3):
    keys = iter(jax.random.split(key, 64))
    p = {"stem": _conv_params(next(keys), 7, 7, in_ch, widths[0]), "layers": []}
    cin = widths[0]
    for si, wout in enumerate(widths):
        blocks = []
        for bi in range(2):
            stride = _block_stride(si, bi)
            blk = {
                "conv1": _conv_params(next(keys), 3, 3, cin, wout),
                "conv2": _conv_params(next(keys), 3, 3, wout, wout),
            }
            if stride != 1 or cin != wout:
                blk["down"] = _conv_params(next(keys), 1, 1, cin, wout)
            blocks.append(blk)
            cin = wout
        p["layers"].append(blocks)
    z_dim = widths[-1]
    k1, k2 = jax.random.split(next(keys))
    p["fc_w"] = jax.random.normal(k1, (z_dim * num_views, num_classes), jnp.float32) * (
        1.0 / (z_dim * num_views)
    ) ** 0.5
    p["fc_b"] = 0.01 * jax.random.normal(k2, (num_classes,), jnp.float32)
    return p


# ----------------------------------------------------------------------------
# Forward pass (SimpleView, expand_projections=True branch)
# ----------------------------------------------------------------------------
def backbone_forward(x_nhwc, p):
    x = x_nhwc.astype(jnp.bfloat16)
    cin = x.shape[-1]
    cin_pad = _round_up(max(cin, 8), 8)
    if cin_pad != cin:  # small sublane-friendly channel pad for the stem
        x = jnp.pad(x, ((0, 0), (0, 0), (0, 0), (0, cin_pad - cin)))

    st = p["stem"]
    x = conv2d_fused(x, st["w"], st["s"], st["b"],
                     stride=2, padding=3, relu=True)
    x = maxpool3x3s2_fused(x)

    for si, blocks in enumerate(p["layers"]):
        for bi, blk in enumerate(blocks):
            stride = _block_stride(si, bi)          # static Python int
            if "down" in blk:
                d = blk["down"]
                identity = pointwise_conv(x, d["w"], d["s"], d["b"],
                                          stride=stride, relu=False)
            else:
                identity = x
            c1 = blk["conv1"]
            out = conv2d_fused(x, c1["w"], c1["s"], c1["b"],
                               stride=stride, padding=1, relu=True)
            c2 = blk["conv2"]
            # residual add + ReLU fused into the second conv's Pallas kernel
            x = conv2d_fused(out, c2["w"], c2["s"], c2["b"],
                             stride=1, padding=1, relu=True, residual=identity)

    # Global average pool: tiny tail op, plain JAX (XLA fuses it).
    return jnp.mean(x.astype(jnp.float32), axis=(1, 2))  # (N, z_dim)


def simpleview_forward(x_bvchw, p, num_classes):
    b, v, c, h, w = x_bvchw.shape
    x = x_bvchw.reshape(b * v, c, h, w)            # (b*v, c, h, w)  (NCHW)
    x = jnp.transpose(x, (0, 2, 3, 1))             # -> NHWC for the kernels
    z = backbone_forward(x, p)                     # (b*v, z_dim)
    z = z.reshape(b, -1)                           # (b, v * z_dim)
    ones = jnp.ones((num_classes,), jnp.float32)
    logits = matmul_fused(z, p["fc_w"], ones, p["fc_b"],
                          relu=False, out_dtype=jnp.float32)
    return logits[:, :num_classes]


# ----------------------------------------------------------------------------
if __name__ == "__main__":
    key = jax.random.PRNGKey(0)
    kx, kp = jax.random.split(key)

    b, v, c, h, w = 2, 3, 4, 16, 16     # batch, num_views, channels, spatial
    num_classes = 10

    x = jax.random.normal(kx, (b, v, c, h, w), jnp.float32)
    params = init_params(kp, in_ch=c, num_views=v, num_classes=num_classes)

    fwd = jax.jit(functools.partial(simpleview_forward, num_classes=num_classes))
    logits = jax.block_until_ready(fwd(x, params))

    assert logits.shape == (b, num_classes), logits.shape
    assert bool(jnp.all(jnp.isfinite(logits)))
    print("KERNEL_OK")
</pallas_src>

<mosaic_0001>
module attributes {stable_mosaic.version = 11 : i64} {
  func.func @_conv_row_kernel(%arg0: i32, %arg1: i32, %arg2: i32, %arg3: memref<1x1x2x11x8xbf16, #tpu.memory_space<vmem>>, %arg4: memref<7x7x8x128xbf16, #tpu.memory_space<vmem>>, %arg5: memref<1x128xf32, #tpu.memory_space<vmem>>, %arg6: memref<1x128xf32, #tpu.memory_space<vmem>>, %arg7: memref<1x1x8x128xbf16, #tpu.memory_space<vmem>>, %arg8: memref<8x128xf32, #tpu.memory_space<vmem>>) attributes {dimension_semantics = [#tpu.dimension_semantics<parallel>, #tpu.dimension_semantics<parallel>, #tpu.dimension_semantics<arbitrary>], iteration_bounds = array<i64: 6, 8, 7>, scalar_prefetch = 0 : i64, scratch_operands = 1 : i64, tpu.core_type = #tpu.core_type<tc>, window_params = [{transform_indices = @transform_0, window_bounds = array<i64: 1, 1, 2, 11, 8>}, {pipeline_mode = #tpu.pipeline_mode<synchronous>, transform_indices = @transform_1, window_bounds = array<i64: 7, 7, 8, 128>}, {pipeline_mode = #tpu.pipeline_mode<synchronous>, transform_indices = @transform_2, window_bounds = array<i64: 1, 128>}, {pipeline_mode = #tpu.pipeline_mode<synchronous>, transform_indices = @transform_3, window_bounds = array<i64: 1, 128>}, {transform_indices = @transform_4, window_bounds = array<i64: 1, 1, 8, 128>}]} {
    %c0_i32 = arith.constant 0 : i32
    %0 = arith.cmpi eq, %arg2, %c0_i32 : i32
    %1 = arith.extui %0 : i1 to i32
    %c0_i32_0 = arith.constant 0 : i32
    %2 = arith.cmpi ne, %1, %c0_i32_0 : i32
    scf.if %2 {
      %cst_61 = arith.constant 0.000000e+00 : f32
      %57 = vector.broadcast %cst_61 : f32 to vector<8x128xf32>
      %c0_62 = arith.constant 0 : index
      %c0_63 = arith.constant 0 : index
      %58 = vector.load %arg8[%c0_62, %c0_63] : memref<8x128xf32, #tpu.memory_space<vmem>>, vector<8x128xf32>
      tpu.vector_store %arg8[%c0_62, %c0_63], %57 {strides = array<i32>} : memref<8x128xf32, #tpu.memory_space<vmem>>, vector<8x128xf32>,
    } else {
    }
    %c0 = arith.constant 0 : index
    %c0_1 = arith.constant 0 : index
    %c0_2 = arith.constant 0 : index
    %c0_3 = arith.constant 0 : index
    %c0_4 = arith.constant 0 : index
    %3 = vector.load %arg3[%c0, %c0_1, %c0_2, %c0_3, %c0_4] : memref<1x1x2x11x8xbf16, #tpu.memory_space<vmem>>, vector<1x1x1x8x8xbf16>
    %4 = vector.shape_cast %3 : vector<1x1x1x8x8xbf16> to vector<8x8xbf16>
    %5 = arith.index_cast %arg2 : i32 to index
    %c0_5 = arith.constant 0 : index
    %c0_6 = arith.constant 0 : index
    %c0_7 = arith.constant 0 : index
    %6 = vector.load %arg4[%5, %c0_5, %c0_6, %c0_7] : memref<7x7x8x128xbf16, #tpu.memory_space<vmem>>, vector<1x1x8x128xbf16>
    %7 = vector.shape_cast %6 : vector<1x1x8x128xbf16> to vector<8x128xbf16>
    %cst = arith.constant dense<0.000000e+00> : vector<8x128xf32>
    %8 = tpu.matmul %4, %7, %cst {dimension_numbers = #tpu.dot_dimension_numbers<[1], [0], [0], [1], [0, 0, 1, 1], [], []>} : vector<8x8xbf16>, vector<8x128xbf16>, vector<8x128xf32> -> vector<8x128xf32>
    %c0_8 = arith.constant 0 : index
    %c0_9 = arith.constant 0 : index
    %c1 = arith.constant 1 : index
    %c0_10 = arith.constant 0 : index
    %c0_11 = arith.constant 0 : index
    %9 = vector.load %arg3[%c0_8, %c0_9, %c1, %c0_10, %c0_11] : memref<1x1x2x11x8xbf16, #tpu.memory_space<vmem>>, vector<1x1x1x8x8xbf16>
    %10 = vector.shape_cast %9 : vector<1x1x1x8x8xbf16> to vector<8x8xbf16>
    %11 = arith.index_cast %arg2 : i32 to index
    %c1_12 = arith.constant 1 : index
    %c0_13 = arith.constant 0 : index
    %c0_14 = arith.constant 0 : index
    %12 = vector.load %arg4[%11, %c1_12, %c0_13, %c0_14] : memref<7x7x8x128xbf16, #tpu.memory_space<vmem>>, vector<1x1x8x128xbf16>
    %13 = vector.shape_cast %12 : vector<1x1x8x128xbf16> to vector<8x128xbf16>
    %cst_15 = arith.constant dense<0.000000e+00> : vector<8x128xf32>
    %14 = tpu.matmul %10, %13, %cst_15 {dimension_numbers = #tpu.dot_dimension_numbers<[1], [0], [0], [1], [0, 0, 1, 1], [], []>} : vector<8x8xbf16>, vector<8x128xbf16>, vector<8x128xf32> -> vector<8x128xf32>
    %15 = arith.addf %8, %14 : vector<8x128xf32>
    %c0_16 = arith.constant 0 : index
    %c0_17 = arith.constant 0 : index
    %c0_18 = arith.constant 0 : index
    %c1_19 = arith.constant 1 : index
    %c0_20 = arith.constant 0 : index
    %16 = vector.load %arg3[%c0_16, %c0_17, %c0_18, %c1_19, %c0_20] : memref<1x1x2x11x8xbf16, #tpu.memory_space<vmem>>, vector<1x1x1x8x8xbf16>
    %17 = vector.shape_cast %16 : vector<1x1x1x8x8xbf16> to vector<8x8xbf16>
    %18 = arith.index_cast %arg2 : i32 to index
    %c2 = arith.constant 2 : index
    %c0_21 = arith.constant 0 : index
    %c0_22 = arith.constant 0 : index
    %19 = vector.load %arg4[%18, %c2, %c0_21, %c0_22] : memref<7x7x8x128xbf16, #tpu.memory_space<vmem>>, vector<1x1x8x128xbf16>
    %20 = vector.shape_cast %19 : vector<1x1x8x128xbf16> to vector<8x128xbf16>
    %cst_23 = arith.constant dense<0.000000e+00> : vector<8x128xf32>
    %21 = tpu.matmul %17, %20, %cst_23 {dimension_numbers = #tpu.dot_dimension_numbers<[1], [0], [0], [1], [0, 0, 1, 1], [], []>} : vector<8x8xbf16>, vector<8x128xbf16>, vector<8x128xf32> -> vector<8x128xf32>
    %22 = arith.addf %15, %21 : vector<8x128xf32>
    %c0_24 = arith.constant 0 : index
    %c0_25 = arith.constant 0 : index
    %c1_26 = arith.constant 1 : index
    %c1_27 = arith.constant 1 : index
    %c0_28 = arith.constant 0 : index
    %23 = vector.load %arg3[%c0_24, %c0_25, %c1_26, %c1_27, %c0_28] : memref<1x1x2x11x8xbf16, #tpu.memory_space<vmem>>, vector<1x1x1x8x8xbf16>
    %24 = vector.shape_cast %23 : vector<1x1x1x8x8xbf16> to vector<8x8xbf16>
    %25 = arith.index_cast %arg2 : i32 to index
    %c3 = arith.constant 3 : index
    %c0_29 = arith.constant 0 : index
    %c0_30 = arith.constant 0 : index
    %26 = vector.load %arg4[%25, %c3, %c0_29, %c0_30] : memref<7x7x8x128xbf16, #tpu.memory_space<vmem>>, vector<1x1x8x128xbf16>
    %27 = vector.shape_cast %26 : vector<1x1x8x128xbf16> to vector<8x128xbf16>
    %cst_31 = arith.constant dense<0.000000e+00> : vector<8x128xf32>
    %28 = tpu.matmul %24, %27, %cst_31 {dimension_numbers = #tpu.dot_dimension_numbers<[1], [0], [0], [1], [0, 0, 1, 1], [], []>} : vector<8x8xbf16>, vector<8x128xbf16>, vector<8x128xf32> -> vector<8x128xf32>
    %29 = arith.addf %22, %28 : vector<8x128xf32>
    %c0_32 = arith.constant 0 : index
    %c0_33 = arith.constant 0 : index
    %c0_34 = arith.constant 0 : index
    %c2_35 = arith.constant 2 : index
    %c0_36 = arith.constant 0 : index
    %30 = vector.load %arg3[%c0_32, %c0_33, %c0_34, %c2_35, %c0_36] : memref<1x1x2x11x8xbf16, #tpu.memory_space<vmem>>, vector<1x1x1x8x8xbf16>
    %31 = vector.shape_cast %30 : vector<1x1x1x8x8xbf16> to vector<8x8xbf16>
    %32 = arith.index_cast %arg2 : i32 to index
    %c4 = arith.constant 4 : index
    %c0_37 = arith.constant 0 : index
    %c0_38 = arith.constant 0 : index
    %33 = vector.load %arg4[%32, %c4, %c0_37, %c0_38] : memref<7x7x8x128xbf16, #tpu.memory_space<vmem>>, vector<1x1x8x128xbf16>
    %34 = vector.shape_cast %33 : vector<1x1x8x128xbf16> to vector<8x128xbf16>
    %cst_39 = arith.constant dense<0.000000e+00> : vector<8x128xf32>
    %35 = tpu.matmul %31, %34, %cst_39 {dimension_numbers = #tpu.dot_dimension_numbers<[1], [0], [0], [1], [0, 0, 1, 1], [], []>} : vector<8x8xbf16>, vector<8x128xbf16>, vector<8x128xf32> -> vector<8x128xf32>
    %36 = arith.addf %29, %35 : vector<8x128xf32>
    %c0_40 = arith.constant 0 : index
    %c0_41 = arith.constant 0 : index
    %c1_42 = arith.constant 1 : index
    %c2_43 = arith.constant 2 : index
    %c0_44 = arith.constant 0 : index
    %37 = vector.load %arg3[%c0_40, %c0_41, %c1_42, %c2_43, %c0_44] : memref<1x1x2x11x8xbf16, #tpu.memory_space<vmem>>, vector<1x1x1x8x8xbf16>
    %38 = vector.shape_cast %37 : vector<1x1x1x8x8xbf16> to vector<8x8xbf16>
    %39 = arith.index_cast %arg2 : i32 to index
    %c5 = arith.constant 5 : index
    %c0_45 = arith.constant 0 : index
    %c0_46 = arith.constant 0 : index
    %40 = vector.load %arg4[%39, %c5, %c0_45, %c0_46] : memref<7x7x8x128xbf16, #tpu.memory_space<vmem>>, vector<1x1x8x128xbf16>
    %41 = vector.shape_cast %40 : vector<1x1x8x128xbf16> to vector<8x128xbf16>
    %cst_47 = arith.constant dense<0.000000e+00> : vector<8x128xf32>
    %42 = tpu.matmul %38, %41, %cst_47 {dimension_numbers = #tpu.dot_dimension_numbers<[1], [0], [0], [1], [0, 0, 1, 1], [], []>} : vector<8x8xbf16>, vector<8x128xbf16>, vector<8x128xf32> -> vector<8x128xf32>
    %43 = arith.addf %36, %42 : vector<8x128xf32>
    %c0_48 = arith.constant 0 : index
    %c0_49 = arith.constant 0 : index
    %c0_50 = arith.constant 0 : index
    %c3_51 = arith.constant 3 : index
    %c0_52 = arith.constant 0 : index
    %44 = vector.load %arg3[%c0_48, %c0_49, %c0_50, %c3_51, %c0_52] : memref<1x1x2x11x8xbf16, #tpu.memory_space<vmem>>, vector<1x1x1x8x8xbf16>
    %45 = vector.shape_cast %44 : vector<1x1x1x8x8xbf16> to vector<8x8xbf16>
    %46 = arith.index_cast %arg2 : i32 to index
    %c6 = arith.constant 6 : index
    %c0_53 = arith.constant 0 : index
    %c0_54 = arith.constant 0 : index
    %47 = vector.load %arg4[%46, %c6, %c0_53, %c0_54] : memref<7x7x8x128xbf16, #tpu.memory_space<vmem>>, vector<1x1x8x128xbf16>
    %48 = vector.shape_cast %47 : vector<1x1x8x128xbf16> to vector<8x128xbf16>
    %cst_55 = arith.constant dense<0.000000e+00> : vector<8x128xf32>
    %49 = tpu.matmul %45, %48, %cst_55 {dimension_numbers = #tpu.dot_dimension_numbers<[1], [0], [0], [1], [0, 0, 1, 1], [], []>} : vector<8x8xbf16>, vector<8x128xbf16>, vector<8x128xf32> -> vector<8x128xf32>
    %50 = arith.addf %43, %49 : vector<8x128xf32>
    %c0_56 = arith.constant 0 : index
    %c0_57 = arith.constant 0 : index
    %51 = vector.load %arg8[%c0_56, %c0_57] : memref<8x128xf32, #tpu.memory_space<vmem>>, vector<8x128xf32>
    %52 = arith.addf %51, %50 : vector<8x128xf32>
    %c0_58 = arith.constant 0 : index
    %c0_59 = arith.constant 0 : index
    %53 = vector.load %arg8[%c0_58, %c0_59] : memref<8x128xf32, #tpu.memory_space<vmem>>, vector<8x128xf32>
    tpu.vector_store %arg8[%c0_58, %c0_59], %52 {strides = array<i32>} : memref<8x128xf32, #tpu.memory_space<vmem>>, vector<8x128xf32>,
    %c6_i32 = arith.constant 6 : i32
    %54 = arith.cmpi eq, %arg2, %c6_i32 : i32
    %55 = arith.extui %54 : i1 to i32
    %c0_i32_60 = arith.constant 0 : i32
    %56 = arith.cmpi ne, %55, %c0_i32_60 : i32
    scf.if %56 {
      %c0_61 = arith.constant 0 : index
      %c0_62 = arith.constant 0 : index
      %57 = vector.load %arg8[%c0_61, %c0_62] : memref<8x128xf32, #tpu.memory_space<vmem>>, vector<8x128xf32>
      %c0_63 = arith.constant 0 : index
      %c0_64 = arith.constant 0 : index
      %58 = vector.load %arg5[%c0_63, %c0_64] : memref<1x128xf32, #tpu.memory_space<vmem>>, vector<1x128xf32>
      %59 = vector.broadcast %58 : vector<1x128xf32> to vector<8x128xf32>
      %60 = arith.mulf %57, %59 : vector<8x128xf32>
      %c0_65 = arith.constant 0 : index
      %c0_66 = arith.constant 0 : index
      %61 = vector.load %arg6[%c0_65, %c0_66] : memref<1x128xf32, #tpu.memory_space<vmem>>, vector<1x128xf32>
      %62 = vector.broadcast %61 : vector<1x128xf32> to vector<8x128xf32>
      %63 = arith.addf %60, %62 : vector<8x128xf32>
      %cst_67 = arith.constant 0.000000e+00 : f32
      %64 = vector.broadcast %cst_67 : f32 to vector<8x128xf32>
      %65 = arith.maximumf %63, %64 : vector<8x128xf32>
      %66 = arith.truncf %65 : vector<8x128xf32> to vector<8x128xbf16>
      %c0_68 = arith.constant 0 : index
      %c0_69 = arith.constant 0 : index
      %c0_70 = arith.constant 0 : index
      %c0_71 = arith.constant 0 : index
      %67 = vector.load %arg7[%c0_68, %c0_69, %c0_70, %c0_71] : memref<1x1x8x128xbf16, #tpu.memory_space<vmem>>, vector<1x1x8x128xbf16>
      %68 = vector.shape_cast %67 : vector<1x1x8x128xbf16> to vector<8x128xbf16>
      %69 = vector.shape_cast %66 : vector<8x128xbf16> to vector<1x1x8x128xbf16>
      tpu.vector_store %arg7[%c0_68, %c0_69, %c0_70, %c0_71], %69 {strides = array<i32>} : memref<1x1x8x128xbf16, #tpu.memory_space<vmem>>, vector<1x1x8x128xbf16>,
    } else {
    }
    return
  }
  func.func @transform_0(%arg0: i32, %arg1: i32, %arg2: i32) -> (i32, i32, i32, i32, i32) {
    %c2_i32 = arith.constant 2 : i32
    %0 = arith.muli %arg1, %c2_i32 : i32
    %1 = arith.addi %0, %arg2 : i32
    %c0_i32 = arith.constant 0 : i32
    %c0_i32_0 = arith.constant 0 : i32
    %c0_i32_1 = arith.constant 0 : i32
    %c0_i32_2 = arith.constant 0 : i32
    return %arg0, %1, %c0_i32, %c0_i32_0, %c0_i32_1 : i32, i32, i32, i32, i32
  }
  func.func @transform_1(%arg0: i32, %arg1: i32, %arg2: i32) -> (i32, i32, i32, i32) {
    %c0_i32 = arith.constant 0 : i32
    %c0_i32_0 = arith.constant 0 : i32
    %c0_i32_1 = arith.constant 0 : i32
    %c0_i32_2 = arith.constant 0 : i32
    %c0_i32_3 = arith.constant 0 : i32
    return %c0_i32, %c0_i32_0, %c0_i32_1, %c0_i32_2 : i32, i32, i32, i32
  }
  func.func @transform_2(%arg0: i32, %arg1: i32, %arg2: i32) -> (i32, i32) {
    %c0_i32 = arith.constant 0 : i32
    %c0_i32_0 = arith.constant 0 : i32
    %c0_i32_1 = arith.constant 0 : i32
    return %c0_i32, %c0_i32_0 : i32, i32
  }
  func.func @transform_3(%arg0: i32, %arg1: i32, %arg2: i32) -> (i32, i32) {
    %c0_i32 = arith.constant 0 : i32
    %c0_i32_0 = arith.constant 0 : i32
    %c0_i32_1 = arith.constant 0 : i32
    return %c0_i32, %c0_i32_0 : i32, i32
  }
  func.func @transform_4(%arg0: i32, %arg1: i32, %arg2: i32) -> (i32, i32, i32, i32) {
    %c0_i32 = arith.constant 0 : i32
    %c0_i32_0 = arith.constant 0 : i32
    %c0_i32_1 = arith.constant 0 : i32
    return %arg0, %arg1, %c0_i32, %c0_i32_0 : i32, i32, i32, i32
  }
}

module attributes {stable_mosaic.version = 11 : i64} {
  func.func @_maxpool_row_kernel(%arg0: i32, %arg1: i32, %arg2: i32, %arg3: memref<1x1x2x5x128xbf16, #tpu.memory_space<vmem>>, %arg4: memref<1x1x4x128xbf16, #tpu.memory_space<vmem>>, %arg5: memref<4x128xf32, #tpu.memory_space<vmem>>) attributes {dimension_semantics = [#tpu.dimension_semantics<parallel>, #tpu.dimension_semantics<parallel>, #tpu.dimension_semantics<arbitrary>], iteration_bounds = array<i64: 6, 4, 3>, scalar_prefetch = 0 : i64, scratch_operands = 1 : i64, tpu.core_type = #tpu.core_type<tc>, window_params = [{transform_indices = @transform_0, window_bounds = array<i64: 1, 1, 2, 5, 128>}, {transform_indices = @transform_1, window_bounds = array<i64: 1, 1, 4, 128>}]} {
    %c0_i32 = arith.constant 0 : i32
    %0 = arith.cmpi eq, %arg2, %c0_i32 : i32
    %1 = arith.extui %0 : i1 to i32
    %c0_i32_0 = arith.constant 0 : i32
    %2 = arith.cmpi ne, %1, %c0_i32_0 : i32
    scf.if %2 {
      %cst = arith.constant 0.000000e+00 : f32
      %20 = vector.broadcast %cst : f32 to vector<4x128xf32>
      %c0_19 = arith.constant 0 : index
      %c0_20 = arith.constant 0 : index
      %21 = vector.load %arg5[%c0_19, %c0_20] : memref<4x128xf32, #tpu.memory_space<vmem>>, vector<4x128xf32>
      tpu.vector_store %arg5[%c0_19, %c0_20], %20 {strides = array<i32>} : memref<4x128xf32, #tpu.memory_space<vmem>>, vector<4x128xf32>,
    } else {
    }
    %c0 = arith.constant 0 : index
    %c0_1 = arith.constant 0 : index
    %3 = vector.load %arg5[%c0, %c0_1] : memref<4x128xf32, #tpu.memory_space<vmem>>, vector<4x128xf32>
    %c0_2 = arith.constant 0 : index
    %c0_3 = arith.constant 0 : index
    %c0_4 = arith.constant 0 : index
    %c0_5 = arith.constant 0 : index
    %c0_6 = arith.constant 0 : index
    %4 = vector.load %arg3[%c0_2, %c0_3, %c0_4, %c0_5, %c0_6] : memref<1x1x2x5x128xbf16, #tpu.memory_space<vmem>>, vector<1x1x1x4x128xbf16>
    %5 = vector.shape_cast %4 : vector<1x1x1x4x128xbf16> to vector<4x128xbf16>
    %6 = arith.extf %5 : vector<4x128xbf16> to vector<4x128xf32>
    %7 = arith.maximumf %3, %6 : vector<4x128xf32>
    %c0_7 = arith.constant 0 : index
    %c0_8 = arith.constant 0 : index
    %c1 = arith.constant 1 : index
    %c0_9 = arith.constant 0 : index
    %c0_10 = arith.constant 0 : index
    %8 = vector.load %arg3[%c0_7, %c0_8, %c1, %c0_9, %c0_10] : memref<1x1x2x5x128xbf16, #tpu.memory_space<vmem>>, vector<1x1x1x4x128xbf16>
    %9 = vector.shape_cast %8 : vector<1x1x1x4x128xbf16> to vector<4x128xbf16>
    %10 = arith.extf %9 : vector<4x128xbf16> to vector<4x128xf32>
    %11 = arith.maximumf %7, %10 : vector<4x128xf32>
    %c0_11 = arith.constant 0 : index
    %c0_12 = arith.constant 0 : index
    %c0_13 = arith.constant 0 : index
    %c1_14 = arith.constant 1 : index
    %c0_15 = arith.constant 0 : index
    %12 = vector.load %arg3[%c0_11, %c0_12, %c0_13, %c1_14, %c0_15] : memref<1x1x2x5x128xbf16, #tpu.memory_space<vmem>>, vector<1x1x1x4x128xbf16>
    %13 = vector.shape_cast %12 : vector<1x1x1x4x128xbf16> to vector<4x128xbf16>
    %14 = arith.extf %13 : vector<4x128xbf16> to vector<4x128xf32>
    %15 = arith.maximumf %11, %14 : vector<4x128xf32>
    %c0_16 = arith.constant 0 : index
    %c0_17 = arith.constant 0 : index
    %16 = vector.load %arg5[%c0_16, %c0_17] : memref<4x128xf32, #tpu.memory_space<vmem>>, vector<4x128xf32>
    tpu.vector_store %arg5[%c0_16, %c0_17], %15 {strides = array<i32>} : memref<4x128xf32, #tpu.memory_space<vmem>>, vector<4x128xf32>,
    %c2_i32 = arith.constant 2 : i32
    %17 = arith.cmpi eq, %arg2, %c2_i32 : i32
    %18 = arith.extui %17 : i1 to i32
    %c0_i32_18 = arith.constant 0 : i32
    %19 = arith.cmpi ne, %18, %c0_i32_18 : i32
    scf.if %19 {
      %c0_19 = arith.constant 0 : index
      %c0_20 = arith.constant 0 : index
      %20 = vector.load %arg5[%c0_19, %c0_20] : memref<4x128xf32, #tpu.memory_space<vmem>>, vector<4x128xf32>
      %21 = arith.truncf %20 : vector<4x128xf32> to vector<4x128xbf16>
      %c0_21 = arith.constant 0 : index
      %c0_22 = arith.constant 0 : index
      %c0_23 = arith.constant 0 : index
      %c0_24 = arith.constant 0 : index
      %22 = vector.load %arg4[%c0_21, %c0_22, %c0_23, %c0_24] : memref<1x1x4x128xbf16, #tpu.memory_space<vmem>>, vector<1x1x4x128xbf16>
      %23 = vector.shape_cast %22 : vector<1x1x4x128xbf16> to vector<4x128xbf16>
      %24 = vector.shape_cast %21 : vector<4x128xbf16> to vector<1x1x4x128xbf16>
      tpu.vector_store %arg4[%c0_21, %c0_22, %c0_23, %c0_24], %24 {strides = array<i32>} : memref<1x1x4x128xbf16, #tpu.memory_space<vmem>>, vector<1x1x4x128xbf16>,
    } else {
    }
    return
  }
  func.func @transform_0(%arg0: i32, %arg1: i32, %arg2: i32) -> (i32, i32, i32, i32, i32) {
    %c2_i32 = arith.constant 2 : i32
    %0 = arith.muli %arg1, %c2_i32 : i32
    %1 = arith.addi %0, %arg2 : i32
    %c0_i32 = arith.constant 0 : i32
    %c0_i32_0 = arith.constant 0 : i32
    %c0_i32_1 = arith.constant 0 : i32
    %c0_i32_2 = arith.constant 0 : i32
    return %arg0, %1, %c0_i32, %c0_i32_0, %c0_i32_1 : i32, i32, i32, i32, i32
  }
  func.func @transform_1(%arg0: i32, %arg1: i32, %arg2: i32) -> (i32, i32, i32, i32) {
    %c0_i32 = arith.constant 0 : i32
    %c0_i32_0 = arith.constant 0 : i32
    %c0_i32_1 = arith.constant 0 : i32
    return %arg0, %arg1, %c0_i32, %c0_i32_0 : i32, i32, i32, i32
  }
}

module attributes {stable_mosaic.version = 11 : i64} {
  func.func @_conv_row_res_kernel(%arg0: i32, %arg1: i32, %arg2: i32, %arg3: memref<1x1x1x6x128xbf16, #tpu.memory_space<vmem>>, %arg4: memref<3x3x128x128xbf16, #tpu.memory_space<vmem>>, %arg5: memref<1x128xf32, #tpu.memory_space<vmem>>, %arg6: memref<1x128xf32, #tpu.memory_space<vmem>>, %arg7: memref<1x1x4x128xbf16, #tpu.memory_space<vmem>>, %arg8: memref<1x1x4x128xbf16, #tpu.memory_space<vmem>>, %arg9: memref<4x128xf32, #tpu.memory_space<vmem>>) attributes {dimension_semantics = [#tpu.dimension_semantics<parallel>, #tpu.dimension_semantics<parallel>, #tpu.dimension_semantics<arbitrary>], iteration_bounds = array<i64: 6, 4, 3>, scalar_prefetch = 0 : i64, scratch_operands = 1 : i64, tpu.core_type = #tpu.core_type<tc>, window_params = [{transform_indices = @transform_0, window_bounds = array<i64: 1, 1, 1, 6, 128>}, {pipeline_mode = #tpu.pipeline_mode<synchronous>, transform_indices = @transform_1, window_bounds = array<i64: 3, 3, 128, 128>}, {pipeline_mode = #tpu.pipeline_mode<synchronous>, transform_indices = @transform_2, window_bounds = array<i64: 1, 128>}, {pipeline_mode = #tpu.pipeline_mode<synchronous>, transform_indices = @transform_3, window_bounds = array<i64: 1, 128>}, {transform_indices = @transform_4, window_bounds = array<i64: 1, 1, 4, 128>}, {transform_indices = @transform_5, window_bounds = array<i64: 1, 1, 4, 128>}]} {
    %c0_i32 = arith.constant 0 : i32
    %0 = arith.cmpi eq, %arg2, %c0_i32 : i32
    %1 = arith.extui %0 : i1 to i32
    %c0_i32_0 = arith.constant 0 : i32
    %2 = arith.cmpi ne, %1, %c0_i32_0 : i32
    scf.if %2 {
      %cst_29 = arith.constant 0.000000e+00 : f32
      %29 = vector.broadcast %cst_29 : f32 to vector<4x128xf32>
      %c0_30 = arith.constant 0 : index
      %c0_31 = arith.constant 0 : index
      %30 = vector.load %arg9[%c0_30, %c0_31] : memref<4x128xf32, #tpu.memory_space<vmem>>, vector<4x128xf32>
      tpu.vector_store %arg9[%c0_30, %c0_31], %29 {strides = array<i32>} : memref<4x128xf32, #tpu.memory_space<vmem>>, vector<4x128xf32>,
    } else {
    }
    %c0 = arith.constant 0 : index
    %c0_1 = arith.constant 0 : index
    %c0_2 = arith.constant 0 : index
    %c0_3 = arith.constant 0 : index
    %c0_4 = arith.constant 0 : index
    %3 = vector.load %arg3[%c0, %c0_1, %c0_2, %c0_3, %c0_4] : memref<1x1x1x6x128xbf16, #tpu.memory_space<vmem>>, vector<1x1x1x4x128xbf16>
    %4 = vector.shape_cast %3 : vector<1x1x1x4x128xbf16> to vector<4x128xbf16>
    %5 = arith.index_cast %arg2 : i32 to index
    %c0_5 = arith.constant 0 : index
    %c0_6 = arith.constant 0 : index
    %c0_7 = arith.constant 0 : index
    %6 = vector.load %arg4[%5, %c0_5, %c0_6, %c0_7] : memref<3x3x128x128xbf16, #tpu.memory_space<vmem>>, vector<1x1x128x128xbf16>
    %7 = vector.shape_cast %6 : vector<1x1x128x128xbf16> to vector<128x128xbf16>
    %cst = arith.constant dense<0.000000e+00> : vector<4x128xf32>
    %8 = tpu.matmul %4, %7, %cst {dimension_numbers = #tpu.dot_dimension_numbers<[1], [0], [0], [1], [0, 0, 1, 1], [], []>} : vector<4x128xbf16>, vector<128x128xbf16>, vector<4x128xf32> -> vector<4x128xf32>
    %c0_8 = arith.constant 0 : index
    %c0_9 = arith.constant 0 : index
    %c0_10 = arith.constant 0 : index
    %c1 = arith.constant 1 : index
    %c0_11 = arith.constant 0 : index
    %9 = vector.load %arg3[%c0_8, %c0_9, %c0_10, %c1, %c0_11] : memref<1x1x1x6x128xbf16, #tpu.memory_space<vmem>>, vector<1x1x1x4x128xbf16>
    %10 = vector.shape_cast %9 : vector<1x1x1x4x128xbf16> to vector<4x128xbf16>
    %11 = arith.index_cast %arg2 : i32 to index
    %c1_12 = arith.constant 1 : index
    %c0_13 = arith.constant 0 : index
    %c0_14 = arith.constant 0 : index
    %12 = vector.load %arg4[%11, %c1_12, %c0_13, %c0_14] : memref<3x3x128x128xbf16, #tpu.memory_space<vmem>>, vector<1x1x128x128xbf16>
    %13 = vector.shape_cast %12 : vector<1x1x128x128xbf16> to vector<128x128xbf16>
    %cst_15 = arith.constant dense<0.000000e+00> : vector<4x128xf32>
    %14 = tpu.matmul %10, %13, %cst_15 {dimension_numbers = #tpu.dot_dimension_numbers<[1], [0], [0], [1], [0, 0, 1, 1], [], []>} : vector<4x128xbf16>, vector<128x128xbf16>, vector<4x128xf32> -> vector<4x128xf32>
    %15 = arith.addf %8, %14 : vector<4x128xf32>
    %c0_16 = arith.constant 0 : index
    %c0_17 = arith.constant 0 : index
    %c0_18 = arith.constant 0 : index
    %c2 = arith.constant 2 : index
    %c0_19 = arith.constant 0 : index
    %16 = vector.load %arg3[%c0_16, %c0_17, %c0_18, %c2, %c0_19] : memref<1x1x1x6x128xbf16, #tpu.memory_space<vmem>>, vector<1x1x1x4x128xbf16>
    %17 = vector.shape_cast %16 : vector<1x1x1x4x128xbf16> to vector<4x128xbf16>
    %18 = arith.index_cast %arg2 : i32 to index
    %c2_20 = arith.constant 2 : index
    %c0_21 = arith.constant 0 : index
    %c0_22 = arith.constant 0 : index
    %19 = vector.load %arg4[%18, %c2_20, %c0_21, %c0_22] : memref<3x3x128x128xbf16, #tpu.memory_space<vmem>>, vector<1x1x128x128xbf16>
    %20 = vector.shape_cast %19 : vector<1x1x128x128xbf16> to vector<128x128xbf16>
    %cst_23 = arith.constant dense<0.000000e+00> : vector<4x128xf32>
    %21 = tpu.matmul %17, %20, %cst_23 {dimension_numbers = #tpu.dot_dimension_numbers<[1], [0], [0], [1], [0, 0, 1, 1], [], []>} : vector<4x128xbf16>, vector<128x128xbf16>, vector<4x128xf32> -> vector<4x128xf32>
    %22 = arith.addf %15, %21 : vector<4x128xf32>
    %c0_24 = arith.constant 0 : index
    %c0_25 = arith.constant 0 : index
    %23 = vector.load %arg9[%c0_24, %c0_25] : memref<4x128xf32, #tpu.memory_space<vmem>>, vector<4x128xf32>
    %24 = arith.addf %23, %22 : vector<4x128xf32>
    %c0_26 = arith.constant 0 : index
    %c0_27 = arith.constant 0 : index
    %25 = vector.load %arg9[%c0_26, %c0_27] : memref<4x128xf32, #tpu.memory_space<vmem>>, vector<4x128xf32>
    tpu.vector_store %arg9[%c0_26, %c0_27], %24 {strides = array<i32>} : memref<4x128xf32, #tpu.memory_space<vmem>>, vector<4x128xf32>,
    %c2_i32 = arith.constant 2 : i32
    %26 = arith.cmpi eq, %arg2, %c2_i32 : i32
    %27 = arith.extui %26 : i1 to i32
    %c0_i32_28 = arith.constant 0 : i32
    %28 = arith.cmpi ne, %27, %c0_i32_28 : i32
    scf.if %28 {
      %c0_29 = arith.constant 0 : index
      %c0_30 = arith.constant 0 : index
      %29 = vector.load %arg9[%c0_29, %c0_30] : memref<4x128xf32, #tpu.memory_space<vmem>>, vector<4x128xf32>
      %c0_31 = arith.constant 0 : index
      %c0_32 = arith.constant 0 : index
      %30 = vector.load %arg5[%c0_31, %c0_32] : memref<1x128xf32, #tpu.memory_space<vmem>>, vector<1x128xf32>
      %31 = vector.broadcast %30 : vector<1x128xf32> to vector<4x128xf32>
      %32 = arith.mulf %29, %31 : vector<4x128xf32>
      %c0_33 = arith.constant 0 : index
      %c0_34 = arith.constant 0 : index
      %33 = vector.load %arg6[%c0_33, %c0_34] : memref<1x128xf32, #tpu.memory_space<vmem>>, vector<1x128xf32>
      %34 = vector.broadcast %33 : vector<1x128xf32> to vector<4x128xf32>
      %35 = arith.addf %32, %34 : vector<4x128xf32>
      %c0_35 = arith.constant 0 : index
      %c0_36 = arith.constant 0 : index
      %c0_37 = arith.constant 0 : index
      %c0_38 = arith.constant 0 : index
      %36 = vector.load %arg7[%c0_35, %c0_36, %c0_37, %c0_38] : memref<1x1x4x128xbf16, #tpu.memory_space<vmem>>, vector<1x1x4x128xbf16>
      %37 = vector.shape_cast %36 : vector<1x1x4x128xbf16> to vector<4x128xbf16>
      %38 = arith.extf %37 : vector<4x128xbf16> to vector<4x128xf32>
      %39 = arith.addf %35, %38 : vector<4x128xf32>
      %cst_39 = arith.constant 0.000000e+00 : f32
      %40 = vector.broadcast %cst_39 : f32 to vector<4x128xf32>
      %41 = arith.maximumf %39, %40 : vector<4x128xf32>
      %42 = arith.truncf %41 : vector<4x128xf32> to vector<4x128xbf16>
      %c0_40 = arith.constant 0 : index
      %c0_41 = arith.constant 0 : index
      %c0_42 = arith.constant 0 : index
      %c0_43 = arith.constant 0 : index
      %43 = vector.load %arg8[%c0_40, %c0_41, %c0_42, %c0_43] : memref<1x1x4x128xbf16, #tpu.memory_space<vmem>>, vector<1x1x4x128xbf16>
      %44 = vector.shape_cast %43 : vector<1x1x4x128xbf16> to vector<4x128xbf16>
      %45 = vector.shape_cast %42 : vector<4x128xbf16> to vector<1x1x4x128xbf16>
      tpu.vector_store %arg8[%c0_40, %c0_41, %c0_42, %c0_43], %45 {strides = array<i32>} : memref<1x1x4x128xbf16, #tpu.memory_space<vmem>>, vector<1x1x4x128xbf16>,
    } else {
    }
    return
  }
  func.func @transform_0(%arg0: i32, %arg1: i32, %arg2: i32) -> (i32, i32, i32, i32, i32) {
    %c1_i32 = arith.constant 1 : i32
    %0 = arith.muli %arg1, %c1_i32 : i32
    %1 = arith.addi %0, %arg2 : i32
    %c0_i32 = arith.constant 0 : i32
    %c0_i32_0 = arith.constant 0 : i32
    %c0_i32_1 = arith.constant 0 : i32
    %c0_i32_2 = arith.constant 0 : i32
    return %arg0, %1, %c0_i32, %c0_i32_0, %c0_i32_1 : i32, i32, i32, i32, i32
  }
  func.func @transform_1(%arg0: i32, %arg1: i32, %arg2: i32) -> (i32, i32, i32, i32) {
    %c0_i32 = arith.constant 0 : i32
    %c0_i32_0 = arith.constant 0 : i32
    %c0_i32_1 = arith.constant 0 : i32
    %c0_i32_2 = arith.constant 0 : i32
    %c0_i32_3 = arith.constant 0 : i32
    return %c0_i32, %c0_i32_0, %c0_i32_1, %c0_i32_2 : i32, i32, i32, i32
  }
  func.func @transform_2(%arg0: i32, %arg1: i32, %arg2: i32) -> (i32, i32) {
    %c0_i32 = arith.constant 0 : i32
    %c0_i32_0 = arith.constant 0 : i32
    %c0_i32_1 = arith.constant 0 : i32
    return %c0_i32, %c0_i32_0 : i32, i32
  }
  func.func @transform_3(%arg0: i32, %arg1: i32, %arg2: i32) -> (i32, i32) {
    %c0_i32 = arith.constant 0 : i32
    %c0_i32_0 = arith.constant 0 : i32
    %c0_i32_1 = arith.constant 0 : i32
    return %c0_i32, %c0_i32_0 : i32, i32
  }
  func.func @transform_4(%arg0: i32, %arg1: i32, %arg2: i32) -> (i32, i32, i32, i32) {
    %c0_i32 = arith.constant 0 : i32
    %c0_i32_0 = arith.constant 0 : i32
    %c0_i32_1 = arith.constant 0 : i32
    return %arg0, %arg1, %c0_i32, %c0_i32_0 : i32, i32, i32, i32
  }
  func.func @transform_5(%arg0: i32, %arg1: i32, %arg2: i32) -> (i32, i32, i32, i32) {
    %c0_i32 = arith.constant 0 : i32
    %c0_i32_0 = arith.constant 0 : i32
    %c0_i32_1 = arith.constant 0 : i32
    return %arg0, %arg1, %c0_i32, %c0_i32_0 : i32, i32, i32, i32
  }
}

module attributes {stable_mosaic.version = 11 : i64} {
  func.func @_conv_row_kernel(%arg0: i32, %arg1: i32, %arg2: i32, %arg3: memref<1x1x1x6x128xbf16, #tpu.memory_space<vmem>>, %arg4: memref<3x3x128x128xbf16, #tpu.memory_space<vmem>>, %arg5: memref<1x128xf32, #tpu.memory_space<vmem>>, %arg6: memref<1x128xf32, #tpu.memory_space<vmem>>, %arg7: memref<1x1x4x128xbf16, #tpu.memory_space<vmem>>, %arg8: memref<4x128xf32, #tpu.memory_space<vmem>>) attributes {dimension_semantics = [#tpu.dimension_semantics<parallel>, #tpu.dimension_semantics<parallel>, #tpu.dimension_semantics<arbitrary>], iteration_bounds = array<i64: 6, 4, 3>, scalar_prefetch = 0 : i64, scratch_operands = 1 : i64, tpu.core_type = #tpu.core_type<tc>, window_params = [{transform_indices = @transform_0, window_bounds = array<i64: 1, 1, 1, 6, 128>}, {pipeline_mode = #tpu.pipeline_mode<synchronous>, transform_indices = @transform_1, window_bounds = array<i64: 3, 3, 128, 128>}, {pipeline_mode = #tpu.pipeline_mode<synchronous>, transform_indices = @transform_2, window_bounds = array<i64: 1, 128>}, {pipeline_mode = #tpu.pipeline_mode<synchronous>, transform_indices = @transform_3, window_bounds = array<i64: 1, 128>}, {transform_indices = @transform_4, window_bounds = array<i64: 1, 1, 4, 128>}]} {
    %c0_i32 = arith.constant 0 : i32
    %0 = arith.cmpi eq, %arg2, %c0_i32 : i32
    %1 = arith.extui %0 : i1 to i32
    %c0_i32_0 = arith.constant 0 : i32
    %2 = arith.cmpi ne, %1, %c0_i32_0 : i32
    scf.if %2 {
      %cst_29 = arith.constant 0.000000e+00 : f32
      %29 = vector.broadcast %cst_29 : f32 to vector<4x128xf32>
      %c0_30 = arith.constant 0 : index
      %c0_31 = arith.constant 0 : index
      %30 = vector.load %arg8[%c0_30, %c0_31] : memref<4x128xf32, #tpu.memory_space<vmem>>, vector<4x128xf32>
      tpu.vector_store %arg8[%c0_30, %c0_31], %29 {strides = array<i32>} : memref<4x128xf32, #tpu.memory_space<vmem>>, vector<4x128xf32>,
    } else {
    }
    %c0 = arith.constant 0 : index
    %c0_1 = arith.constant 0 : index
    %c0_2 = arith.constant 0 : index
    %c0_3 = arith.constant 0 : index
    %c0_4 = arith.constant 0 : index
    %3 = vector.load %arg3[%c0, %c0_1, %c0_2, %c0_3, %c0_4] : memref<1x1x1x6x128xbf16, #tpu.memory_space<vmem>>, vector<1x1x1x4x128xbf16>
    %4 = vector.shape_cast %3 : vector<1x1x1x4x128xbf16> to vector<4x128xbf16>
    %5 = arith.index_cast %arg2 : i32 to index
    %c0_5 = arith.constant 0 : index
    %c0_6 = arith.constant 0 : index
    %c0_7 = arith.constant 0 : index
    %6 = vector.load %arg4[%5, %c0_5, %c0_6, %c0_7] : memref<3x3x128x128xbf16, #tpu.memory_space<vmem>>, vector<1x1x128x128xbf16>
    %7 = vector.shape_cast %6 : vector<1x1x128x128xbf16> to vector<128x128xbf16>
    %cst = arith.constant dense<0.000000e+00> : vector<4x128xf32>
    %8 = tpu.matmul %4, %7, %cst {dimension_numbers = #tpu.dot_dimension_numbers<[1], [0], [0], [1], [0, 0, 1, 1], [], []>} : vector<4x128xbf16>, vector<128x128xbf16>, vector<4x128xf32> -> vector<4x128xf32>
    %c0_8 = arith.constant 0 : index
    %c0_9 = arith.constant 0 : index
    %c0_10 = arith.constant 0 : index
    %c1 = arith.constant 1 : index
    %c0_11 = arith.constant 0 : index
    %9 = vector.load %arg3[%c0_8, %c0_9, %c0_10, %c1, %c0_11] : memref<1x1x1x6x128xbf16, #tpu.memory_space<vmem>>, vector<1x1x1x4x128xbf16>
    %10 = vector.shape_cast %9 : vector<1x1x1x4x128xbf16> to vector<4x128xbf16>
    %11 = arith.index_cast %arg2 : i32 to index
    %c1_12 = arith.constant 1 : index
    %c0_13 = arith.constant 0 : index
    %c0_14 = arith.constant 0 : index
    %12 = vector.load %arg4[%11, %c1_12, %c0_13, %c0_14] : memref<3x3x128x128xbf16, #tpu.memory_space<vmem>>, vector<1x1x128x128xbf16>
    %13 = vector.shape_cast %12 : vector<1x1x128x128xbf16> to vector<128x128xbf16>
    %cst_15 = arith.constant dense<0.000000e+00> : vector<4x128xf32>
    %14 = tpu.matmul %10, %13, %cst_15 {dimension_numbers = #tpu.dot_dimension_numbers<[1], [0], [0], [1], [0, 0, 1, 1], [], []>} : vector<4x128xbf16>, vector<128x128xbf16>, vector<4x128xf32> -> vector<4x128xf32>
    %15 = arith.addf %8, %14 : vector<4x128xf32>
    %c0_16 = arith.constant 0 : index
    %c0_17 = arith.constant 0 : index
    %c0_18 = arith.constant 0 : index
    %c2 = arith.constant 2 : index
    %c0_19 = arith.constant 0 : index
    %16 = vector.load %arg3[%c0_16, %c0_17, %c0_18, %c2, %c0_19] : memref<1x1x1x6x128xbf16, #tpu.memory_space<vmem>>, vector<1x1x1x4x128xbf16>
    %17 = vector.shape_cast %16 : vector<1x1x1x4x128xbf16> to vector<4x128xbf16>
    %18 = arith.index_cast %arg2 : i32 to index
    %c2_20 = arith.constant 2 : index
    %c0_21 = arith.constant 0 : index
    %c0_22 = arith.constant 0 : index
    %19 = vector.load %arg4[%18, %c2_20, %c0_21, %c0_22] : memref<3x3x128x128xbf16, #tpu.memory_space<vmem>>, vector<1x1x128x128xbf16>
    %20 = vector.shape_cast %19 : vector<1x1x128x128xbf16> to vector<128x128xbf16>
    %cst_23 = arith.constant dense<0.000000e+00> : vector<4x128xf32>
    %21 = tpu.matmul %17, %20, %cst_23 {dimension_numbers = #tpu.dot_dimension_numbers<[1], [0], [0], [1], [0, 0, 1, 1], [], []>} : vector<4x128xbf16>, vector<128x128xbf16>, vector<4x128xf32> -> vector<4x128xf32>
    %22 = arith.addf %15, %21 : vector<4x128xf32>
    %c0_24 = arith.constant 0 : index
    %c0_25 = arith.constant 0 : index
    %23 = vector.load %arg8[%c0_24, %c0_25] : memref<4x128xf32, #tpu.memory_space<vmem>>, vector<4x128xf32>
    %24 = arith.addf %23, %22 : vector<4x128xf32>
    %c0_26 = arith.constant 0 : index
    %c0_27 = arith.constant 0 : index
    %25 = vector.load %arg8[%c0_26, %c0_27] : memref<4x128xf32, #tpu.memory_space<vmem>>, vector<4x128xf32>
    tpu.vector_store %arg8[%c0_26, %c0_27], %24 {strides = array<i32>} : memref<4x128xf32, #tpu.memory_space<vmem>>, vector<4x128xf32>,
    %c2_i32 = arith.constant 2 : i32
    %26 = arith.cmpi eq, %arg2, %c2_i32 : i32
    %27 = arith.extui %26 : i1 to i32
    %c0_i32_28 = arith.constant 0 : i32
    %28 = arith.cmpi ne, %27, %c0_i32_28 : i32
    scf.if %28 {
      %c0_29 = arith.constant 0 : index
      %c0_30 = arith.constant 0 : index
      %29 = vector.load %arg8[%c0_29, %c0_30] : memref<4x128xf32, #tpu.memory_space<vmem>>, vector<4x128xf32>
      %c0_31 = arith.constant 0 : index
      %c0_32 = arith.constant 0 : index
      %30 = vector.load %arg5[%c0_31, %c0_32] : memref<1x128xf32, #tpu.memory_space<vmem>>, vector<1x128xf32>
      %31 = vector.broadcast %30 : vector<1x128xf32> to vector<4x128xf32>
      %32 = arith.mulf %29, %31 : vector<4x128xf32>
      %c0_33 = arith.constant 0 : index
      %c0_34 = arith.constant 0 : index
      %33 = vector.load %arg6[%c0_33, %c0_34] : memref<1x128xf32, #tpu.memory_space<vmem>>, vector<1x128xf32>
      %34 = vector.broadcast %33 : vector<1x128xf32> to vector<4x128xf32>
      %35 = arith.addf %32, %34 : vector<4x128xf32>
      %cst_35 = arith.constant 0.000000e+00 : f32
      %36 = vector.broadcast %cst_35 : f32 to vector<4x128xf32>
      %37 = arith.maximumf %35, %36 : vector<4x128xf32>
      %38 = arith.truncf %37 : vector<4x128xf32> to vector<4x128xbf16>
      %c0_36 = arith.constant 0 : index
      %c0_37 = arith.constant 0 : index
      %c0_38 = arith.constant 0 : index
      %c0_39 = arith.constant 0 : index
      %39 = vector.load %arg7[%c0_36, %c0_37, %c0_38, %c0_39] : memref<1x1x4x128xbf16, #tpu.memory_space<vmem>>, vector<1x1x4x128xbf16>
      %40 = vector.shape_cast %39 : vector<1x1x4x128xbf16> to vector<4x128xbf16>
      %41 = vector.shape_cast %38 : vector<4x128xbf16> to vector<1x1x4x128xbf16>
      tpu.vector_store %arg7[%c0_36, %c0_37, %c0_38, %c0_39], %41 {strides = array<i32>} : memref<1x1x4x128xbf16, #tpu.memory_space<vmem>>, vector<1x1x4x128xbf16>,
    } else {
    }
    return
  }
  func.func @transform_0(%arg0: i32, %arg1: i32, %arg2: i32) -> (i32, i32, i32, i32, i32) {
    %c1_i32 = arith.constant 1 : i32
    %0 = arith.muli %arg1, %c1_i32 : i32
    %1 = arith.addi %0, %arg2 : i32
    %c0_i32 = arith.constant 0 : i32
    %c0_i32_0 = arith.constant 0 : i32
    %c0_i32_1 = arith.constant 0 : i32
    %c0_i32_2 = arith.constant 0 : i32
    return %arg0, %1, %c0_i32, %c0_i32_0, %c0_i32_1 : i32, i32, i32, i32, i32
  }
  func.func @transform_1(%arg0: i32, %arg1: i32, %arg2: i32) -> (i32, i32, i32, i32) {
    %c0_i32 = arith.constant 0 : i32
    %c0_i32_0 = arith.constant 0 : i32
    %c0_i32_1 = arith.constant 0 : i32
    %c0_i32_2 = arith.constant 0 : i32
    %c0_i32_3 = arith.constant 0 : i32
    return %c0_i32, %c0_i32_0, %c0_i32_1, %c0_i32_2 : i32, i32, i32, i32
  }
  func.func @transform_2(%arg0: i32, %arg1: i32, %arg2: i32) -> (i32, i32) {
    %c0_i32 = arith.constant 0 : i32
    %c0_i32_0 = arith.constant 0 : i32
    %c0_i32_1 = arith.constant 0 : i32
    return %c0_i32, %c0_i32_0 : i32, i32
  }
  func.func @transform_3(%arg0: i32, %arg1: i32, %arg2: i32) -> (i32, i32) {
    %c0_i32 = arith.constant 0 : i32
    %c0_i32_0 = arith.constant 0 : i32
    %c0_i32_1 = arith.constant 0 : i32
    return %c0_i32, %c0_i32_0 : i32, i32
  }
  func.func @transform_4(%arg0: i32, %arg1: i32, %arg2: i32) -> (i32, i32, i32, i32) {
    %c0_i32 = arith.constant 0 : i32
    %c0_i32_0 = arith.constant 0 : i32
    %c0_i32_1 = arith.constant 0 : i32
    return %arg0, %arg1, %c0_i32, %c0_i32_0 : i32, i32, i32, i32
  }
}

module attributes {stable_mosaic.version = 11 : i64} {
  func.func @_conv_row_kernel(%arg0: i32, %arg1: i32, %arg2: i32, %arg3: memref<1x1x2x3x128xbf16, #tpu.memory_space<vmem>>, %arg4: memref<3x3x128x128xbf16, #tpu.memory_space<vmem>>, %arg5: memref<1x128xf32, #tpu.memory_space<vmem>>, %arg6: memref<1x128xf32, #tpu.memory_space<vmem>>, %arg7: memref<1x1x2x128xbf16, #tpu.memory_space<vmem>>, %arg8: memref<2x128xf32, #tpu.memory_space<vmem>>) attributes {dimension_semantics = [#tpu.dimension_semantics<parallel>, #tpu.dimension_semantics<parallel>, #tpu.dimension_semantics<arbitrary>], iteration_bounds = array<i64: 6, 2, 3>, scalar_prefetch = 0 : i64, scratch_operands = 1 : i64, tpu.core_type = #tpu.core_type<tc>, window_params = [{transform_indices = @transform_0, window_bounds = array<i64: 1, 1, 2, 3, 128>}, {pipeline_mode = #tpu.pipeline_mode<synchronous>, transform_indices = @transform_1, window_bounds = array<i64: 3, 3, 128, 128>}, {pipeline_mode = #tpu.pipeline_mode<synchronous>, transform_indices = @transform_2, window_bounds = array<i64: 1, 128>}, {pipeline_mode = #tpu.pipeline_mode<synchronous>, transform_indices = @transform_3, window_bounds = array<i64: 1, 128>}, {transform_indices = @transform_4, window_bounds = array<i64: 1, 1, 2, 128>}]} {
    %c0_i32 = arith.constant 0 : i32
    %0 = arith.cmpi eq, %arg2, %c0_i32 : i32
    %1 = arith.extui %0 : i1 to i32
    %c0_i32_0 = arith.constant 0 : i32
    %2 = arith.cmpi ne, %1, %c0_i32_0 : i32
    scf.if %2 {
      %cst_29 = arith.constant 0.000000e+00 : f32
      %29 = vector.broadcast %cst_29 : f32 to vector<2x128xf32>
      %c0_30 = arith.constant 0 : index
      %c0_31 = arith.constant 0 : index
      %30 = vector.load %arg8[%c0_30, %c0_31] : memref<2x128xf32, #tpu.memory_space<vmem>>, vector<2x128xf32>
      tpu.vector_store %arg8[%c0_30, %c0_31], %29 {strides = array<i32>} : memref<2x128xf32, #tpu.memory_space<vmem>>, vector<2x128xf32>,
    } else {
    }
    %c0 = arith.constant 0 : index
    %c0_1 = arith.constant 0 : index
    %c0_2 = arith.constant 0 : index
    %c0_3 = arith.constant 0 : index
    %c0_4 = arith.constant 0 : index
    %3 = vector.load %arg3[%c0, %c0_1, %c0_2, %c0_3, %c0_4] : memref<1x1x2x3x128xbf16, #tpu.memory_space<vmem>>, vector<1x1x1x2x128xbf16>
    %4 = vector.shape_cast %3 : vector<1x1x1x2x128xbf16> to vector<2x128xbf16>
    %5 = arith.index_cast %arg2 : i32 to index
    %c0_5 = arith.constant 0 : index
    %c0_6 = arith.constant 0 : index
    %c0_7 = arith.constant 0 : index
    %6 = vector.load %arg4[%5, %c0_5, %c0_6, %c0_7] : memref<3x3x128x128xbf16, #tpu.memory_space<vmem>>, vector<1x1x128x128xbf16>
    %7 = vector.shape_cast %6 : vector<1x1x128x128xbf16> to vector<128x128xbf16>
    %cst = arith.constant dense<0.000000e+00> : vector<2x128xf32>
    %8 = tpu.matmul %4, %7, %cst {dimension_numbers = #tpu.dot_dimension_numbers<[1], [0], [0], [1], [0, 0, 1, 1], [], []>} : vector<2x128xbf16>, vector<128x128xbf16>, vector<2x128xf32> -> vector<2x128xf32>
    %c0_8 = arith.constant 0 : index
    %c0_9 = arith.constant 0 : index
    %c1 = arith.constant 1 : index
    %c0_10 = arith.constant 0 : index
    %c0_11 = arith.constant 0 : index
    %9 = vector.load %arg3[%c0_8, %c0_9, %c1, %c0_10, %c0_11] : memref<1x1x2x3x128xbf16, #tpu.memory_space<vmem>>, vector<1x1x1x2x128xbf16>
    %10 = vector.shape_cast %9 : vector<1x1x1x2x128xbf16> to vector<2x128xbf16>
    %11 = arith.index_cast %arg2 : i32 to index
    %c1_12 = arith.constant 1 : index
    %c0_13 = arith.constant 0 : index
    %c0_14 = arith.constant 0 : index
    %12 = vector.load %arg4[%11, %c1_12, %c0_13, %c0_14] : memref<3x3x128x128xbf16, #tpu.memory_space<vmem>>, vector<1x1x128x128xbf16>
    %13 = vector.shape_cast %12 : vector<1x1x128x128xbf16> to vector<128x128xbf16>
    %cst_15 = arith.constant dense<0.000000e+00> : vector<2x128xf32>
    %14 = tpu.matmul %10, %13, %cst_15 {dimension_numbers = #tpu.dot_dimension_numbers<[1], [0], [0], [1], [0, 0, 1, 1], [], []>} : vector<2x128xbf16>, vector<128x128xbf16>, vector<2x128xf32> -> vector<2x128xf32>
    %15 = arith.addf %8, %14 : vector<2x128xf32>
    %c0_16 = arith.constant 0 : index
    %c0_17 = arith.constant 0 : index
    %c0_18 = arith.constant 0 : index
    %c1_19 = arith.constant 1 : index
    %c0_20 = arith.constant 0 : index
    %16 = vector.load %arg3[%c0_16, %c0_17, %c0_18, %c1_19, %c0_20] : memref<1x1x2x3x128xbf16, #tpu.memory_space<vmem>>, vector<1x1x1x2x128xbf16>
    %17 = vector.shape_cast %16 : vector<1x1x1x2x128xbf16> to vector<2x128xbf16>
    %18 = arith.index_cast %arg2 : i32 to index
    %c2 = arith.constant 2 : index
    %c0_21 = arith.constant 0 : index
    %c0_22 = arith.constant 0 : index
    %19 = vector.load %arg4[%18, %c2, %c0_21, %c0_22] : memref<3x3x128x128xbf16, #tpu.memory_space<vmem>>, vector<1x1x128x128xbf16>
    %20 = vector.shape_cast %19 : vector<1x1x128x128xbf16> to vector<128x128xbf16>
    %cst_23 = arith.constant dense<0.000000e+00> : vector<2x128xf32>
    %21 = tpu.matmul %17, %20, %cst_23 {dimension_numbers = #tpu.dot_dimension_numbers<[1], [0], [0], [1], [0, 0, 1, 1], [], []>} : vector<2x128xbf16>, vector<128x128xbf16>, vector<2x128xf32> -> vector<2x128xf32>
    %22 = arith.addf %15, %21 : vector<2x128xf32>
    %c0_24 = arith.constant 0 : index
    %c0_25 = arith.constant 0 : index
    %23 = vector.load %arg8[%c0_24, %c0_25] : memref<2x128xf32, #tpu.memory_space<vmem>>, vector<2x128xf32>
    %24 = arith.addf %23, %22 : vector<2x128xf32>
    %c0_26 = arith.constant 0 : index
    %c0_27 = arith.constant 0 : index
    %25 = vector.load %arg8[%c0_26, %c0_27] : memref<2x128xf32, #tpu.memory_space<vmem>>, vector<2x128xf32>
    tpu.vector_store %arg8[%c0_26, %c0_27], %24 {strides = array<i32>} : memref<2x128xf32, #tpu.memory_space<vmem>>, vector<2x128xf32>,
    %c2_i32 = arith.constant 2 : i32
    %26 = arith.cmpi eq, %arg2, %c2_i32 : i32
    %27 = arith.extui %26 : i1 to i32
    %c0_i32_28 = arith.constant 0 : i32
    %28 = arith.cmpi ne, %27, %c0_i32_28 : i32
    scf.if %28 {
      %c0_29 = arith.constant 0 : index
      %c0_30 = arith.constant 0 : index
      %29 = vector.load %arg8[%c0_29, %c0_30] : memref<2x128xf32, #tpu.memory_space<vmem>>, vector<2x128xf32>
      %c0_31 = arith.constant 0 : index
      %c0_32 = arith.constant 0 : index
      %30 = vector.load %arg5[%c0_31, %c0_32] : memref<1x128xf32, #tpu.memory_space<vmem>>, vector<1x128xf32>
      %31 = vector.broadcast %30 : vector<1x128xf32> to vector<2x128xf32>
      %32 = arith.mulf %29, %31 : vector<2x128xf32>
      %c0_33 = arith.constant 0 : index
      %c0_34 = arith.constant 0 : index
      %33 = vector.load %arg6[%c0_33, %c0_34] : memref<1x128xf32, #tpu.memory_space<vmem>>, vector<1x128xf32>
      %34 = vector.broadcast %33 : vector<1x128xf32> to vector<2x128xf32>
      %35 = arith.addf %32, %34 : vector<2x128xf32>
      %cst_35 = arith.constant 0.000000e+00 : f32
      %36 = vector.broadcast %cst_35 : f32 to vector<2x128xf32>
      %37 = arith.maximumf %35, %36 : vector<2x128xf32>
      %38 = arith.truncf %37 : vector<2x128xf32> to vector<2x128xbf16>
      %c0_36 = arith.constant 0 : index
      %c0_37 = arith.constant 0 : index
      %c0_38 = arith.constant 0 : index
      %c0_39 = arith.constant 0 : index
      %39 = vector.load %arg7[%c0_36, %c0_37, %c0_38, %c0_39] : memref<1x1x2x128xbf16, #tpu.memory_space<vmem>>, vector<1x1x2x128xbf16>
      %40 = vector.shape_cast %39 : vector<1x1x2x128xbf16> to vector<2x128xbf16>
      %41 = vector.shape_cast %38 : vector<2x128xbf16> to vector<1x1x2x128xbf16>
      tpu.vector_store %arg7[%c0_36, %c0_37, %c0_38, %c0_39], %41 {strides = array<i32>} : memref<1x1x2x128xbf16, #tpu.memory_space<vmem>>, vector<1x1x2x128xbf16>,
    } else {
    }
    return
  }
  func.func @transform_0(%arg0: i32, %arg1: i32, %arg2: i32) -> (i32, i32, i32, i32, i32) {
    %c2_i32 = arith.constant 2 : i32
    %0 = arith.muli %arg1, %c2_i32 : i32
    %1 = arith.addi %0, %arg2 : i32
    %c0_i32 = arith.constant 0 : i32
    %c0_i32_0 = arith.constant 0 : i32
    %c0_i32_1 = arith.constant 0 : i32
    %c0_i32_2 = arith.constant 0 : i32
    return %arg0, %1, %c0_i32, %c0_i32_0, %c0_i32_1 : i32, i32, i32, i32, i32
  }
  func.func @transform_1(%arg0: i32, %arg1: i32, %arg2: i32) -> (i32, i32, i32, i32) {
    %c0_i32 = arith.constant 0 : i32
    %c0_i32_0 = arith.constant 0 : i32
    %c0_i32_1 = arith.constant 0 : i32
    %c0_i32_2 = arith.constant 0 : i32
    %c0_i32_3 = arith.constant 0 : i32
    return %c0_i32, %c0_i32_0, %c0_i32_1, %c0_i32_2 : i32, i32, i32, i32
  }
  func.func @transform_2(%arg0: i32, %arg1: i32, %arg2: i32) -> (i32, i32) {
    %c0_i32 = arith.constant 0 : i32
    %c0_i32_0 = arith.constant 0 : i32
    %c0_i32_1 = arith.constant 0 : i32
    return %c0_i32, %c0_i32_0 : i32, i32
  }
  func.func @transform_3(%arg0: i32, %arg1: i32, %arg2: i32) -> (i32, i32) {
    %c0_i32 = arith.constant 0 : i32
    %c0_i32_0 = arith.constant 0 : i32
    %c0_i32_1 = arith.constant 0 : i32
    return %c0_i32, %c0_i32_0 : i32, i32
  }
  func.func @transform_4(%arg0: i32, %arg1: i32, %arg2: i32) -> (i32, i32, i32, i32) {
    %c0_i32 = arith.constant 0 : i32
    %c0_i32_0 = arith.constant 0 : i32
    %c0_i32_1 = arith.constant 0 : i32
    return %arg0, %arg1, %c0_i32, %c0_i32_0 : i32, i32, i32, i32
  }
}

module attributes {stable_mosaic.version = 11 : i64} {
  func.func @_mm_kernel(%arg0: i32, %arg1: memref<16x128xbf16, #tpu.memory_space<vmem>>, %arg2: memref<128x128xbf16, #tpu.memory_space<vmem>>, %arg3: memref<1x128xf32, #tpu.memory_space<vmem>>, %arg4: memref<1x128xf32, #tpu.memory_space<vmem>>, %arg5: memref<16x128xbf16, #tpu.memory_space<vmem>>) attributes {dimension_semantics = [#tpu.dimension_semantics<parallel>], iteration_bounds = array<i64: 2>, scalar_prefetch = 0 : i64, scratch_operands = 0 : i64, tpu.core_type = #tpu.core_type<tc>, window_params = [{transform_indices = @transform_0, window_bounds = array<i64: 16, 128>}, {pipeline_mode = #tpu.pipeline_mode<synchronous>, transform_indices = @transform_1, window_bounds = array<i64: 128, 128>}, {pipeline_mode = #tpu.pipeline_mode<synchronous>, transform_indices = @transform_2, window_bounds = array<i64: 1, 128>}, {pipeline_mode = #tpu.pipeline_mode<synchronous>, transform_indices = @transform_3, window_bounds = array<i64: 1, 128>}, {transform_indices = @transform_4, window_bounds = array<i64: 16, 128>}]} {
    %c0 = arith.constant 0 : index
    %c0_0 = arith.constant 0 : index
    %0 = vector.load %arg1[%c0, %c0_0] : memref<16x128xbf16, #tpu.memory_space<vmem>>, vector<16x128xbf16>
    %c0_1 = arith.constant 0 : index
    %c0_2 = arith.constant 0 : index
    %1 = vector.load %arg2[%c0_1, %c0_2] : memref<128x128xbf16, #tpu.memory_space<vmem>>, vector<128x128xbf16>
    %cst = arith.constant dense<0.000000e+00> : vector<16x128xf32>
    %2 = tpu.matmul %0, %1, %cst {dimension_numbers = #tpu.dot_dimension_numbers<[1], [0], [0], [1], [0, 0, 1, 1], [], []>} : vector<16x128xbf16>, vector<128x128xbf16>, vector<16x128xf32> -> vector<16x128xf32>
    %c0_3 = arith.constant 0 : index
    %c0_4 = arith.constant 0 : index
    %3 = vector.load %arg3[%c0_3, %c0_4] : memref<1x128xf32, #tpu.memory_space<vmem>>, vector<1x128xf32>
    %4 = vector.broadcast %3 : vector<1x128xf32> to vector<16x128xf32>
    %5 = arith.mulf %2, %4 : vector<16x128xf32>
    %c0_5 = arith.constant 0 : index
    %c0_6 = arith.constant 0 : index
    %6 = vector.load %arg4[%c0_5, %c0_6] : memref<1x128xf32, #tpu.memory_space<vmem>>, vector<1x128xf32>
    %7 = vector.broadcast %6 : vector<1x128xf32> to vector<16x128xf32>
    %8 = arith.addf %5, %7 : vector<16x128xf32>
    %9 = arith.truncf %8 : vector<16x128xf32> to vector<16x128xbf16>
    %c0_7 = arith.constant 0 : index
    %c0_8 = arith.constant 0 : index
    %10 = vector.load %arg5[%c0_7, %c0_8] : memref<16x128xbf16, #tpu.memory_space<vmem>>, vector<16x128xbf16>
    tpu.vector_store %arg5[%c0_7, %c0_8], %9 {strides = array<i32>} : memref<16x128xbf16, #tpu.memory_space<vmem>>, vector<16x128xbf16>,
    return
  }
  func.func @transform_0(%arg0: i32) -> (i32, i32) {
    %c0_i32 = arith.constant 0 : i32
    %c0_i32_0 = arith.constant 0 : i32
    return %arg0, %c0_i32 : i32, i32
  }
  func.func @transform_1(%arg0: i32) -> (i32, i32) {
    %c0_i32 = arith.constant 0 : i32
    %c0_i32_0 = arith.constant 0 : i32
    %c0_i32_1 = arith.constant 0 : i32
    return %c0_i32, %c0_i32_0 : i32, i32
  }
  func.func @transform_2(%arg0: i32) -> (i32, i32) {
    %c0_i32 = arith.constant 0 : i32
    %c0_i32_0 = arith.constant 0 : i32
    %c0_i32_1 = arith.constant 0 : i32
    return %c0_i32, %c0_i32_0 : i32, i32
  }
  func.func @transform_3(%arg0: i32) -> (i32, i32) {
    %c0_i32 = arith.constant 0 : i32
    %c0_i32_0 = arith.constant 0 : i32
    %c0_i32_1 = arith.constant 0 : i32
    return %c0_i32, %c0_i32_0 : i32, i32
  }
  func.func @transform_4(%arg0: i32) -> (i32, i32) {
    %c0_i32 = arith.constant 0 : i32
    %c0_i32_0 = arith.constant 0 : i32
    return %arg0, %c0_i32 : i32, i32
  }
}

module attributes {stable_mosaic.version = 11 : i64} {
  func.func @_conv_row_res_kernel(%arg0: i32, %arg1: i32, %arg2: i32, %arg3: memref<1x1x1x4x128xbf16, #tpu.memory_space<vmem>>, %arg4: memref<3x3x128x128xbf16, #tpu.memory_space<vmem>>, %arg5: memref<1x128xf32, #tpu.memory_space<vmem>>, %arg6: memref<1x128xf32, #tpu.memory_space<vmem>>, %arg7: memref<1x1x2x128xbf16, #tpu.memory_space<vmem>>, %arg8: memref<1x1x2x128xbf16, #tpu.memory_space<vmem>>, %arg9: memref<2x128xf32, #tpu.memory_space<vmem>>) attributes {dimension_semantics = [#tpu.dimension_semantics<parallel>, #tpu.dimension_semantics<parallel>, #tpu.dimension_semantics<arbitrary>], iteration_bounds = array<i64: 6, 2, 3>, scalar_prefetch = 0 : i64, scratch_operands = 1 : i64, tpu.core_type = #tpu.core_type<tc>, window_params = [{transform_indices = @transform_0, window_bounds = array<i64: 1, 1, 1, 4, 128>}, {pipeline_mode = #tpu.pipeline_mode<synchronous>, transform_indices = @transform_1, window_bounds = array<i64: 3, 3, 128, 128>}, {pipeline_mode = #tpu.pipeline_mode<synchronous>, transform_indices = @transform_2, window_bounds = array<i64: 1, 128>}, {pipeline_mode = #tpu.pipeline_mode<synchronous>, transform_indices = @transform_3, window_bounds = array<i64: 1, 128>}, {transform_indices = @transform_4, window_bounds = array<i64: 1, 1, 2, 128>}, {transform_indices = @transform_5, window_bounds = array<i64: 1, 1, 2, 128>}]} {
    %c0_i32 = arith.constant 0 : i32
    %0 = arith.cmpi eq, %arg2, %c0_i32 : i32
    %1 = arith.extui %0 : i1 to i32
    %c0_i32_0 = arith.constant 0 : i32
    %2 = arith.cmpi ne, %1, %c0_i32_0 : i32
    scf.if %2 {
      %cst_29 = arith.constant 0.000000e+00 : f32
      %29 = vector.broadcast %cst_29 : f32 to vector<2x128xf32>
      %c0_30 = arith.constant 0 : index
      %c0_31 = arith.constant 0 : index
      %30 = vector.load %arg9[%c0_30, %c0_31] : memref<2x128xf32, #tpu.memory_space<vmem>>, vector<2x128xf32>
      tpu.vector_store %arg9[%c0_30, %c0_31], %29 {strides = array<i32>} : memref<2x128xf32, #tpu.memory_space<vmem>>, vector<2x128xf32>,
    } else {
    }
    %c0 = arith.constant 0 : index
    %c0_1 = arith.constant 0 : index
    %c0_2 = arith.constant 0 : index
    %c0_3 = arith.constant 0 : index
    %c0_4 = arith.constant 0 : index
    %3 = vector.load %arg3[%c0, %c0_1, %c0_2, %c0_3, %c0_4] : memref<1x1x1x4x128xbf16, #tpu.memory_space<vmem>>, vector<1x1x1x2x128xbf16>
    %4 = vector.shape_cast %3 : vector<1x1x1x2x128xbf16> to vector<2x128xbf16>
    %5 = arith.index_cast %arg2 : i32 to index
    %c0_5 = arith.constant 0 : index
    %c0_6 = arith.constant 0 : index
    %c0_7 = arith.constant 0 : index
    %6 = vector.load %arg4[%5, %c0_5, %c0_6, %c0_7] : memref<3x3x128x128xbf16, #tpu.memory_space<vmem>>, vector<1x1x128x128xbf16>
    %7 = vector.shape_cast %6 : vector<1x1x128x128xbf16> to vector<128x128xbf16>
    %cst = arith.constant dense<0.000000e+00> : vector<2x128xf32>
    %8 = tpu.matmul %4, %7, %cst {dimension_numbers = #tpu.dot_dimension_numbers<[1], [0], [0], [1], [0, 0, 1, 1], [], []>} : vector<2x128xbf16>, vector<128x128xbf16>, vector<2x128xf32> -> vector<2x128xf32>
    %c0_8 = arith.constant 0 : index
    %c0_9 = arith.constant 0 : index
    %c0_10 = arith.constant 0 : index
    %c1 = arith.constant 1 : index
    %c0_11 = arith.constant 0 : index
    %9 = vector.load %arg3[%c0_8, %c0_9, %c0_10, %c1, %c0_11] : memref<1x1x1x4x128xbf16, #tpu.memory_space<vmem>>, vector<1x1x1x2x128xbf16>
    %10 = vector.shape_cast %9 : vector<1x1x1x2x128xbf16> to vector<2x128xbf16>
    %11 = arith.index_cast %arg2 : i32 to index
    %c1_12 = arith.constant 1 : index
    %c0_13 = arith.constant 0 : index
    %c0_14 = arith.constant 0 : index
    %12 = vector.load %arg4[%11, %c1_12, %c0_13, %c0_14] : memref<3x3x128x128xbf16, #tpu.memory_space<vmem>>, vector<1x1x128x128xbf16>
    %13 = vector.shape_cast %12 : vector<1x1x128x128xbf16> to vector<128x128xbf16>
    %cst_15 = arith.constant dense<0.000000e+00> : vector<2x128xf32>
    %14 = tpu.matmul %10, %13, %cst_15 {dimension_numbers = #tpu.dot_dimension_numbers<[1], [0], [0], [1], [0, 0, 1, 1], [], []>} : vector<2x128xbf16>, vector<128x128xbf16>, vector<2x128xf32> -> vector<2x128xf32>
    %15 = arith.addf %8, %14 : vector<2x128xf32>
    %c0_16 = arith.constant 0 : index
    %c0_17 = arith.constant 0 : index
    %c0_18 = arith.constant 0 : index
    %c2 = arith.constant 2 : index
    %c0_19 = arith.constant 0 : index
    %16 = vector.load %arg3[%c0_16, %c0_17, %c0_18, %c2, %c0_19] : memref<1x1x1x4x128xbf16, #tpu.memory_space<vmem>>, vector<1x1x1x2x128xbf16>
    %17 = vector.shape_cast %16 : vector<1x1x1x2x128xbf16> to vector<2x128xbf16>
    %18 = arith.index_cast %arg2 : i32 to index
    %c2_20 = arith.constant 2 : index
    %c0_21 = arith.constant 0 : index
    %c0_22 = arith.constant 0 : index
    %19 = vector.load %arg4[%18, %c2_20, %c0_21, %c0_22] : memref<3x3x128x128xbf16, #tpu.memory_space<vmem>>, vector<1x1x128x128xbf16>
    %20 = vector.shape_cast %19 : vector<1x1x128x128xbf16> to vector<128x128xbf16>
    %cst_23 = arith.constant dense<0.000000e+00> : vector<2x128xf32>
    %21 = tpu.matmul %17, %20, %cst_23 {dimension_numbers = #tpu.dot_dimension_numbers<[1], [0], [0], [1], [0, 0, 1, 1], [], []>} : vector<2x128xbf16>, vector<128x128xbf16>, vector<2x128xf32> -> vector<2x128xf32>
    %22 = arith.addf %15, %21 : vector<2x128xf32>
    %c0_24 = arith.constant 0 : index
    %c0_25 = arith.constant 0 : index
    %23 = vector.load %arg9[%c0_24, %c0_25] : memref<2x128xf32, #tpu.memory_space<vmem>>, vector<2x128xf32>
    %24 = arith.addf %23, %22 : vector<2x128xf32>
    %c0_26 = arith.constant 0 : index
    %c0_27 = arith.constant 0 : index
    %25 = vector.load %arg9[%c0_26, %c0_27] : memref<2x128xf32, #tpu.memory_space<vmem>>, vector<2x128xf32>
    tpu.vector_store %arg9[%c0_26, %c0_27], %24 {strides = array<i32>} : memref<2x128xf32, #tpu.memory_space<vmem>>, vector<2x128xf32>,
    %c2_i32 = arith.constant 2 : i32
    %26 = arith.cmpi eq, %arg2, %c2_i32 : i32
    %27 = arith.extui %26 : i1 to i32
    %c0_i32_28 = arith.constant 0 : i32
    %28 = arith.cmpi ne, %27, %c0_i32_28 : i32
    scf.if %28 {
      %c0_29 = arith.constant 0 : index
      %c0_30 = arith.constant 0 : index
      %29 = vector.load %arg9[%c0_29, %c0_30] : memref<2x128xf32, #tpu.memory_space<vmem>>, vector<2x128xf32>
      %c0_31 = arith.constant 0 : index
      %c0_32 = arith.constant 0 : index
      %30 = vector.load %arg5[%c0_31, %c0_32] : memref<1x128xf32, #tpu.memory_space<vmem>>, vector<1x128xf32>
      %31 = vector.broadcast %30 : vector<1x128xf32> to vector<2x128xf32>
      %32 = arith.mulf %29, %31 : vector<2x128xf32>
      %c0_33 = arith.constant 0 : index
      %c0_34 = arith.constant 0 : index
      %33 = vector.load %arg6[%c0_33, %c0_34] : memref<1x128xf32, #tpu.memory_space<vmem>>, vector<1x128xf32>
      %34 = vector.broadcast %33 : vector<1x128xf32> to vector<2x128xf32>
      %35 = arith.addf %32, %34 : vector<2x128xf32>
      %c0_35 = arith.constant 0 : index
      %c0_36 = arith.constant 0 : index
      %c0_37 = arith.constant 0 : index
      %c0_38 = arith.constant 0 : index
      %36 = vector.load %arg7[%c0_35, %c0_36, %c0_37, %c0_38] : memref<1x1x2x128xbf16, #tpu.memory_space<vmem>>, vector<1x1x2x128xbf16>
      %37 = vector.shape_cast %36 : vector<1x1x2x128xbf16> to vector<2x128xbf16>
      %38 = arith.extf %37 : vector<2x128xbf16> to vector<2x128xf32>
      %39 = arith.addf %35, %38 : vector<2x128xf32>
      %cst_39 = arith.constant 0.000000e+00 : f32
      %40 = vector.broadcast %cst_39 : f32 to vector<2x128xf32>
      %41 = arith.maximumf %39, %40 : vector<2x128xf32>
      %42 = arith.truncf %41 : vector<2x128xf32> to vector<2x128xbf16>
      %c0_40 = arith.constant 0 : index
      %c0_41 = arith.constant 0 : index
      %c0_42 = arith.constant 0 : index
      %c0_43 = arith.constant 0 : index
      %43 = vector.load %arg8[%c0_40, %c0_41, %c0_42, %c0_43] : memref<1x1x2x128xbf16, #tpu.memory_space<vmem>>, vector<1x1x2x128xbf16>
      %44 = vector.shape_cast %43 : vector<1x1x2x128xbf16> to vector<2x128xbf16>
      %45 = vector.shape_cast %42 : vector<2x128xbf16> to vector<1x1x2x128xbf16>
      tpu.vector_store %arg8[%c0_40, %c0_41, %c0_42, %c0_43], %45 {strides = array<i32>} : memref<1x1x2x128xbf16, #tpu.memory_space<vmem>>, vector<1x1x2x128xbf16>,
    } else {
    }
    return
  }
  func.func @transform_0(%arg0: i32, %arg1: i32, %arg2: i32) -> (i32, i32, i32, i32, i32) {
    %c1_i32 = arith.constant 1 : i32
    %0 = arith.muli %arg1, %c1_i32 : i32
    %1 = arith.addi %0, %arg2 : i32
    %c0_i32 = arith.constant 0 : i32
    %c0_i32_0 = arith.constant 0 : i32
    %c0_i32_1 = arith.constant 0 : i32
    %c0_i32_2 = arith.constant 0 : i32
    return %arg0, %1, %c0_i32, %c0_i32_0, %c0_i32_1 : i32, i32, i32, i32, i32
  }
  func.func @transform_1(%arg0: i32, %arg1: i32, %arg2: i32) -> (i32, i32, i32, i32) {
    %c0_i32 = arith.constant 0 : i32
    %c0_i32_0 = arith.constant 0 : i32
    %c0_i32_1 = arith.constant 0 : i32
    %c0_i32_2 = arith.constant 0 : i32
    %c0_i32_3 = arith.constant 0 : i32
    return %c0_i32, %c0_i32_0, %c0_i32_1, %c0_i32_2 : i32, i32, i32, i32
  }
  func.func @transform_2(%arg0: i32, %arg1: i32, %arg2: i32) -> (i32, i32) {
    %c0_i32 = arith.constant 0 : i32
    %c0_i32_0 = arith.constant 0 : i32
    %c0_i32_1 = arith.constant 0 : i32
    return %c0_i32, %c0_i32_0 : i32, i32
  }
  func.func @transform_3(%arg0: i32, %arg1: i32, %arg2: i32) -> (i32, i32) {
    %c0_i32 = arith.constant 0 : i32
    %c0_i32_0 = arith.constant 0 : i32
    %c0_i32_1 = arith.constant 0 : i32
    return %c0_i32, %c0_i32_0 : i32, i32
  }
  func.func @transform_4(%arg0: i32, %arg1: i32, %arg2: i32) -> (i32, i32, i32, i32) {
    %c0_i32 = arith.constant 0 : i32
    %c0_i32_0 = arith.constant 0 : i32
    %c0_i32_1 = arith.constant 0 : i32
    return %arg0, %arg1, %c0_i32, %c0_i32_0 : i32, i32, i32, i32
  }
  func.func @transform_5(%arg0: i32, %arg1: i32, %arg2: i32) -> (i32, i32, i32, i32) {
    %c0_i32 = arith.constant 0 : i32
    %c0_i32_0 = arith.constant 0 : i32
    %c0_i32_1 = arith.constant 0 : i32
    return %arg0, %arg1, %c0_i32, %c0_i32_0 : i32, i32, i32, i32
  }
}

module attributes {stable_mosaic.version = 11 : i64} {
  func.func @_conv_row_kernel(%arg0: i32, %arg1: i32, %arg2: i32, %arg3: memref<1x1x1x4x128xbf16, #tpu.memory_space<vmem>>, %arg4: memref<3x3x128x128xbf16, #tpu.memory_space<vmem>>, %arg5: memref<1x128xf32, #tpu.memory_space<vmem>>, %arg6: memref<1x128xf32, #tpu.memory_space<vmem>>, %arg7: memref<1x1x2x128xbf16, #tpu.memory_space<vmem>>, %arg8: memref<2x128xf32, #tpu.memory_space<vmem>>) attributes {dimension_semantics = [#tpu.dimension_semantics<parallel>, #tpu.dimension_semantics<parallel>, #tpu.dimension_semantics<arbitrary>], iteration_bounds = array<i64: 6, 2, 3>, scalar_prefetch = 0 : i64, scratch_operands = 1 : i64, tpu.core_type = #tpu.core_type<tc>, window_params = [{transform_indices = @transform_0, window_bounds = array<i64: 1, 1, 1, 4, 128>}, {pipeline_mode = #tpu.pipeline_mode<synchronous>, transform_indices = @transform_1, window_bounds = array<i64: 3, 3, 128, 128>}, {pipeline_mode = #tpu.pipeline_mode<synchronous>, transform_indices = @transform_2, window_bounds = array<i64: 1, 128>}, {pipeline_mode = #tpu.pipeline_mode<synchronous>, transform_indices = @transform_3, window_bounds = array<i64: 1, 128>}, {transform_indices = @transform_4, window_bounds = array<i64: 1, 1, 2, 128>}]} {
    %c0_i32 = arith.constant 0 : i32
    %0 = arith.cmpi eq, %arg2, %c0_i32 : i32
    %1 = arith.extui %0 : i1 to i32
    %c0_i32_0 = arith.constant 0 : i32
    %2 = arith.cmpi ne, %1, %c0_i32_0 : i32
    scf.if %2 {
      %cst_29 = arith.constant 0.000000e+00 : f32
      %29 = vector.broadcast %cst_29 : f32 to vector<2x128xf32>
      %c0_30 = arith.constant 0 : index
      %c0_31 = arith.constant 0 : index
      %30 = vector.load %arg8[%c0_30, %c0_31] : memref<2x128xf32, #tpu.memory_space<vmem>>, vector<2x128xf32>
      tpu.vector_store %arg8[%c0_30, %c0_31], %29 {strides = array<i32>} : memref<2x128xf32, #tpu.memory_space<vmem>>, vector<2x128xf32>,
    } else {
    }
    %c0 = arith.constant 0 : index
    %c0_1 = arith.constant 0 : index
    %c0_2 = arith.constant 0 : index
    %c0_3 = arith.constant 0 : index
    %c0_4 = arith.constant 0 : index
    %3 = vector.load %arg3[%c0, %c0_1, %c0_2, %c0_3, %c0_4] : memref<1x1x1x4x128xbf16, #tpu.memory_space<vmem>>, vector<1x1x1x2x128xbf16>
    %4 = vector.shape_cast %3 : vector<1x1x1x2x128xbf16> to vector<2x128xbf16>
    %5 = arith.index_cast %arg2 : i32 to index
    %c0_5 = arith.constant 0 : index
    %c0_6 = arith.constant 0 : index
    %c0_7 = arith.constant 0 : index
    %6 = vector.load %arg4[%5, %c0_5, %c0_6, %c0_7] : memref<3x3x128x128xbf16, #tpu.memory_space<vmem>>, vector<1x1x128x128xbf16>
    %7 = vector.shape_cast %6 : vector<1x1x128x128xbf16> to vector<128x128xbf16>
    %cst = arith.constant dense<0.000000e+00> : vector<2x128xf32>
    %8 = tpu.matmul %4, %7, %cst {dimension_numbers = #tpu.dot_dimension_numbers<[1], [0], [0], [1], [0, 0, 1, 1], [], []>} : vector<2x128xbf16>, vector<128x128xbf16>, vector<2x128xf32> -> vector<2x128xf32>
    %c0_8 = arith.constant 0 : index
    %c0_9 = arith.constant 0 : index
    %c0_10 = arith.constant 0 : index
    %c1 = arith.constant 1 : index
    %c0_11 = arith.constant 0 : index
    %9 = vector.load %arg3[%c0_8, %c0_9, %c0_10, %c1, %c0_11] : memref<1x1x1x4x128xbf16, #tpu.memory_space<vmem>>, vector<1x1x1x2x128xbf16>
    %10 = vector.shape_cast %9 : vector<1x1x1x2x128xbf16> to vector<2x128xbf16>
    %11 = arith.index_cast %arg2 : i32 to index
    %c1_12 = arith.constant 1 : index
    %c0_13 = arith.constant 0 : index
    %c0_14 = arith.constant 0 : index
    %12 = vector.load %arg4[%11, %c1_12, %c0_13, %c0_14] : memref<3x3x128x128xbf16, #tpu.memory_space<vmem>>, vector<1x1x128x128xbf16>
    %13 = vector.shape_cast %12 : vector<1x1x128x128xbf16> to vector<128x128xbf16>
    %cst_15 = arith.constant dense<0.000000e+00> : vector<2x128xf32>
    %14 = tpu.matmul %10, %13, %cst_15 {dimension_numbers = #tpu.dot_dimension_numbers<[1], [0], [0], [1], [0, 0, 1, 1], [], []>} : vector<2x128xbf16>, vector<128x128xbf16>, vector<2x128xf32> -> vector<2x128xf32>
    %15 = arith.addf %8, %14 : vector<2x128xf32>
    %c0_16 = arith.constant 0 : index
    %c0_17 = arith.constant 0 : index
    %c0_18 = arith.constant 0 : index
    %c2 = arith.constant 2 : index
    %c0_19 = arith.constant 0 : index
    %16 = vector.load %arg3[%c0_16, %c0_17, %c0_18, %c2, %c0_19] : memref<1x1x1x4x128xbf16, #tpu.memory_space<vmem>>, vector<1x1x1x2x128xbf16>
    %17 = vector.shape_cast %16 : vector<1x1x1x2x128xbf16> to vector<2x128xbf16>
    %18 = arith.index_cast %arg2 : i32 to index
    %c2_20 = arith.constant 2 : index
    %c0_21 = arith.constant 0 : index
    %c0_22 = arith.constant 0 : index
    %19 = vector.load %arg4[%18, %c2_20, %c0_21, %c0_22] : memref<3x3x128x128xbf16, #tpu.memory_space<vmem>>, vector<1x1x128x128xbf16>
    %20 = vector.shape_cast %19 : vector<1x1x128x128xbf16> to vector<128x128xbf16>
    %cst_23 = arith.constant dense<0.000000e+00> : vector<2x128xf32>
    %21 = tpu.matmul %17, %20, %cst_23 {dimension_numbers = #tpu.dot_dimension_numbers<[1], [0], [0], [1], [0, 0, 1, 1], [], []>} : vector<2x128xbf16>, vector<128x128xbf16>, vector<2x128xf32> -> vector<2x128xf32>
    %22 = arith.addf %15, %21 : vector<2x128xf32>
    %c0_24 = arith.constant 0 : index
    %c0_25 = arith.constant 0 : index
    %23 = vector.load %arg8[%c0_24, %c0_25] : memref<2x128xf32, #tpu.memory_space<vmem>>, vector<2x128xf32>
    %24 = arith.addf %23, %22 : vector<2x128xf32>
    %c0_26 = arith.constant 0 : index
    %c0_27 = arith.constant 0 : index
    %25 = vector.load %arg8[%c0_26, %c0_27] : memref<2x128xf32, #tpu.memory_space<vmem>>, vector<2x128xf32>
    tpu.vector_store %arg8[%c0_26, %c0_27], %24 {strides = array<i32>} : memref<2x128xf32, #tpu.memory_space<vmem>>, vector<2x128xf32>,
    %c2_i32 = arith.constant 2 : i32
    %26 = arith.cmpi eq, %arg2, %c2_i32 : i32
    %27 = arith.extui %26 : i1 to i32
    %c0_i32_28 = arith.constant 0 : i32
    %28 = arith.cmpi ne, %27, %c0_i32_28 : i32
    scf.if %28 {
      %c0_29 = arith.constant 0 : index
      %c0_30 = arith.constant 0 : index
      %29 = vector.load %arg8[%c0_29, %c0_30] : memref<2x128xf32, #tpu.memory_space<vmem>>, vector<2x128xf32>
      %c0_31 = arith.constant 0 : index
      %c0_32 = arith.constant 0 : index
      %30 = vector.load %arg5[%c0_31, %c0_32] : memref<1x128xf32, #tpu.memory_space<vmem>>, vector<1x128xf32>
      %31 = vector.broadcast %30 : vector<1x128xf32> to vector<2x128xf32>
      %32 = arith.mulf %29, %31 : vector<2x128xf32>
      %c0_33 = arith.constant 0 : index
      %c0_34 = arith.constant 0 : index
      %33 = vector.load %arg6[%c0_33, %c0_34] : memref<1x128xf32, #tpu.memory_space<vmem>>, vector<1x128xf32>
      %34 = vector.broadcast %33 : vector<1x128xf32> to vector<2x128xf32>
      %35 = arith.addf %32, %34 : vector<2x128xf32>
      %cst_35 = arith.constant 0.000000e+00 : f32
      %36 = vector.broadcast %cst_35 : f32 to vector<2x128xf32>
      %37 = arith.maximumf %35, %36 : vector<2x128xf32>
      %38 = arith.truncf %37 : vector<2x128xf32> to vector<2x128xbf16>
      %c0_36 = arith.constant 0 : index
      %c0_37 = arith.constant 0 : index
      %c0_38 = arith.constant 0 : index
      %c0_39 = arith.constant 0 : index
      %39 = vector.load %arg7[%c0_36, %c0_37, %c0_38, %c0_39] : memref<1x1x2x128xbf16, #tpu.memory_space<vmem>>, vector<1x1x2x128xbf16>
      %40 = vector.shape_cast %39 : vector<1x1x2x128xbf16> to vector<2x128xbf16>
      %41 = vector.shape_cast %38 : vector<2x128xbf16> to vector<1x1x2x128xbf16>
      tpu.vector_store %arg7[%c0_36, %c0_37, %c0_38, %c0_39], %41 {strides = array<i32>} : memref<1x1x2x128xbf16, #tpu.memory_space<vmem>>, vector<1x1x2x128xbf16>,
    } else {
    }
    return
  }
  func.func @transform_0(%arg0: i32, %arg1: i32, %arg2: i32) -> (i32, i32, i32, i32, i32) {
    %c1_i32 = arith.constant 1 : i32
    %0 = arith.muli %arg1, %c1_i32 : i32
    %1 = arith.addi %0, %arg2 : i32
    %c0_i32 = arith.constant 0 : i32
    %c0_i32_0 = arith.constant 0 : i32
    %c0_i32_1 = arith.constant 0 : i32
    %c0_i32_2 = arith.constant 0 : i32
    return %arg0, %1, %c0_i32, %c0_i32_0, %c0_i32_1 : i32, i32, i32, i32, i32
  }
  func.func @transform_1(%arg0: i32, %arg1: i32, %arg2: i32) -> (i32, i32, i32, i32) {
    %c0_i32 = arith.constant 0 : i32
    %c0_i32_0 = arith.constant 0 : i32
    %c0_i32_1 = arith.constant 0 : i32
    %c0_i32_2 = arith.constant 0 : i32
    %c0_i32_3 = arith.constant 0 : i32
    return %c0_i32, %c0_i32_0, %c0_i32_1, %c0_i32_2 : i32, i32, i32, i32
  }
  func.func @transform_2(%arg0: i32, %arg1: i32, %arg2: i32) -> (i32, i32) {
    %c0_i32 = arith.constant 0 : i32
    %c0_i32_0 = arith.constant 0 : i32
    %c0_i32_1 = arith.constant 0 : i32
    return %c0_i32, %c0_i32_0 : i32, i32
  }
  func.func @transform_3(%arg0: i32, %arg1: i32, %arg2: i32) -> (i32, i32) {
    %c0_i32 = arith.constant 0 : i32
    %c0_i32_0 = arith.constant 0 : i32
    %c0_i32_1 = arith.constant 0 : i32
    return %c0_i32, %c0_i32_0 : i32, i32
  }
  func.func @transform_4(%arg0: i32, %arg1: i32, %arg2: i32) -> (i32, i32, i32, i32) {
    %c0_i32 = arith.constant 0 : i32
    %c0_i32_0 = arith.constant 0 : i32
    %c0_i32_1 = arith.constant 0 : i32
    return %arg0, %arg1, %c0_i32, %c0_i32_0 : i32, i32, i32, i32
  }
}

module attributes {stable_mosaic.version = 11 : i64} {
  func.func @_conv_row_kernel(%arg0: i32, %arg1: i32, %arg2: i32, %arg3: memref<1x1x2x2x128xbf16, #tpu.memory_space<vmem>>, %arg4: memref<3x3x128x128xbf16, #tpu.memory_space<vmem>>, %arg5: memref<1x128xf32, #tpu.memory_space<vmem>>, %arg6: memref<1x128xf32, #tpu.memory_space<vmem>>, %arg7: memref<1x1x1x128xbf16, #tpu.memory_space<vmem>>, %arg8: memref<1x128xf32, #tpu.memory_space<vmem>>) attributes {dimension_semantics = [#tpu.dimension_semantics<parallel>, #tpu.dimension_semantics<parallel>, #tpu.dimension_semantics<arbitrary>], iteration_bounds = array<i64: 6, 1, 3>, scalar_prefetch = 0 : i64, scratch_operands = 1 : i64, tpu.core_type = #tpu.core_type<tc>, window_params = [{transform_indices = @transform_0, window_bounds = array<i64: 1, 1, 2, 2, 128>}, {pipeline_mode = #tpu.pipeline_mode<synchronous>, transform_indices = @transform_1, window_bounds = array<i64: 3, 3, 128, 128>}, {pipeline_mode = #tpu.pipeline_mode<synchronous>, transform_indices = @transform_2, window_bounds = array<i64: 1, 128>}, {pipeline_mode = #tpu.pipeline_mode<synchronous>, transform_indices = @transform_3, window_bounds = array<i64: 1, 128>}, {transform_indices = @transform_4, window_bounds = array<i64: 1, 1, 1, 128>}]} {
    %c0_i32 = arith.constant 0 : i32
    %0 = arith.cmpi eq, %arg2, %c0_i32 : i32
    %1 = arith.extui %0 : i1 to i32
    %c0_i32_0 = arith.constant 0 : i32
    %2 = arith.cmpi ne, %1, %c0_i32_0 : i32
    scf.if %2 {
      %cst_29 = arith.constant 0.000000e+00 : f32
      %29 = vector.broadcast %cst_29 : f32 to vector<1x128xf32>
      %c0_30 = arith.constant 0 : index
      %c0_31 = arith.constant 0 : index
      %30 = vector.load %arg8[%c0_30, %c0_31] : memref<1x128xf32, #tpu.memory_space<vmem>>, vector<1x128xf32>
      tpu.vector_store %arg8[%c0_30, %c0_31], %29 {strides = array<i32>} : memref<1x128xf32, #tpu.memory_space<vmem>>, vector<1x128xf32>,
    } else {
    }
    %c0 = arith.constant 0 : index
    %c0_1 = arith.constant 0 : index
    %c0_2 = arith.constant 0 : index
    %c0_3 = arith.constant 0 : index
    %c0_4 = arith.constant 0 : index
    %3 = vector.load %arg3[%c0, %c0_1, %c0_2, %c0_3, %c0_4] : memref<1x1x2x2x128xbf16, #tpu.memory_space<vmem>>, vector<1x1x1x1x128xbf16>
    %4 = vector.shape_cast %3 : vector<1x1x1x1x128xbf16> to vector<1x128xbf16>
    %5 = arith.index_cast %arg2 : i32 to index
    %c0_5 = arith.constant 0 : index
    %c0_6 = arith.constant 0 : index
    %c0_7 = arith.constant 0 : index
    %6 = vector.load %arg4[%5, %c0_5, %c0_6, %c0_7] : memref<3x3x128x128xbf16, #tpu.memory_space<vmem>>, vector<1x1x128x128xbf16>
    %7 = vector.shape_cast %6 : vector<1x1x128x128xbf16> to vector<128x128xbf16>
    %cst = arith.constant dense<0.000000e+00> : vector<1x128xf32>
    %8 = tpu.matmul %4, %7, %cst {dimension_numbers = #tpu.dot_dimension_numbers<[1], [0], [0], [1], [0, 0, 1, 1], [], []>} : vector<1x128xbf16>, vector<128x128xbf16>, vector<1x128xf32> -> vector<1x128xf32>
    %c0_8 = arith.constant 0 : index
    %c0_9 = arith.constant 0 : index
    %c1 = arith.constant 1 : index
    %c0_10 = arith.constant 0 : index
    %c0_11 = arith.constant 0 : index
    %9 = vector.load %arg3[%c0_8, %c0_9, %c1, %c0_10, %c0_11] : memref<1x1x2x2x128xbf16, #tpu.memory_space<vmem>>, vector<1x1x1x1x128xbf16>
    %10 = vector.shape_cast %9 : vector<1x1x1x1x128xbf16> to vector<1x128xbf16>
    %11 = arith.index_cast %arg2 : i32 to index
    %c1_12 = arith.constant 1 : index
    %c0_13 = arith.constant 0 : index
    %c0_14 = arith.constant 0 : index
    %12 = vector.load %arg4[%11, %c1_12, %c0_13, %c0_14] : memref<3x3x128x128xbf16, #tpu.memory_space<vmem>>, vector<1x1x128x128xbf16>
    %13 = vector.shape_cast %12 : vector<1x1x128x128xbf16> to vector<128x128xbf16>
    %cst_15 = arith.constant dense<0.000000e+00> : vector<1x128xf32>
    %14 = tpu.matmul %10, %13, %cst_15 {dimension_numbers = #tpu.dot_dimension_numbers<[1], [0], [0], [1], [0, 0, 1, 1], [], []>} : vector<1x128xbf16>, vector<128x128xbf16>, vector<1x128xf32> -> vector<1x128xf32>
    %15 = arith.addf %8, %14 : vector<1x128xf32>
    %c0_16 = arith.constant 0 : index
    %c0_17 = arith.constant 0 : index
    %c0_18 = arith.constant 0 : index
    %c1_19 = arith.constant 1 : index
    %c0_20 = arith.constant 0 : index
    %16 = vector.load %arg3[%c0_16, %c0_17, %c0_18, %c1_19, %c0_20] : memref<1x1x2x2x128xbf16, #tpu.memory_space<vmem>>, vector<1x1x1x1x128xbf16>
    %17 = vector.shape_cast %16 : vector<1x1x1x1x128xbf16> to vector<1x128xbf16>
    %18 = arith.index_cast %arg2 : i32 to index
    %c2 = arith.constant 2 : index
    %c0_21 = arith.constant 0 : index
    %c0_22 = arith.constant 0 : index
    %19 = vector.load %arg4[%18, %c2, %c0_21, %c0_22] : memref<3x3x128x128xbf16, #tpu.memory_space<vmem>>, vector<1x1x128x128xbf16>
    %20 = vector.shape_cast %19 : vector<1x1x128x128xbf16> to vector<128x128xbf16>
    %cst_23 = arith.constant dense<0.000000e+00> : vector<1x128xf32>
    %21 = tpu.matmul %17, %20, %cst_23 {dimension_numbers = #tpu.dot_dimension_numbers<[1], [0], [0], [1], [0, 0, 1, 1], [], []>} : vector<1x128xbf16>, vector<128x128xbf16>, vector<1x128xf32> -> vector<1x128xf32>
    %22 = arith.addf %15, %21 : vector<1x128xf32>
    %c0_24 = arith.constant 0 : index
    %c0_25 = arith.constant 0 : index
    %23 = vector.load %arg8[%c0_24, %c0_25] : memref<1x128xf32, #tpu.memory_space<vmem>>, vector<1x128xf32>
    %24 = arith.addf %23, %22 : vector<1x128xf32>
    %c0_26 = arith.constant 0 : index
    %c0_27 = arith.constant 0 : index
    %25 = vector.load %arg8[%c0_26, %c0_27] : memref<1x128xf32, #tpu.memory_space<vmem>>, vector<1x128xf32>
    tpu.vector_store %arg8[%c0_26, %c0_27], %24 {strides = array<i32>} : memref<1x128xf32, #tpu.memory_space<vmem>>, vector<1x128xf32>,
    %c2_i32 = arith.constant 2 : i32
    %26 = arith.cmpi eq, %arg2, %c2_i32 : i32
    %27 = arith.extui %26 : i1 to i32
    %c0_i32_28 = arith.constant 0 : i32
    %28 = arith.cmpi ne, %27, %c0_i32_28 : i32
    scf.if %28 {
      %c0_29 = arith.constant 0 : index
      %c0_30 = arith.constant 0 : index
      %29 = vector.load %arg8[%c0_29, %c0_30] : memref<1x128xf32, #tpu.memory_space<vmem>>, vector<1x128xf32>
      %c0_31 = arith.constant 0 : index
      %c0_32 = arith.constant 0 : index
      %30 = vector.load %arg5[%c0_31, %c0_32] : memref<1x128xf32, #tpu.memory_space<vmem>>, vector<1x128xf32>
      %31 = arith.mulf %29, %30 : vector<1x128xf32>
      %c0_33 = arith.constant 0 : index
      %c0_34 = arith.constant 0 : index
      %32 = vector.load %arg6[%c0_33, %c0_34] : memref<1x128xf32, #tpu.memory_space<vmem>>, vector<1x128xf32>
      %33 = arith.addf %31, %32 : vector<1x128xf32>
      %cst_35 = arith.constant 0.000000e+00 : f32
      %34 = vector.broadcast %cst_35 : f32 to vector<1x128xf32>
      %35 = arith.maximumf %33, %34 : vector<1x128xf32>
      %36 = arith.truncf %35 : vector<1x128xf32> to vector<1x128xbf16>
      %c0_36 = arith.constant 0 : index
      %c0_37 = arith.constant 0 : index
      %c0_38 = arith.constant 0 : index
      %c0_39 = arith.constant 0 : index
      %37 = vector.load %arg7[%c0_36, %c0_37, %c0_38, %c0_39] : memref<1x1x1x128xbf16, #tpu.memory_space<vmem>>, vector<1x1x1x128xbf16>
      %38 = vector.shape_cast %37 : vector<1x1x1x128xbf16> to vector<1x128xbf16>
      %39 = vector.shape_cast %36 : vector<1x128xbf16> to vector<1x1x1x128xbf16>
      tpu.vector_store %arg7[%c0_36, %c0_37, %c0_38, %c0_39], %39 {strides = array<i32>} : memref<1x1x1x128xbf16, #tpu.memory_space<vmem>>, vector<1x1x1x128xbf16>,
    } else {
    }
    return
  }
  func.func @transform_0(%arg0: i32, %arg1: i32, %arg2: i32) -> (i32, i32, i32, i32, i32) {
    %c2_i32 = arith.constant 2 : i32
    %0 = arith.muli %arg1, %c2_i32 : i32
    %1 = arith.addi %0, %arg2 : i32
    %c0_i32 = arith.constant 0 : i32
    %c0_i32_0 = arith.constant 0 : i32
    %c0_i32_1 = arith.constant 0 : i32
    %c0_i32_2 = arith.constant 0 : i32
    return %arg0, %1, %c0_i32, %c0_i32_0, %c0_i32_1 : i32, i32, i32, i32, i32
  }
  func.func @transform_1(%arg0: i32, %arg1: i32, %arg2: i32) -> (i32, i32, i32, i32) {
    %c0_i32 = arith.constant 0 : i32
    %c0_i32_0 = arith.constant 0 : i32
    %c0_i32_1 = arith.constant 0 : i32
    %c0_i32_2 = arith.constant 0 : i32
    %c0_i32_3 = arith.constant 0 : i32
    return %c0_i32, %c0_i32_0, %c0_i32_1, %c0_i32_2 : i32, i32, i32, i32
  }
  func.func @transform_2(%arg0: i32, %arg1: i32, %arg2: i32) -> (i32, i32) {
    %c0_i32 = arith.constant 0 : i32
    %c0_i32_0 = arith.constant 0 : i32
    %c0_i32_1 = arith.constant 0 : i32
    return %c0_i32, %c0_i32_0 : i32, i32
  }
  func.func @transform_3(%arg0: i32, %arg1: i32, %arg2: i32) -> (i32, i32) {
    %c0_i32 = arith.constant 0 : i32
    %c0_i32_0 = arith.constant 0 : i32
    %c0_i32_1 = arith.constant 0 : i32
    return %c0_i32, %c0_i32_0 : i32, i32
  }
  func.func @transform_4(%arg0: i32, %arg1: i32, %arg2: i32) -> (i32, i32, i32, i32) {
    %c0_i32 = arith.constant 0 : i32
    %c0_i32_0 = arith.constant 0 : i32
    %c0_i32_1 = arith.constant 0 : i32
    return %arg0, %arg1, %c0_i32, %c0_i32_0 : i32, i32, i32, i32
  }
}

module attributes {stable_mosaic.version = 11 : i64} {
  func.func @_mm_kernel(%arg0: i32, %arg1: memref<8x128xbf16, #tpu.memory_space<vmem>>, %arg2: memref<128x128xbf16, #tpu.memory_space<vmem>>, %arg3: memref<1x128xf32, #tpu.memory_space<vmem>>, %arg4: memref<1x128xf32, #tpu.memory_space<vmem>>, %arg5: memref<8x128xbf16, #tpu.memory_space<vmem>>) attributes {dimension_semantics = [#tpu.dimension_semantics<parallel>], iteration_bounds = array<i64: 1>, scalar_prefetch = 0 : i64, scratch_operands = 0 : i64, tpu.core_type = #tpu.core_type<tc>, window_params = [{transform_indices = @transform_0, window_bounds = array<i64: 8, 128>}, {pipeline_mode = #tpu.pipeline_mode<synchronous>, transform_indices = @transform_1, window_bounds = array<i64: 128, 128>}, {pipeline_mode = #tpu.pipeline_mode<synchronous>, transform_indices = @transform_2, window_bounds = array<i64: 1, 128>}, {pipeline_mode = #tpu.pipeline_mode<synchronous>, transform_indices = @transform_3, window_bounds = array<i64: 1, 128>}, {transform_indices = @transform_4, window_bounds = array<i64: 8, 128>}]} {
    %c0 = arith.constant 0 : index
    %c0_0 = arith.constant 0 : index
    %0 = vector.load %arg1[%c0, %c0_0] : memref<8x128xbf16, #tpu.memory_space<vmem>>, vector<8x128xbf16>
    %c0_1 = arith.constant 0 : index
    %c0_2 = arith.constant 0 : index
    %1 = vector.load %arg2[%c0_1, %c0_2] : memref<128x128xbf16, #tpu.memory_space<vmem>>, vector<128x128xbf16>
    %cst = arith.constant dense<0.000000e+00> : vector<8x128xf32>
    %2 = tpu.matmul %0, %1, %cst {dimension_numbers = #tpu.dot_dimension_numbers<[1], [0], [0], [1], [0, 0, 1, 1], [], []>} : vector<8x128xbf16>, vector<128x128xbf16>, vector<8x128xf32> -> vector<8x128xf32>
    %c0_3 = arith.constant 0 : index
    %c0_4 = arith.constant 0 : index
    %3 = vector.load %arg3[%c0_3, %c0_4] : memref<1x128xf32, #tpu.memory_space<vmem>>, vector<1x128xf32>
    %4 = vector.broadcast %3 : vector<1x128xf32> to vector<8x128xf32>
    %5 = arith.mulf %2, %4 : vector<8x128xf32>
    %c0_5 = arith.constant 0 : index
    %c0_6 = arith.constant 0 : index
    %6 = vector.load %arg4[%c0_5, %c0_6] : memref<1x128xf32, #tpu.memory_space<vmem>>, vector<1x128xf32>
    %7 = vector.broadcast %6 : vector<1x128xf32> to vector<8x128xf32>
    %8 = arith.addf %5, %7 : vector<8x128xf32>
    %9 = arith.truncf %8 : vector<8x128xf32> to vector<8x128xbf16>
    %c0_7 = arith.constant 0 : index
    %c0_8 = arith.constant 0 : index
    %10 = vector.load %arg5[%c0_7, %c0_8] : memref<8x128xbf16, #tpu.memory_space<vmem>>, vector<8x128xbf16>
    tpu.vector_store %arg5[%c0_7, %c0_8], %9 {strides = array<i32>} : memref<8x128xbf16, #tpu.memory_space<vmem>>, vector<8x128xbf16>,
    return
  }
  func.func @transform_0(%arg0: i32) -> (i32, i32) {
    %c0_i32 = arith.constant 0 : i32
    %c0_i32_0 = arith.constant 0 : i32
    return %arg0, %c0_i32 : i32, i32
  }
  func.func @transform_1(%arg0: i32) -> (i32, i32) {
    %c0_i32 = arith.constant 0 : i32
    %c0_i32_0 = arith.constant 0 : i32
    %c0_i32_1 = arith.constant 0 : i32
    return %c0_i32, %c0_i32_0 : i32, i32
  }
  func.func @transform_2(%arg0: i32) -> (i32, i32) {
    %c0_i32 = arith.constant 0 : i32
    %c0_i32_0 = arith.constant 0 : i32
    %c0_i32_1 = arith.constant 0 : i32
    return %c0_i32, %c0_i32_0 : i32, i32
  }
  func.func @transform_3(%arg0: i32) -> (i32, i32) {
    %c0_i32 = arith.constant 0 : i32
    %c0_i32_0 = arith.constant 0 : i32
    %c0_i32_1 = arith.constant 0 : i32
    return %c0_i32, %c0_i32_0 : i32, i32
  }
  func.func @transform_4(%arg0: i32) -> (i32, i32) {
    %c0_i32 = arith.constant 0 : i32
    %c0_i32_0 = arith.constant 0 : i32
    return %arg0, %c0_i32 : i32, i32
  }
}

module attributes {stable_mosaic.version = 11 : i64} {
  func.func @_conv_row_res_kernel(%arg0: i32, %arg1: i32, %arg2: i32, %arg3: memref<1x1x1x3x128xbf16, #tpu.memory_space<vmem>>, %arg4: memref<3x3x128x128xbf16, #tpu.memory_space<vmem>>, %arg5: memref<1x128xf32, #tpu.memory_space<vmem>>, %arg6: memref<1x128xf32, #tpu.memory_space<vmem>>, %arg7: memref<1x1x1x128xbf16, #tpu.memory_space<vmem>>, %arg8: memref<1x1x1x128xbf16, #tpu.memory_space<vmem>>, %arg9: memref<1x128xf32, #tpu.memory_space<vmem>>) attributes {dimension_semantics = [#tpu.dimension_semantics<parallel>, #tpu.dimension_semantics<parallel>, #tpu.dimension_semantics<arbitrary>], iteration_bounds = array<i64: 6, 1, 3>, scalar_prefetch = 0 : i64, scratch_operands = 1 : i64, tpu.core_type = #tpu.core_type<tc>, window_params = [{transform_indices = @transform_0, window_bounds = array<i64: 1, 1, 1, 3, 128>}, {pipeline_mode = #tpu.pipeline_mode<synchronous>, transform_indices = @transform_1, window_bounds = array<i64: 3, 3, 128, 128>}, {pipeline_mode = #tpu.pipeline_mode<synchronous>, transform_indices = @transform_2, window_bounds = array<i64: 1, 128>}, {pipeline_mode = #tpu.pipeline_mode<synchronous>, transform_indices = @transform_3, window_bounds = array<i64: 1, 128>}, {transform_indices = @transform_4, window_bounds = array<i64: 1, 1, 1, 128>}, {transform_indices = @transform_5, window_bounds = array<i64: 1, 1, 1, 128>}]} {
    %c0_i32 = arith.constant 0 : i32
    %0 = arith.cmpi eq, %arg2, %c0_i32 : i32
    %1 = arith.extui %0 : i1 to i32
    %c0_i32_0 = arith.constant 0 : i32
    %2 = arith.cmpi ne, %1, %c0_i32_0 : i32
    scf.if %2 {
      %cst_29 = arith.constant 0.000000e+00 : f32
      %29 = vector.broadcast %cst_29 : f32 to vector<1x128xf32>
      %c0_30 = arith.constant 0 : index
      %c0_31 = arith.constant 0 : index
      %30 = vector.load %arg9[%c0_30, %c0_31] : memref<1x128xf32, #tpu.memory_space<vmem>>, vector<1x128xf32>
      tpu.vector_store %arg9[%c0_30, %c0_31], %29 {strides = array<i32>} : memref<1x128xf32, #tpu.memory_space<vmem>>, vector<1x128xf32>,
    } else {
    }
    %c0 = arith.constant 0 : index
    %c0_1 = arith.constant 0 : index
    %c0_2 = arith.constant 0 : index
    %c0_3 = arith.constant 0 : index
    %c0_4 = arith.constant 0 : index
    %3 = vector.load %arg3[%c0, %c0_1, %c0_2, %c0_3, %c0_4] : memref<1x1x1x3x128xbf16, #tpu.memory_space<vmem>>, vector<1x1x1x1x128xbf16>
    %4 = vector.shape_cast %3 : vector<1x1x1x1x128xbf16> to vector<1x128xbf16>
    %5 = arith.index_cast %arg2 : i32 to index
    %c0_5 = arith.constant 0 : index
    %c0_6 = arith.constant 0 : index
    %c0_7 = arith.constant 0 : index
    %6 = vector.load %arg4[%5, %c0_5, %c0_6, %c0_7] : memref<3x3x128x128xbf16, #tpu.memory_space<vmem>>, vector<1x1x128x128xbf16>
    %7 = vector.shape_cast %6 : vector<1x1x128x128xbf16> to vector<128x128xbf16>
    %cst = arith.constant dense<0.000000e+00> : vector<1x128xf32>
    %8 = tpu.matmul %4, %7, %cst {dimension_numbers = #tpu.dot_dimension_numbers<[1], [0], [0], [1], [0, 0, 1, 1], [], []>} : vector<1x128xbf16>, vector<128x128xbf16>, vector<1x128xf32> -> vector<1x128xf32>
    %c0_8 = arith.constant 0 : index
    %c0_9 = arith.constant 0 : index
    %c0_10 = arith.constant 0 : index
    %c1 = arith.constant 1 : index
    %c0_11 = arith.constant 0 : index
    %9 = vector.load %arg3[%c0_8, %c0_9, %c0_10, %c1, %c0_11] : memref<1x1x1x3x128xbf16, #tpu.memory_space<vmem>>, vector<1x1x1x1x128xbf16>
    %10 = vector.shape_cast %9 : vector<1x1x1x1x128xbf16> to vector<1x128xbf16>
    %11 = arith.index_cast %arg2 : i32 to index
    %c1_12 = arith.constant 1 : index
    %c0_13 = arith.constant 0 : index
    %c0_14 = arith.constant 0 : index
    %12 = vector.load %arg4[%11, %c1_12, %c0_13, %c0_14] : memref<3x3x128x128xbf16, #tpu.memory_space<vmem>>, vector<1x1x128x128xbf16>
    %13 = vector.shape_cast %12 : vector<1x1x128x128xbf16> to vector<128x128xbf16>
    %cst_15 = arith.constant dense<0.000000e+00> : vector<1x128xf32>
    %14 = tpu.matmul %10, %13, %cst_15 {dimension_numbers = #tpu.dot_dimension_numbers<[1], [0], [0], [1], [0, 0, 1, 1], [], []>} : vector<1x128xbf16>, vector<128x128xbf16>, vector<1x128xf32> -> vector<1x128xf32>
    %15 = arith.addf %8, %14 : vector<1x128xf32>
    %c0_16 = arith.constant 0 : index
    %c0_17 = arith.constant 0 : index
    %c0_18 = arith.constant 0 : index
    %c2 = arith.constant 2 : index
    %c0_19 = arith.constant 0 : index
    %16 = vector.load %arg3[%c0_16, %c0_17, %c0_18, %c2, %c0_19] : memref<1x1x1x3x128xbf16, #tpu.memory_space<vmem>>, vector<1x1x1x1x128xbf16>
    %17 = vector.shape_cast %16 : vector<1x1x1x1x128xbf16> to vector<1x128xbf16>
    %18 = arith.index_cast %arg2 : i32 to index
    %c2_20 = arith.constant 2 : index
    %c0_21 = arith.constant 0 : index
    %c0_22 = arith.constant 0 : index
    %19 = vector.load %arg4[%18, %c2_20, %c0_21, %c0_22] : memref<3x3x128x128xbf16, #tpu.memory_space<vmem>>, vector<1x1x128x128xbf16>
    %20 = vector.shape_cast %19 : vector<1x1x128x128xbf16> to vector<128x128xbf16>
    %cst_23 = arith.constant dense<0.000000e+00> : vector<1x128xf32>
    %21 = tpu.matmul %17, %20, %cst_23 {dimension_numbers = #tpu.dot_dimension_numbers<[1], [0], [0], [1], [0, 0, 1, 1], [], []>} : vector<1x128xbf16>, vector<128x128xbf16>, vector<1x128xf32> -> vector<1x128xf32>
    %22 = arith.addf %15, %21 : vector<1x128xf32>
    %c0_24 = arith.constant 0 : index
    %c0_25 = arith.constant 0 : index
    %23 = vector.load %arg9[%c0_24, %c0_25] : memref<1x128xf32, #tpu.memory_space<vmem>>, vector<1x128xf32>
    %24 = arith.addf %23, %22 : vector<1x128xf32>
    %c0_26 = arith.constant 0 : index
    %c0_27 = arith.constant 0 : index
    %25 = vector.load %arg9[%c0_26, %c0_27] : memref<1x128xf32, #tpu.memory_space<vmem>>, vector<1x128xf32>
    tpu.vector_store %arg9[%c0_26, %c0_27], %24 {strides = array<i32>} : memref<1x128xf32, #tpu.memory_space<vmem>>, vector<1x128xf32>,
    %c2_i32 = arith.constant 2 : i32
    %26 = arith.cmpi eq, %arg2, %c2_i32 : i32
    %27 = arith.extui %26 : i1 to i32
    %c0_i32_28 = arith.constant 0 : i32
    %28 = arith.cmpi ne, %27, %c0_i32_28 : i32
    scf.if %28 {
      %c0_29 = arith.constant 0 : index
      %c0_30 = arith.constant 0 : index
      %29 = vector.load %arg9[%c0_29, %c0_30] : memref<1x128xf32, #tpu.memory_space<vmem>>, vector<1x128xf32>
      %c0_31 = arith.constant 0 : index
      %c0_32 = arith.constant 0 : index
      %30 = vector.load %arg5[%c0_31, %c0_32] : memref<1x128xf32, #tpu.memory_space<vmem>>, vector<1x128xf32>
      %31 = arith.mulf %29, %30 : vector<1x128xf32>
      %c0_33 = arith.constant 0 : index
      %c0_34 = arith.constant 0 : index
      %32 = vector.load %arg6[%c0_33, %c0_34] : memref<1x128xf32, #tpu.memory_space<vmem>>, vector<1x128xf32>
      %33 = arith.addf %31, %32 : vector<1x128xf32>
      %c0_35 = arith.constant 0 : index
      %c0_36 = arith.constant 0 : index
      %c0_37 = arith.constant 0 : index
      %c0_38 = arith.constant 0 : index
      %34 = vector.load %arg7[%c0_35, %c0_36, %c0_37, %c0_38] : memref<1x1x1x128xbf16, #tpu.memory_space<vmem>>, vector<1x1x1x128xbf16>
      %35 = vector.shape_cast %34 : vector<1x1x1x128xbf16> to vector<1x128xbf16>
      %36 = arith.extf %35 : vector<1x128xbf16> to vector<1x128xf32>
      %37 = arith.addf %33, %36 : vector<1x128xf32>
      %cst_39 = arith.constant 0.000000e+00 : f32
      %38 = vector.broadcast %cst_39 : f32 to vector<1x128xf32>
      %39 = arith.maximumf %37, %38 : vector<1x128xf32>
      %40 = arith.truncf %39 : vector<1x128xf32> to vector<1x128xbf16>
      %c0_40 = arith.constant 0 : index
      %c0_41 = arith.constant 0 : index
      %c0_42 = arith.constant 0 : index
      %c0_43 = arith.constant 0 : index
      %41 = vector.load %arg8[%c0_40, %c0_41, %c0_42, %c0_43] : memref<1x1x1x128xbf16, #tpu.memory_space<vmem>>, vector<1x1x1x128xbf16>
      %42 = vector.shape_cast %41 : vector<1x1x1x128xbf16> to vector<1x128xbf16>
      %43 = vector.shape_cast %40 : vector<1x128xbf16> to vector<1x1x1x128xbf16>
      tpu.vector_store %arg8[%c0_40, %c0_41, %c0_42, %c0_43], %43 {strides = array<i32>} : memref<1x1x1x128xbf16, #tpu.memory_space<vmem>>, vector<1x1x1x128xbf16>,
    } else {
    }
    return
  }
  func.func @transform_0(%arg0: i32, %arg1: i32, %arg2: i32) -> (i32, i32, i32, i32, i32) {
    %c1_i32 = arith.constant 1 : i32
    %0 = arith.muli %arg1, %c1_i32 : i32
    %1 = arith.addi %0, %arg2 : i32
    %c0_i32 = arith.constant 0 : i32
    %c0_i32_0 = arith.constant 0 : i32
    %c0_i32_1 = arith.constant 0 : i32
    %c0_i32_2 = arith.constant 0 : i32
    return %arg0, %1, %c0_i32, %c0_i32_0, %c0_i32_1 : i32, i32, i32, i32, i32
  }
  func.func @transform_1(%arg0: i32, %arg1: i32, %arg2: i32) -> (i32, i32, i32, i32) {
    %c0_i32 = arith.constant 0 : i32
    %c0_i32_0 = arith.constant 0 : i32
    %c0_i32_1 = arith.constant 0 : i32
    %c0_i32_2 = arith.constant 0 : i32
    %c0_i32_3 = arith.constant 0 : i32
    return %c0_i32, %c0_i32_0, %c0_i32_1, %c0_i32_2 : i32, i32, i32, i32
  }
  func.func @transform_2(%arg0: i32, %arg1: i32, %arg2: i32) -> (i32, i32) {
    %c0_i32 = arith.constant 0 : i32
    %c0_i32_0 = arith.constant 0 : i32
    %c0_i32_1 = arith.constant 0 : i32
    return %c0_i32, %c0_i32_0 : i32, i32
  }
  func.func @transform_3(%arg0: i32, %arg1: i32, %arg2: i32) -> (i32, i32) {
    %c0_i32 = arith.constant 0 : i32
    %c0_i32_0 = arith.constant 0 : i32
    %c0_i32_1 = arith.constant 0 : i32
    return %c0_i32, %c0_i32_0 : i32, i32
  }
  func.func @transform_4(%arg0: i32, %arg1: i32, %arg2: i32) -> (i32, i32, i32, i32) {
    %c0_i32 = arith.constant 0 : i32
    %c0_i32_0 = arith.constant 0 : i32
    %c0_i32_1 = arith.constant 0 : i32
    return %arg0, %arg1, %c0_i32, %c0_i32_0 : i32, i32, i32, i32
  }
  func.func @transform_5(%arg0: i32, %arg1: i32, %arg2: i32) -> (i32, i32, i32, i32) {
    %c0_i32 = arith.constant 0 : i32
    %c0_i32_0 = arith.constant 0 : i32
    %c0_i32_1 = arith.constant 0 : i32
    return %arg0, %arg1, %c0_i32, %c0_i32_0 : i32, i32, i32, i32
  }
}

module attributes {stable_mosaic.version = 11 : i64} {
  func.func @_conv_row_kernel(%arg0: i32, %arg1: i32, %arg2: i32, %arg3: memref<1x1x1x3x128xbf16, #tpu.memory_space<vmem>>, %arg4: memref<3x3x128x128xbf16, #tpu.memory_space<vmem>>, %arg5: memref<1x128xf32, #tpu.memory_space<vmem>>, %arg6: memref<1x128xf32, #tpu.memory_space<vmem>>, %arg7: memref<1x1x1x128xbf16, #tpu.memory_space<vmem>>, %arg8: memref<1x128xf32, #tpu.memory_space<vmem>>) attributes {dimension_semantics = [#tpu.dimension_semantics<parallel>, #tpu.dimension_semantics<parallel>, #tpu.dimension_semantics<arbitrary>], iteration_bounds = array<i64: 6, 1, 3>, scalar_prefetch = 0 : i64, scratch_operands = 1 : i64, tpu.core_type = #tpu.core_type<tc>, window_params = [{transform_indices = @transform_0, window_bounds = array<i64: 1, 1, 1, 3, 128>}, {pipeline_mode = #tpu.pipeline_mode<synchronous>, transform_indices = @transform_1, window_bounds = array<i64: 3, 3, 128, 128>}, {pipeline_mode = #tpu.pipeline_mode<synchronous>, transform_indices = @transform_2, window_bounds = array<i64: 1, 128>}, {pipeline_mode = #tpu.pipeline_mode<synchronous>, transform_indices = @transform_3, window_bounds = array<i64: 1, 128>}, {transform_indices = @transform_4, window_bounds = array<i64: 1, 1, 1, 128>}]} {
    %c0_i32 = arith.constant 0 : i32
    %0 = arith.cmpi eq, %arg2, %c0_i32 : i32
    %1 = arith.extui %0 : i1 to i32
    %c0_i32_0 = arith.constant 0 : i32
    %2 = arith.cmpi ne, %1, %c0_i32_0 : i32
    scf.if %2 {
      %cst_29 = arith.constant 0.000000e+00 : f32
      %29 = vector.broadcast %cst_29 : f32 to vector<1x128xf32>
      %c0_30 = arith.constant 0 : index
      %c0_31 = arith.constant 0 : index
      %30 = vector.load %arg8[%c0_30, %c0_31] : memref<1x128xf32, #tpu.memory_space<vmem>>, vector<1x128xf32>
      tpu.vector_store %arg8[%c0_30, %c0_31], %29 {strides = array<i32>} : memref<1x128xf32, #tpu.memory_space<vmem>>, vector<1x128xf32>,
    } else {
    }
    %c0 = arith.constant 0 : index
    %c0_1 = arith.constant 0 : index
    %c0_2 = arith.constant 0 : index
    %c0_3 = arith.constant 0 : index
    %c0_4 = arith.constant 0 : index
    %3 = vector.load %arg3[%c0, %c0_1, %c0_2, %c0_3, %c0_4] : memref<1x1x1x3x128xbf16, #tpu.memory_space<vmem>>, vector<1x1x1x1x128xbf16>
    %4 = vector.shape_cast %3 : vector<1x1x1x1x128xbf16> to vector<1x128xbf16>
    %5 = arith.index_cast %arg2 : i32 to index
    %c0_5 = arith.constant 0 : index
    %c0_6 = arith.constant 0 : index
    %c0_7 = arith.constant 0 : index
    %6 = vector.load %arg4[%5, %c0_5, %c0_6, %c0_7] : memref<3x3x128x128xbf16, #tpu.memory_space<vmem>>, vector<1x1x128x128xbf16>
    %7 = vector.shape_cast %6 : vector<1x1x128x128xbf16> to vector<128x128xbf16>
    %cst = arith.constant dense<0.000000e+00> : vector<1x128xf32>
    %8 = tpu.matmul %4, %7, %cst {dimension_numbers = #tpu.dot_dimension_numbers<[1], [0], [0], [1], [0, 0, 1, 1], [], []>} : vector<1x128xbf16>, vector<128x128xbf16>, vector<1x128xf32> -> vector<1x128xf32>
    %c0_8 = arith.constant 0 : index
    %c0_9 = arith.constant 0 : index
    %c0_10 = arith.constant 0 : index
    %c1 = arith.constant 1 : index
    %c0_11 = arith.constant 0 : index
    %9 = vector.load %arg3[%c0_8, %c0_9, %c0_10, %c1, %c0_11] : memref<1x1x1x3x128xbf16, #tpu.memory_space<vmem>>, vector<1x1x1x1x128xbf16>
    %10 = vector.shape_cast %9 : vector<1x1x1x1x128xbf16> to vector<1x128xbf16>
    %11 = arith.index_cast %arg2 : i32 to index
    %c1_12 = arith.constant 1 : index
    %c0_13 = arith.constant 0 : index
    %c0_14 = arith.constant 0 : index
    %12 = vector.load %arg4[%11, %c1_12, %c0_13, %c0_14] : memref<3x3x128x128xbf16, #tpu.memory_space<vmem>>, vector<1x1x128x128xbf16>
    %13 = vector.shape_cast %12 : vector<1x1x128x128xbf16> to vector<128x128xbf16>
    %cst_15 = arith.constant dense<0.000000e+00> : vector<1x128xf32>
    %14 = tpu.matmul %10, %13, %cst_15 {dimension_numbers = #tpu.dot_dimension_numbers<[1], [0], [0], [1], [0, 0, 1, 1], [], []>} : vector<1x128xbf16>, vector<128x128xbf16>, vector<1x128xf32> -> vector<1x128xf32>
    %15 = arith.addf %8, %14 : vector<1x128xf32>
    %c0_16 = arith.constant 0 : index
    %c0_17 = arith.constant 0 : index
    %c0_18 = arith.constant 0 : index
    %c2 = arith.constant 2 : index
    %c0_19 = arith.constant 0 : index
    %16 = vector.load %arg3[%c0_16, %c0_17, %c0_18, %c2, %c0_19] : memref<1x1x1x3x128xbf16, #tpu.memory_space<vmem>>, vector<1x1x1x1x128xbf16>
    %17 = vector.shape_cast %16 : vector<1x1x1x1x128xbf16> to vector<1x128xbf16>
    %18 = arith.index_cast %arg2 : i32 to index
    %c2_20 = arith.constant 2 : index
    %c0_21 = arith.constant 0 : index
    %c0_22 = arith.constant 0 : index
    %19 = vector.load %arg4[%18, %c2_20, %c0_21, %c0_22] : memref<3x3x128x128xbf16, #tpu.memory_space<vmem>>, vector<1x1x128x128xbf16>
    %20 = vector.shape_cast %19 : vector<1x1x128x128xbf16> to vector<128x128xbf16>
    %cst_23 = arith.constant dense<0.000000e+00> : vector<1x128xf32>
    %21 = tpu.matmul %17, %20, %cst_23 {dimension_numbers = #tpu.dot_dimension_numbers<[1], [0], [0], [1], [0, 0, 1, 1], [], []>} : vector<1x128xbf16>, vector<128x128xbf16>, vector<1x128xf32> -> vector<1x128xf32>
    %22 = arith.addf %15, %21 : vector<1x128xf32>
    %c0_24 = arith.constant 0 : index
    %c0_25 = arith.constant 0 : index
    %23 = vector.load %arg8[%c0_24, %c0_25] : memref<1x128xf32, #tpu.memory_space<vmem>>, vector<1x128xf32>
    %24 = arith.addf %23, %22 : vector<1x128xf32>
    %c0_26 = arith.constant 0 : index
    %c0_27 = arith.constant 0 : index
    %25 = vector.load %arg8[%c0_26, %c0_27] : memref<1x128xf32, #tpu.memory_space<vmem>>, vector<1x128xf32>
    tpu.vector_store %arg8[%c0_26, %c0_27], %24 {strides = array<i32>} : memref<1x128xf32, #tpu.memory_space<vmem>>, vector<1x128xf32>,
    %c2_i32 = arith.constant 2 : i32
    %26 = arith.cmpi eq, %arg2, %c2_i32 : i32
    %27 = arith.extui %26 : i1 to i32
    %c0_i32_28 = arith.constant 0 : i32
    %28 = arith.cmpi ne, %27, %c0_i32_28 : i32
    scf.if %28 {
      %c0_29 = arith.constant 0 : index
      %c0_30 = arith.constant 0 : index
      %29 = vector.load %arg8[%c0_29, %c0_30] : memref<1x128xf32, #tpu.memory_space<vmem>>, vector<1x128xf32>
      %c0_31 = arith.constant 0 : index
      %c0_32 = arith.constant 0 : index
      %30 = vector.load %arg5[%c0_31, %c0_32] : memref<1x128xf32, #tpu.memory_space<vmem>>, vector<1x128xf32>
      %31 = arith.mulf %29, %30 : vector<1x128xf32>
      %c0_33 = arith.constant 0 : index
      %c0_34 = arith.constant 0 : index
      %32 = vector.load %arg6[%c0_33, %c0_34] : memref<1x128xf32, #tpu.memory_space<vmem>>, vector<1x128xf32>
      %33 = arith.addf %31, %32 : vector<1x128xf32>
      %cst_35 = arith.constant 0.000000e+00 : f32
      %34 = vector.broadcast %cst_35 : f32 to vector<1x128xf32>
      %35 = arith.maximumf %33, %34 : vector<1x128xf32>
      %36 = arith.truncf %35 : vector<1x128xf32> to vector<1x128xbf16>
      %c0_36 = arith.constant 0 : index
      %c0_37 = arith.constant 0 : index
      %c0_38 = arith.constant 0 : index
      %c0_39 = arith.constant 0 : index
      %37 = vector.load %arg7[%c0_36, %c0_37, %c0_38, %c0_39] : memref<1x1x1x128xbf16, #tpu.memory_space<vmem>>, vector<1x1x1x128xbf16>
      %38 = vector.shape_cast %37 : vector<1x1x1x128xbf16> to vector<1x128xbf16>
      %39 = vector.shape_cast %36 : vector<1x128xbf16> to vector<1x1x1x128xbf16>
      tpu.vector_store %arg7[%c0_36, %c0_37, %c0_38, %c0_39], %39 {strides = array<i32>} : memref<1x1x1x128xbf16, #tpu.memory_space<vmem>>, vector<1x1x1x128xbf16>,
    } else {
    }
    return
  }
  func.func @transform_0(%arg0: i32, %arg1: i32, %arg2: i32) -> (i32, i32, i32, i32, i32) {
    %c1_i32 = arith.constant 1 : i32
    %0 = arith.muli %arg1, %c1_i32 : i32
    %1 = arith.addi %0, %arg2 : i32
    %c0_i32 = arith.constant 0 : i32
    %c0_i32_0 = arith.constant 0 : i32
    %c0_i32_1 = arith.constant 0 : i32
    %c0_i32_2 = arith.constant 0 : i32
    return %arg0, %1, %c0_i32, %c0_i32_0, %c0_i32_1 : i32, i32, i32, i32, i32
  }
  func.func @transform_1(%arg0: i32, %arg1: i32, %arg2: i32) -> (i32, i32, i32, i32) {
    %c0_i32 = arith.constant 0 : i32
    %c0_i32_0 = arith.constant 0 : i32
    %c0_i32_1 = arith.constant 0 : i32
    %c0_i32_2 = arith.constant 0 : i32
    %c0_i32_3 = arith.constant 0 : i32
    return %c0_i32, %c0_i32_0, %c0_i32_1, %c0_i32_2 : i32, i32, i32, i32
  }
  func.func @transform_2(%arg0: i32, %arg1: i32, %arg2: i32) -> (i32, i32) {
    %c0_i32 = arith.constant 0 : i32
    %c0_i32_0 = arith.constant 0 : i32
    %c0_i32_1 = arith.constant 0 : i32
    return %c0_i32, %c0_i32_0 : i32, i32
  }
  func.func @transform_3(%arg0: i32, %arg1: i32, %arg2: i32) -> (i32, i32) {
    %c0_i32 = arith.constant 0 : i32
    %c0_i32_0 = arith.constant 0 : i32
    %c0_i32_1 = arith.constant 0 : i32
    return %c0_i32, %c0_i32_0 : i32, i32
  }
  func.func @transform_4(%arg0: i32, %arg1: i32, %arg2: i32) -> (i32, i32, i32, i32) {
    %c0_i32 = arith.constant 0 : i32
    %c0_i32_0 = arith.constant 0 : i32
    %c0_i32_1 = arith.constant 0 : i32
    return %arg0, %arg1, %c0_i32, %c0_i32_0 : i32, i32, i32, i32
  }
}

module attributes {stable_mosaic.version = 11 : i64} {
  func.func @_conv_row_kernel(%arg0: i32, %arg1: i32, %arg2: i32, %arg3: memref<1x1x2x2x128xbf16, #tpu.memory_space<vmem>>, %arg4: memref<3x3x128x128xbf16, #tpu.memory_space<vmem>>, %arg5: memref<1x128xf32, #tpu.memory_space<vmem>>, %arg6: memref<1x128xf32, #tpu.memory_space<vmem>>, %arg7: memref<1x1x1x128xbf16, #tpu.memory_space<vmem>>, %arg8: memref<1x128xf32, #tpu.memory_space<vmem>>) attributes {dimension_semantics = [#tpu.dimension_semantics<parallel>, #tpu.dimension_semantics<parallel>, #tpu.dimension_semantics<arbitrary>], iteration_bounds = array<i64: 6, 1, 3>, scalar_prefetch = 0 : i64, scratch_operands = 1 : i64, tpu.core_type = #tpu.core_type<tc>, window_params = [{transform_indices = @transform_0, window_bounds = array<i64: 1, 1, 2, 2, 128>}, {pipeline_mode = #tpu.pipeline_mode<synchronous>, transform_indices = @transform_1, window_bounds = array<i64: 3, 3, 128, 128>}, {pipeline_mode = #tpu.pipeline_mode<synchronous>, transform_indices = @transform_2, window_bounds = array<i64: 1, 128>}, {pipeline_mode = #tpu.pipeline_mode<synchronous>, transform_indices = @transform_3, window_bounds = array<i64: 1, 128>}, {transform_indices = @transform_4, window_bounds = array<i64: 1, 1, 1, 128>}]} {
    %c0_i32 = arith.constant 0 : i32
    %0 = arith.cmpi eq, %arg2, %c0_i32 : i32
    %1 = arith.extui %0 : i1 to i32
    %c0_i32_0 = arith.constant 0 : i32
    %2 = arith.cmpi ne, %1, %c0_i32_0 : i32
    scf.if %2 {
      %cst_29 = arith.constant 0.000000e+00 : f32
      %29 = vector.broadcast %cst_29 : f32 to vector<1x128xf32>
      %c0_30 = arith.constant 0 : index
      %c0_31 = arith.constant 0 : index
      %30 = vector.load %arg8[%c0_30, %c0_31] : memref<1x128xf32, #tpu.memory_space<vmem>>, vector<1x128xf32>
      tpu.vector_store %arg8[%c0_30, %c0_31], %29 {strides = array<i32>} : memref<1x128xf32, #tpu.memory_space<vmem>>, vector<1x128xf32>,
    } else {
    }
    %c0 = arith.constant 0 : index
    %c0_1 = arith.constant 0 : index
    %c0_2 = arith.constant 0 : index
    %c0_3 = arith.constant 0 : index
    %c0_4 = arith.constant 0 : index
    %3 = vector.load %arg3[%c0, %c0_1, %c0_2, %c0_3, %c0_4] : memref<1x1x2x2x128xbf16, #tpu.memory_space<vmem>>, vector<1x1x1x1x128xbf16>
    %4 = vector.shape_cast %3 : vector<1x1x1x1x128xbf16> to vector<1x128xbf16>
    %5 = arith.index_cast %arg2 : i32 to index
    %c0_5 = arith.constant 0 : index
    %c0_6 = arith.constant 0 : index
    %c0_7 = arith.constant 0 : index
    %6 = vector.load %arg4[%5, %c0_5, %c0_6, %c0_7] : memref<3x3x128x128xbf16, #tpu.memory_space<vmem>>, vector<1x1x128x128xbf16>
    %7 = vector.shape_cast %6 : vector<1x1x128x128xbf16> to vector<128x128xbf16>
    %cst = arith.constant dense<0.000000e+00> : vector<1x128xf32>
    %8 = tpu.matmul %4, %7, %cst {dimension_numbers = #tpu.dot_dimension_numbers<[1], [0], [0], [1], [0, 0, 1, 1], [], []>} : vector<1x128xbf16>, vector<128x128xbf16>, vector<1x128xf32> -> vector<1x128xf32>
    %c0_8 = arith.constant 0 : index
    %c0_9 = arith.constant 0 : index
    %c1 = arith.constant 1 : index
    %c0_10 = arith.constant 0 : index
    %c0_11 = arith.constant 0 : index
    %9 = vector.load %arg3[%c0_8, %c0_9, %c1, %c0_10, %c0_11] : memref<1x1x2x2x128xbf16, #tpu.memory_space<vmem>>, vector<1x1x1x1x128xbf16>
    %10 = vector.shape_cast %9 : vector<1x1x1x1x128xbf16> to vector<1x128xbf16>
    %11 = arith.index_cast %arg2 : i32 to index
    %c1_12 = arith.constant 1 : index
    %c0_13 = arith.constant 0 : index
    %c0_14 = arith.constant 0 : index
    %12 = vector.load %arg4[%11, %c1_12, %c0_13, %c0_14] : memref<3x3x128x128xbf16, #tpu.memory_space<vmem>>, vector<1x1x128x128xbf16>
    %13 = vector.shape_cast %12 : vector<1x1x128x128xbf16> to vector<128x128xbf16>
    %cst_15 = arith.constant dense<0.000000e+00> : vector<1x128xf32>
    %14 = tpu.matmul %10, %13, %cst_15 {dimension_numbers = #tpu.dot_dimension_numbers<[1], [0], [0], [1], [0, 0, 1, 1], [], []>} : vector<1x128xbf16>, vector<128x128xbf16>, vector<1x128xf32> -> vector<1x128xf32>
    %15 = arith.addf %8, %14 : vector<1x128xf32>
    %c0_16 = arith.constant 0 : index
    %c0_17 = arith.constant 0 : index
    %c0_18 = arith.constant 0 : index
    %c1_19 = arith.constant 1 : index
    %c0_20 = arith.constant 0 : index
    %16 = vector.load %arg3[%c0_16, %c0_17, %c0_18, %c1_19, %c0_20] : memref<1x1x2x2x128xbf16, #tpu.memory_space<vmem>>, vector<1x1x1x1x128xbf16>
    %17 = vector.shape_cast %16 : vector<1x1x1x1x128xbf16> to vector<1x128xbf16>
    %18 = arith.index_cast %arg2 : i32 to index
    %c2 = arith.constant 2 : index
    %c0_21 = arith.constant 0 : index
    %c0_22 = arith.constant 0 : index
    %19 = vector.load %arg4[%18, %c2, %c0_21, %c0_22] : memref<3x3x128x128xbf16, #tpu.memory_space<vmem>>, vector<1x1x128x128xbf16>
    %20 = vector.shape_cast %19 : vector<1x1x128x128xbf16> to vector<128x128xbf16>
    %cst_23 = arith.constant dense<0.000000e+00> : vector<1x128xf32>
    %21 = tpu.matmul %17, %20, %cst_23 {dimension_numbers = #tpu.dot_dimension_numbers<[1], [0], [0], [1], [0, 0, 1, 1], [], []>} : vector<1x128xbf16>, vector<128x128xbf16>, vector<1x128xf32> -> vector<1x128xf32>
    %22 = arith.addf %15, %21 : vector<1x128xf32>
    %c0_24 = arith.constant 0 : index
    %c0_25 = arith.constant 0 : index
    %23 = vector.load %arg8[%c0_24, %c0_25] : memref<1x128xf32, #tpu.memory_space<vmem>>, vector<1x128xf32>
    %24 = arith.addf %23, %22 : vector<1x128xf32>
    %c0_26 = arith.constant 0 : index
    %c0_27 = arith.constant 0 : index
    %25 = vector.load %arg8[%c0_26, %c0_27] : memref<1x128xf32, #tpu.memory_space<vmem>>, vector<1x128xf32>
    tpu.vector_store %arg8[%c0_26, %c0_27], %24 {strides = array<i32>} : memref<1x128xf32, #tpu.memory_space<vmem>>, vector<1x128xf32>,
    %c2_i32 = arith.constant 2 : i32
    %26 = arith.cmpi eq, %arg2, %c2_i32 : i32
    %27 = arith.extui %26 : i1 to i32
    %c0_i32_28 = arith.constant 0 : i32
    %28 = arith.cmpi ne, %27, %c0_i32_28 : i32
    scf.if %28 {
      %c0_29 = arith.constant 0 : index
      %c0_30 = arith.constant 0 : index
      %29 = vector.load %arg8[%c0_29, %c0_30] : memref<1x128xf32, #tpu.memory_space<vmem>>, vector<1x128xf32>
      %c0_31 = arith.constant 0 : index
      %c0_32 = arith.constant 0 : index
      %30 = vector.load %arg5[%c0_31, %c0_32] : memref<1x128xf32, #tpu.memory_space<vmem>>, vector<1x128xf32>
      %31 = arith.mulf %29, %30 : vector<1x128xf32>
      %c0_33 = arith.constant 0 : index
      %c0_34 = arith.constant 0 : index
      %32 = vector.load %arg6[%c0_33, %c0_34] : memref<1x128xf32, #tpu.memory_space<vmem>>, vector<1x128xf32>
      %33 = arith.addf %31, %32 : vector<1x128xf32>
      %cst_35 = arith.constant 0.000000e+00 : f32
      %34 = vector.broadcast %cst_35 : f32 to vector<1x128xf32>
      %35 = arith.maximumf %33, %34 : vector<1x128xf32>
      %36 = arith.truncf %35 : vector<1x128xf32> to vector<1x128xbf16>
      %c0_36 = arith.constant 0 : index
      %c0_37 = arith.constant 0 : index
      %c0_38 = arith.constant 0 : index
      %c0_39 = arith.constant 0 : index
      %37 = vector.load %arg7[%c0_36, %c0_37, %c0_38, %c0_39] : memref<1x1x1x128xbf16, #tpu.memory_space<vmem>>, vector<1x1x1x128xbf16>
      %38 = vector.shape_cast %37 : vector<1x1x1x128xbf16> to vector<1x128xbf16>
      %39 = vector.shape_cast %36 : vector<1x128xbf16> to vector<1x1x1x128xbf16>
      tpu.vector_store %arg7[%c0_36, %c0_37, %c0_38, %c0_39], %39 {strides = array<i32>} : memref<1x1x1x128xbf16, #tpu.memory_space<vmem>>, vector<1x1x1x128xbf16>,
    } else {
    }
    return
  }
  func.func @transform_0(%arg0: i32, %arg1: i32, %arg2: i32) -> (i32, i32, i32, i32, i32) {
    %c2_i32 = arith.constant 2 : i32
    %0 = arith.muli %arg1, %c2_i32 : i32
    %1 = arith.addi %0, %arg2 : i32
    %c0_i32 = arith.constant 0 : i32
    %c0_i32_0 = arith.constant 0 : i32
    %c0_i32_1 = arith.constant 0 : i32
    %c0_i32_2 = arith.constant 0 : i32
    return %arg0, %1, %c0_i32, %c0_i32_0, %c0_i32_1 : i32, i32, i32, i32, i32
  }
  func.func @transform_1(%arg0: i32, %arg1: i32, %arg2: i32) -> (i32, i32, i32, i32) {
    %c0_i32 = arith.constant 0 : i32
    %c0_i32_0 = arith.constant 0 : i32
    %c0_i32_1 = arith.constant 0 : i32
    %c0_i32_2 = arith.constant 0 : i32
    %c0_i32_3 = arith.constant 0 : i32
    return %c0_i32, %c0_i32_0, %c0_i32_1, %c0_i32_2 : i32, i32, i32, i32
  }
  func.func @transform_2(%arg0: i32, %arg1: i32, %arg2: i32) -> (i32, i32) {
    %c0_i32 = arith.constant 0 : i32
    %c0_i32_0 = arith.constant 0 : i32
    %c0_i32_1 = arith.constant 0 : i32
    return %c0_i32, %c0_i32_0 : i32, i32
  }
  func.func @transform_3(%arg0: i32, %arg1: i32, %arg2: i32) -> (i32, i32) {
    %c0_i32 = arith.constant 0 : i32
    %c0_i32_0 = arith.constant 0 : i32
    %c0_i32_1 = arith.constant 0 : i32
    return %c0_i32, %c0_i32_0 : i32, i32
  }
  func.func @transform_4(%arg0: i32, %arg1: i32, %arg2: i32) -> (i32, i32, i32, i32) {
    %c0_i32 = arith.constant 0 : i32
    %c0_i32_0 = arith.constant 0 : i32
    %c0_i32_1 = arith.constant 0 : i32
    return %arg0, %arg1, %c0_i32, %c0_i32_0 : i32, i32, i32, i32
  }
}

module attributes {stable_mosaic.version = 11 : i64} {
  func.func @_mm_kernel(%arg0: i32, %arg1: memref<8x384xbf16, #tpu.memory_space<vmem>>, %arg2: memref<384x128xbf16, #tpu.memory_space<vmem>>, %arg3: memref<1x128xf32, #tpu.memory_space<vmem>>, %arg4: memref<1x128xf32, #tpu.memory_space<vmem>>, %arg5: memref<8x128xf32, #tpu.memory_space<vmem>>) attributes {dimension_semantics = [#tpu.dimension_semantics<parallel>], iteration_bounds = array<i64: 1>, scalar_prefetch = 0 : i64, scratch_operands = 0 : i64, tpu.core_type = #tpu.core_type<tc>, window_params = [{transform_indices = @transform_0, window_bounds = array<i64: 8, 384>}, {pipeline_mode = #tpu.pipeline_mode<synchronous>, transform_indices = @transform_1, window_bounds = array<i64: 384, 128>}, {pipeline_mode = #tpu.pipeline_mode<synchronous>, transform_indices = @transform_2, window_bounds = array<i64: 1, 128>}, {pipeline_mode = #tpu.pipeline_mode<synchronous>, transform_indices = @transform_3, window_bounds = array<i64: 1, 128>}, {transform_indices = @transform_4, window_bounds = array<i64: 8, 128>}]} {
    %c0 = arith.constant 0 : index
    %c0_0 = arith.constant 0 : index
    %0 = vector.load %arg1[%c0, %c0_0] : memref<8x384xbf16, #tpu.memory_space<vmem>>, vector<8x384xbf16>
    %c0_1 = arith.constant 0 : index
    %c0_2 = arith.constant 0 : index
    %1 = vector.load %arg2[%c0_1, %c0_2] : memref<384x128xbf16, #tpu.memory_space<vmem>>, vector<384x128xbf16>
    %cst = arith.constant dense<0.000000e+00> : vector<8x128xf32>
    %2 = tpu.matmul %0, %1, %cst {dimension_numbers = #tpu.dot_dimension_numbers<[1], [0], [0], [1], [0, 0, 1, 1], [], []>} : vector<8x384xbf16>, vector<384x128xbf16>, vector<8x128xf32> -> vector<8x128xf32>
    %c0_3 = arith.constant 0 : index
    %c0_4 = arith.constant 0 : index
    %3 = vector.load %arg3[%c0_3, %c0_4] : memref<1x128xf32, #tpu.memory_space<vmem>>, vector<1x128xf32>
    %4 = vector.broadcast %3 : vector<1x128xf32> to vector<8x128xf32>
    %5 = arith.mulf %2, %4 : vector<8x128xf32>
    %c0_5 = arith.constant 0 : index
    %c0_6 = arith.constant 0 : index
    %6 = vector.load %arg4[%c0_5, %c0_6] : memref<1x128xf32, #tpu.memory_space<vmem>>, vector<1x128xf32>
    %7 = vector.broadcast %6 : vector<1x128xf32> to vector<8x128xf32>
    %8 = arith.addf %5, %7 : vector<8x128xf32>
    %c0_7 = arith.constant 0 : index
    %c0_8 = arith.constant 0 : index
    %9 = vector.load %arg5[%c0_7, %c0_8] : memref<8x128xf32, #tpu.memory_space<vmem>>, vector<8x128xf32>
    tpu.vector_store %arg5[%c0_7, %c0_8], %8 {strides = array<i32>} : memref<8x128xf32, #tpu.memory_space<vmem>>, vector<8x128xf32>,
    return
  }
  func.func @transform_0(%arg0: i32) -> (i32, i32) {
    %c0_i32 = arith.constant 0 : i32
    %c0_i32_0 = arith.constant 0 : i32
    return %arg0, %c0_i32 : i32, i32
  }
  func.func @transform_1(%arg0: i32) -> (i32, i32) {
    %c0_i32 = arith.constant 0 : i32
    %c0_i32_0 = arith.constant 0 : i32
    %c0_i32_1 = arith.constant 0 : i32
    return %c0_i32, %c0_i32_0 : i32, i32
  }
  func.func @transform_2(%arg0: i32) -> (i32, i32) {
    %c0_i32 = arith.constant 0 : i32
    %c0_i32_0 = arith.constant 0 : i32
    %c0_i32_1 = arith.constant 0 : i32
    return %c0_i32, %c0_i32_0 : i32, i32
  }
  func.func @transform_3(%arg0: i32) -> (i32, i32) {
    %c0_i32 = arith.constant 0 : i32
    %c0_i32_0 = arith.constant 0 : i32
    %c0_i32_1 = arith.constant 0 : i32
    return %c0_i32, %c0_i32_0 : i32, i32
  }
  func.func @transform_4(%arg0: i32) -> (i32, i32) {
    %c0_i32 = arith.constant 0 : i32
    %c0_i32_0 = arith.constant 0 : i32
    return %arg0, %c0_i32 : i32, i32
  }
}

</mosaic_0001>

<bundles_post_ra>
// kernel: simpleview_forward.22
= control target key start
LH: loop header
LB: loop body
LE: loop exit
PB: predicated region body
PF: predicated region fallthrough
CT: control target
= control target key end

     0   :  { %s805_s15 = smov 0   ;;  %s807_s16 = smov 0   ;;  %s931_s0 = inlined_call_operand.vmem [shape: bf16[6,22,2,11,8], index: 0, kind: input, shape index: {}]   ;;  %s932_s1 = inlined_call_operand.vmem [shape: bf16[7,7,8,128], index: 1, kind: input, shape index: {}]   ;;  %s933_s2 = inlined_call_operand.vmem [shape: f32[1,128], index: 2, kind: input, shape index: {}]   ;;  %s934_s3 = inlined_call_operand.vmem [shape: f32[1,128], index: 3, kind: input, shape index: {}]   ;;  %s935_s4 = inlined_call_operand.vmem [shape: bf16[6,8,8,128], index: 4, kind: output, shape index: {}]  }
   0x1   :  { %s809_s17 = smov 0   ;;  %s811_s18 = smov 0  }
   0x2   :  { %s813_s19 = smov 0   ;;  %s815_s20 = smov 0  }
   0x3   :  { %s817_s21 = smov 0  }
   0x4 LB: > { %s26_s22 = sadd.s32 1, %s765_s18  ;;  %s29_s23 = sadd.s32 1, %s769_s19  ;;  %s777_s21 = sphi %s817_s21, %s14_s21   ;;  %s773_s20 = sphi %s815_s20, %s941_s20   ;;  %s769_s19 = sphi %s813_s19, %s940_s19   ;;  %s765_s18 = sphi %s811_s18, %s939_s18   ;;  %s761_s17 = sphi %s809_s17, %s938_s17   ;;  %s757_s16 = sphi %s807_s16, %s937_s16   ;;  %s753_s15 = sphi %s805_s15, %s936_s15  }
   0x5   : > { %p27_p0 = scmp.ge.s32.totalorder %s26_s22, 7  ;;  %p628_p1 = scmp.ge.s32.totalorder %s777_s21, 1 }
   0x6   : > { %p197_p2 = scmp.lt.s32.totalorder %s777_s21, 337  ;;  %s33_s24 = sadd.s32 1, %s773_s20 }
   0x7   : > { %s943_s22 = smov (%p27_p0, %s26_s22), 0  ;;  %s945_s23 = smov (!%p27_p0, %s29_s23), %s769_s19 }
   0x8   : > { %p198_p3 = pnand %p628_p1, %p197_p2  ;;  %p31_p4 = scmp.ge.s32.totalorder %s945_s23, 8 }
   0x9   : > { %s629_s25 = sshll.u32 (!%p198_p3), %s757_s16, 1  ;;  %p234_p6 = scmp.lt.s32.totalorder (!%p198_p3), %s761_s17, 5 }
   0xa   : > { %s947_s23 = smov (%p31_p4, %s945_s23), 0  ;;  %s949_s24 = smov (!%p31_p4, %s33_s24), %s773_s20 }
   0xb   : > { %p35_p5 = scmp.ge.s32.totalorder %s949_s24, 6  ;;  %201 = sbr.rel (%p198_p3) target bundleno = 210 (0xd2), region = 36 }
   0xc   : > { %s233_s26 = sadd.s32 (!%p198_p3), %s753_s15, %s629_s25  ;;  %p247_p7 = scmp.lt.s32.totalorder (!%p198_p3), %s757_s16, 7 }
   0xd   : > { %s951_s24 = smov (%p35_p5, %s949_s24), 0  ;;  %p236_p8 = scmp.lt.s32.totalorder (!%p198_p3), %s233_s26, 21 }
   0xe   : > { %p634_p9 = scmp.ne.s32.totalorder (!%p198_p3), %s753_s15, 0 }
  0x10   : > { %s953_s17 = smov (!%p234_p6, %s761_s17), 5  ;;  %s955_s26 = smov (!%p236_p8, %s233_s26), 21 }
  0x11   : > { %s663_s27 = smul.u32 88, %s953_s17  ;;  %s632_s28 = sshll.u32 %s953_s17, 3 }
  0x12   : > { %s957_s16 = smov (!%p247_p7, %s757_s16), 7  ;;  %s630_s29 = sshll.u32 %s955_s26, 2 }
  0x13   : > { %s240_s30 = sadd.s32 %s663_s27, %s630_s29  ;;  %s250_s5 = sadd.s32 %s632_s28, %s957_s16 }
  0x14   : > { %s631_s6 = sshll.u32 %s240_s30, 2  ;;  %s633_s7 = sshll.u32 %s250_s5, 2 }
  0x15   : > { %s858_s10 = scalar_lea.vmem %s931_s0, %s631_s6  ;;  %s863_s13 = scalar_lea.vmem %s935_s4, %s633_s7 }
  0x16   : > { %257 = sbr.rel (%p634_p9) target bundleno = 29 (0x1d), region = 40 }
  0x1b   : > { %v779_v0 = vmov 0.0  }
  0x1c   : > { %258 = vst [vmem:[#allocation2] sm:$0xff] %v779_v0 }
  0x1d PF: > { %s662_s14 = smul.u32 28, %s753_s15  ;;  %vm274_vm0 = vcmask 1043456   ;;  %v310_v1 = vld [vmem:[%s858_s10] sm:$0xf]  ;;  %v311_v2 = vld [vmem:[%s858_s10 + $0x4] sm:$0x1] }
  0x1e   : > { %v318_v3 = vunpack.c.l.b16 %v310_v1  ;;  %v319_v4 = vunpack.c.l.b16 %v311_v2  ;;  %v644_v5 = vld [vmem:[%s858_s10 + $0x8] sm:$0xf]  ;;  %v645_v6 = vld [vmem:[%s858_s10 + $0xc] sm:$0x1]  ;;  %v259_v11 = vld [vmem:[%s858_s10] sm:$0xf] }
  0x1f   : > { %s872_s25 = scalar_lea.vmem %s932_s1, %s662_s14  ;;  %v636_v9 = vld [vmem:[%s858_s10 + $0x8] sm:$0xf]  ;;  %v356_v12 = vunpack.c.l.b16 %v644_v5  ;;  %v357_v13 = vunpack.c.l.b16 %v645_v6  ;;  %v386_v14 = vld [vmem:[%s858_s10] sm:$0xe]  ;;  %vm270_vm1 = vcmask 64512   ;;  %p659_p10 = scmp.ne.s32.totalorder %s753_s15, 6 }
  0x20   : > { %v638_v7 = vld [vmem:[%s872_s25 + $0x4] sm:$0xf]  ;;  %v263_v8 = vld [vmem:[%s872_s25] sm:$0xf]  ;;  %v642_v10 = vld [vmem:[%s872_s25 + $0x8] sm:$0xf]  ;;  %v320_v19 = vpack.c.b16 %v319_v4, %v318_v3  ;;  %v392_v33 = vunpack.c.l.b16 %v386_v14 }
  0x21   : > { %v276_v15 = vsel %vm274_vm0, %v638_v7, 0  ;;  %v295_v16 = vsel %vm274_vm0, %v263_v8, 0  ;;  %v332_v17 = vsel %vm274_vm0, %v642_v10, 0  ;;  %v647_v18 = vld [vmem:[%s872_s25 + $0xc] sm:$0xf]  ;;  %v358_v22 = vpack.c.b16 %v357_v13, %v356_v12 }
  0x22   : > { %285 = vmatpush.bf16.msra.mxu0 %v276_v15  ;;  %304 = vmatpush.bf16.msra.mxu1 %v295_v16  ;;  %v370_v20 = vsel %vm274_vm0, %v647_v18, 0  ;;  %v657_v21 = vld [vmem:[%s872_s25 + $0x18] sm:$0xf]  ;;  %v650_v23 = vld [vmem:[%s872_s25 + $0x10] sm:$0xf]  ;;  %v322_v24 = vshrl.u32 %v320_v19, 16  ;;  %v393_v42 = vpack.c.b16 %v319_v4, %v392_v33 }
  0x23   : > { %341 = vmatpush.bf16.msra.mxu2 %v332_v17  ;;  %379 = vmatpush.bf16.msra.mxu3 %v370_v20  ;;  %v324_v25 = vshll.u32 %v320_v19, 16  ;;  %v464_v26 = vsel %vm274_vm0, %v657_v21, 0  ;;  %v399_v27 = vsel %vm274_vm0, %v650_v23, 0  ;;  %v654_v28 = vld [vmem:[%s872_s25 + $0x14] sm:$0xf]  ;;  %v360_v29 = vshrl.u32 %v358_v22, 16 }
  0x24   : > { %v362_v30 = vshll.u32 %v358_v22, 16  ;;  %v428_v31 = vsel %vm274_vm0, %v654_v28, 0  ;;  %v444_v34 = vld [vmem:[%s858_s10 + $0x4] sm:$0x3]  ;;  %v652_v36 = vld [vmem:[%s858_s10 + $0x8] sm:$0xe] }
  0x25   : > { %639 = vmatmul.msk.bf16.vlgmr.msra.gmra.mxu0 %vm270_vm1, %v636_v9  ;;  %640 = vmatmul.msk.bf16.vlgmr.msra.gmra.mxu1 %vm270_vm1, %v259_v11  ;;  %v326_v32 = vrot.slane %v324_v25, 1  ;;  %v450_v37 = vunpack.c.l.b16 %v444_v34  ;;  %v421_v40 = vunpack.c.l.b16 %v652_v36  ;;  %v394_v46 = vrot.slane %v393_v42, 1  ;;  %v480_v5 = vld [vmem:[#allocation2] sm:$0xff] }
  0x26   : > { %408 = vmatpush.bf16.msrb.mxu0 %v399_v27  ;;  %v364_v35 = vrot.slane %v362_v30, 1  ;;  %437 = vmatpush.bf16.msrb.mxu1 %v428_v31 }
  0x27   : > { %473 = vmatpush.bf16.msrb.mxu2 %v464_v26  ;;  %v327_v38 = vor.u32 %v326_v32, %v322_v24  ;;  %v451_v41 = vpack.c.b16 %v450_v37, %v392_v33  ;;  %v422_v43 = vpack.c.b16 %v357_v13, %v421_v40 }
  0x28   : > { %v365_v39 = vor.u32 %v364_v35, %v360_v29 }
  0x29   : > { %643 = vmatmul.msk.bf16.vlgmr.msra.gmra.mxu2 %vm270_vm1, %v327_v38  ;;  %v453_v44 = vshrl.u32 %v451_v41, 16  ;;  %v456_v45 = vshll.u32 %v451_v41, 16  ;;  %v423_v47 = vrot.slane %v422_v43, 1 }
  0x2a   : > { %648 = vmatmul.msk.bf16.vlgmr.msra.gmra.mxu3 %vm270_vm1, %v365_v39 }
  0x2b   : > { %v455_v48 = vrot.slane %v453_v44, 1  ;;  %v458_v49 = vrot.slane %v456_v45, 2 }
  0x2d   : > { %v459_v50 = vor.u32 %v458_v49, %v455_v48 }
  0x35   : > { %651 = vmatmul.msk.bf16.vlgmr.msrb.gmra.mxu0 %vm270_vm1, %v394_v46  ;;  %655 = vmatmul.msk.bf16.vlgmr.msrb.gmra.mxu1 %vm270_vm1, %v423_v47 }
  0x39   : > { %658 = vmatmul.msk.bf16.vlgmr.msrb.gmra.mxu2 %vm270_vm1, %v459_v50 }
  0xa2   : > { %v287_v51 = vpop.f32.mrf.mxu0  ;;  %v306_v52 = vpop.f32.mrf.mxu1 }
  0xa3   : > { %v307_v56 = vadd.f32 %v306_v52, %v287_v51 }
  0xaa   : > { %v289_v53 = vpop.f32.mrf.mxu0  ;;  %v308_v54 = vpop.f32.mrf.mxu1 }
  0xac   : > { %v343_v55 = vpop.f32.mrf.mxu2 }
  0xad   : > { %v381_v57 = vpop.f32.mrf.mxu3  ;;  %v347_v58 = vadd.f32 %v343_v55, %v307_v56 }
  0xaf   : > { %v385_v62 = vadd.f32 %v381_v57, %v347_v58 }
  0xb2   : > { %v410_v59 = vpop.f32.mrf.mxu0  ;;  %v439_v60 = vpop.f32.mrf.mxu1 }
  0xb3   : > { %v414_v0 = vadd.f32 %v410_v59, %v385_v62 }
  0xb4   : > { %v345_v61 = vpop.f32.mrf.mxu2 }
  0xb5   : > { %v383_v63 = vpop.f32.mrf.mxu3  ;;  %v443_v3 = vadd.f32 %v439_v60, %v414_v0 }
  0xba   : > { %v412_v1 = vpop.f32.mrf.mxu0  ;;  %v441_v2 = vpop.f32.mrf.mxu1 }
  0xbc   : > { %v475_v4 = vpop.f32.mrf.mxu2 }
  0xbd   : > { %v479_v6 = vadd.f32 %v475_v4, %v443_v3 }
  0xbf   : > { %v481_v7 = vadd.f32 %v480_v5, %v479_v6 }
  0xc0   : > { %486 = sbr.rel (%p659_p10) target bundleno = 210 (0xd2), region = 44 }
  0xc1   : > { %482 = vst [vmem:[#allocation2] sm:$0xff] %v481_v7 }
  0xc4   : > { %v477_v8 = vpop.f32.mrf.mxu2 }
  0xc5   : > { %v721_v10 = vld [vmem:[%s933_s2] ss:$0 sm:$0xff] }
  0xc6   : > { %v722_v11 = vld [vmem:[%s934_s3] ss:$0 sm:$0xff] }
  0xc8   : > { %v487_v9 = vld [vmem:[#allocation2] sm:$0xff] }
  0xc9   : > { %v492_v12 = vmul.f32 %v721_v10, %v487_v9 }
  0xcb   : > { %v497_v13 = vadd.f32 %v722_v11, %v492_v12 }
  0xcd   : > { %v498_v14 = vmax.f32 %v497_v13, 0.0 }
  0xcf   : > { %v499_v15 = vpack.c.bf16 %v498_v14, %v498_v14 }
  0xd1   : > { %500 = vst [vmem:[%s863_s13] sm:$0xf] %v499_v15 }
  0xd2 PF: > { %s14_s21 = sadd.s32 1, %s777_s21   ;;  %s936_s15 = smov %s765_s18 }
  0xd3   : > { %p11_p11 = scmp.ge.s32.totalorder %s14_s21, 338   ;;  %s937_s16 = smov %s769_s19 }
  0xd4   : > { %s938_s17 = smov %s773_s20  ;;  %s939_s18 = smov %s943_s22 }
  0xd5   : > { %s940_s19 = smov %s947_s23  ;;  %s941_s20 = smov %s951_s24 }
  0xd6   :  { %13 = sbr.rel (!%p11_p11) target bundleno = 4 (0x4), region = 82 }

// kernel: simpleview_forward.23
= control target key start
LH: loop header
LB: loop body
LE: loop exit
PB: predicated region body
PF: predicated region fallthrough
CT: control target
= control target key end

     0   :  { %s436_s6 = smov 0   ;;  %s438_s7 = smov 0   ;;  %s515_s0 = inlined_call_operand.vmem [shape: bf16[6,10,2,5,128], index: 0, kind: input, shape index: {}]   ;;  %s516_s1 = inlined_call_operand.vmem [shape: bf16[6,4,4,128], index: 1, kind: output, shape index: {}]  }
   0x1   :  { %s440_s8 = smov 0   ;;  %s442_s9 = smov 0  }
   0x2   :  { %s444_s10 = smov 0   ;;  %s446_s11 = smov 0  }
   0x3   :  { %s448_s12 = smov 0  }
   0x4 LB: > { %s23_s13 = sadd.s32 1, %s411_s9  ;;  %s26_s14 = sadd.s32 1, %s415_s10  ;;  %s423_s12 = sphi %s448_s12, %s11_s12   ;;  %s419_s11 = sphi %s446_s11, %s522_s11   ;;  %s415_s10 = sphi %s444_s10, %s521_s10   ;;  %s411_s9 = sphi %s442_s9, %s520_s9   ;;  %s407_s8 = sphi %s440_s8, %s519_s8   ;;  %s403_s7 = sphi %s438_s7, %s518_s7   ;;  %s399_s6 = sphi %s436_s6, %s517_s6  }
   0x5   : > { %p24_p0 = scmp.ge.s32.totalorder %s23_s13, 3  ;;  %p300_p1 = scmp.ge.s32.totalorder %s423_s12, 1 }
   0x6   : > { %p122_p2 = scmp.lt.s32.totalorder %s423_s12, 73  ;;  %s30_s15 = sadd.s32 1, %s419_s11 }
   0x7   : > { %s524_s13 = smov (%p24_p0, %s23_s13), 0  ;;  %s526_s14 = smov (!%p24_p0, %s26_s14), %s415_s10 }
   0x8   : > { %p123_p3 = pnand %p300_p1, %p122_p2  ;;  %p28_p4 = scmp.ge.s32.totalorder %s526_s14, 4 }
   0x9   : > { %s301_s16 = sshll.u32 (!%p123_p3), %s403_s7, 1  ;;  %p153_p6 = scmp.lt.s32.totalorder (!%p123_p3), %s407_s8, 5 }
   0xa   : > { %s528_s14 = smov (%p28_p4, %s526_s14), 0  ;;  %s530_s15 = smov (!%p28_p4, %s30_s15), %s419_s11 }
   0xb   : > { %p32_p5 = scmp.ge.s32.totalorder %s530_s15, 6  ;;  %126 = sbr.rel (%p123_p3) target bundleno = 53 (0x35), region = 24 }
   0xc   : > { %s152_s17 = sadd.s32 (!%p123_p3), %s399_s6, %s301_s16  ;;  %p166_p7 = scmp.lt.s32.totalorder (!%p123_p3), %s403_s7, 3 }
   0xd   : > { %s532_s15 = smov (%p32_p5, %s530_s15), 0  ;;  %p155_p8 = scmp.lt.s32.totalorder (!%p123_p3), %s152_s17, 9 }
   0xe   : > { %p306_p9 = scmp.ne.s32.totalorder (!%p123_p3), %s399_s6, 0 }
  0x10   : > { %s534_s8 = smov (!%p153_p6, %s407_s8), 5  ;;  %s536_s17 = smov (!%p155_p8, %s152_s17), 9 }
  0x11   : > { %s311_s18 = smul.u32 20, %s534_s8  ;;  %s304_s19 = sshll.u32 %s534_s8, 2 }
  0x12   : > { %s538_s7 = smov (!%p166_p7, %s403_s7), 3  ;;  %s302_s20 = sshll.u32 %s536_s17, 1 }
  0x13   : > { %s159_s21 = sadd.s32 %s311_s18, %s302_s20  ;;  %s169_s22 = sadd.s32 %s304_s19, %s538_s7 }
  0x14   : > { %s303_s23 = sshll.u32 %s159_s21, 2  ;;  %s305_s24 = sshll.u32 %s169_s22, 1 }
  0x15   : > { %s161_s27 = scalar_lea.vmem %s515_s0, %s303_s23  ;;  %s171_s30 = scalar_lea.vmem %s516_s1, %s305_s24 }
  0x16   : > { %175 = sbr.rel (%p306_p9) target bundleno = 29 (0x1d), region = 28 }
  0x1b   : > { %v425_v0 = vmov 0.0  }
  0x1c   : > { %176 = vst [vmem:[#allocation2] sm:$0xf] %v425_v0 }
  0x1d PF: > { %v178_v2 = vld [vmem:[%s161_s27] sm:$0x3]  ;;  %v307_v3 = vld [vmem:[%s161_s27 + $0x4] sm:$0x3]  ;;  %p308_p10 = scmp.ne.s32.totalorder %s399_s6, 2 }
  0x1e   : > { %v179_v4 = vunpack.c.l.bf16 %v178_v2  ;;  %v183_v5 = vunpack.c.l.bf16 %v307_v3  ;;  %v185_v6 = vld [vmem:[%s161_s27] sm:$0x7] }
  0x1f   : > { %v186_v7 = vunpack.c.l.bf16 %v185_v6 }
  0x21   : > { %v188_v9 = vrot.slane %v186_v7, 1 }
  0x23   : > { %v177_v1 = vld [vmem:[#allocation2] sm:$0xf] }
  0x24   : > { %v180_v8 = vmax.f32 %v177_v1, %v179_v4 }
  0x26   : > { %v184_v10 = vmax.f32 %v180_v8, %v183_v5  ;;  %195 = sbr.rel (%p308_p10) target bundleno = 53 (0x35), region = 32 }
  0x28   : > { %v190_v11 = vmax.f32 %v184_v10, %v188_v9 }
  0x2a   : > { %191 = vst [vmem:[#allocation2] sm:$0xf] %v190_v11 }
  0x31   : > { %v196_v12 = vld [vmem:[#allocation2] sm:$0xf] }
  0x32   : > { %v197_v13 = vpack.c.bf16 %v196_v12, %v196_v12 }
  0x34   : > { %198 = vst [vmem:[%s171_s30] sm:$0x3] %v197_v13 }
  0x35 PF: > { %s11_s12 = sadd.s32 1, %s423_s12   ;;  %s517_s6 = smov %s411_s9 }
  0x36   : > { %p8_p11 = scmp.ge.s32.totalorder %s11_s12, 74   ;;  %s518_s7 = smov %s415_s10 }
  0x37   : > { %s519_s8 = smov %s419_s11  ;;  %s520_s9 = smov %s524_s13 }
  0x38   : > { %s521_s10 = smov %s528_s14  ;;  %s522_s11 = smov %s532_s15 }
  0x39   :  { %10 = sbr.rel (!%p8_p11) target bundleno = 4 (0x4), region = 63 }

// kernel: simpleview_forward.24
= control target key start
LH: loop header
LB: loop body
LE: loop exit
PB: predicated region body
PF: predicated region fallthrough
CT: control target
= control target key end

     0   :  { %s941_s15 = smov 0   ;;  %s943_s16 = smov 0   ;;  %s1059_s0 = inlined_call_operand.vmem [shape: bf16[6,6,1,6,128], index: 0, kind: input, shape index: {}]   ;;  %s1060_s1 = inlined_call_operand.vmem [shape: bf16[3,3,128,128], index: 1, kind: input, shape index: {}]   ;;  %s1061_s2 = inlined_call_operand.vmem [shape: f32[1,128], index: 2, kind: input, shape index: {}]   ;;  %s1062_s3 = inlined_call_operand.vmem [shape: f32[1,128], index: 3, kind: input, shape index: {}]   ;;  %s1063_s4 = inlined_call_operand.vmem [shape: bf16[6,4,4,128], index: 4, kind: output, shape index: {}]  }
   0x1   :  { %s945_s17 = smov 0   ;;  %s947_s18 = smov 0  }
   0x2   :  { %s949_s19 = smov 0   ;;  %s951_s20 = smov 0  }
   0x3   :  { %s953_s21 = smov 0  }
   0x4 LB: > { %s26_s22 = sadd.s32 1, %s901_s18  ;;  %s29_s23 = sadd.s32 1, %s905_s19  ;;  %s913_s21 = sphi %s953_s21, %s14_s21   ;;  %s909_s20 = sphi %s951_s20, %s1069_s20   ;;  %s905_s19 = sphi %s949_s19, %s1068_s19   ;;  %s901_s18 = sphi %s947_s18, %s1067_s18   ;;  %s897_s17 = sphi %s945_s17, %s1066_s17   ;;  %s893_s16 = sphi %s943_s16, %s1065_s16   ;;  %s889_s15 = sphi %s941_s15, %s1064_s15  }
   0x5   : > { %p27_p0 = scmp.ge.s32.totalorder %s26_s22, 3  ;;  %p635_p1 = scmp.ge.s32.totalorder %s913_s21, 1 }
   0x6   : > { %p192_p2 = scmp.lt.s32.totalorder %s913_s21, 73  ;;  %s33_s24 = sadd.s32 1, %s909_s20 }
   0x7   : > { %s1071_s22 = smov (%p27_p0, %s26_s22), 0  ;;  %s1073_s23 = smov (!%p27_p0, %s29_s23), %s905_s19 }
   0x8   : > { %p193_p3 = pnand %p635_p1, %p192_p2  ;;  %p31_p4 = scmp.ge.s32.totalorder %s1073_s23, 4 }
   0x9   : > { %s225_s25 = sadd.s32 (!%p193_p3), %s889_s15, %s893_s16  ;;  %p226_p6 = scmp.lt.s32.totalorder (!%p193_p3), %s897_s17, 5 }
   0xa   : > { %s1075_s23 = smov (%p31_p4, %s1073_s23), 0  ;;  %s1077_s24 = smov (!%p31_p4, %s33_s24), %s909_s20 }
   0xb   : > { %p35_p5 = scmp.ge.s32.totalorder %s1077_s24, 6  ;;  %196 = sbr.rel (%p193_p3) target bundleno = 215 (0xd7), region = 36 }
   0xc   : > { %p228_p7 = scmp.lt.s32.totalorder (!%p193_p3), %s225_s25, 5  ;;  %p237_p8 = scmp.lt.s32.totalorder (!%p193_p3), %s893_s16, 3 }
   0xd   : > { %s1079_s24 = smov (%p35_p5, %s1077_s24), 0  ;;  %p639_p9 = scmp.ne.s32.totalorder (!%p193_p3), %s889_s15, 0 }
  0x10   : > { %s1081_s17 = smov (!%p226_p6, %s897_s17), 5  ;;  %s1083_s25 = smov (!%p228_p7, %s225_s25), 5 }
  0x11   : > { %s799_s26 = smul.u32 6, %s1081_s17  ;;  %s637_s27 = sshll.u32 %s1081_s17, 2 }
  0x12   : > { %s1085_s16 = smov (!%p237_p8, %s893_s16), 3  ;;  %246 = sbr.rel (%p639_p9) target bundleno = 25 (0x19), region = 40 }
  0x13   : > { %s231_s28 = sadd.s32 %s799_s26, %s1083_s25  ;;  %s240_s30 = sadd.s32 %s637_s27, %s1085_s16 }
  0x14   : > { %s636_s29 = sshll.u32 %s231_s28, 2  ;;  %s638_s8 = sshll.u32 %s240_s30, 1 }
  0x15   : > { %s989_s7 = scalar_lea.vmem %s1059_s0, %s636_s29  ;;  %s994_s11 = scalar_lea.vmem %s1063_s4, %s638_s8 }
  0x17   : > { %v915_v0 = vmov 0.0  }
  0x18   : > { %247 = vst [vmem:[#allocation2] sm:$0xf] %v915_v0 }
  0x19 PF: > { %s774_s12 = smul.u32 192, %s889_s15  ;;  %v268_v12 = vld [vmem:[%s989_s7] sm:$0x7]  ;;  %p771_p10 = scmp.ne.s32.totalorder %s889_s15, 2 }
  0x1a   : > { %v289_v14 = vunpack.c.l.b16 %v268_v12  ;;  %v421_v22 = vld [vmem:[%s989_s7] sm:$0x6] }
  0x1b   : > { %s1001_s16 = scalar_lea.vmem %s1060_s1, %s774_s12  ;;  %v442_v26 = vunpack.c.l.b16 %v421_v22  ;;  %v248_v35 = vld [vmem:[%s989_s7] sm:$0x3] }
  0x1c   : > { %v790_v1 = vld [vmem:[%s1001_s16 + $0x78] sm:$0xff]  ;;  %v789_v4 = vld [vmem:[%s1001_s16 + $0x70] sm:$0xff]  ;;  %v788_v7 = vld [vmem:[%s1001_s16 + $0x68] sm:$0xff]  ;;  %v290_v18 = vpack.c.b16 %v289_v14, %v289_v14 }
  0x1d   : > { %v782_v2 = vld [vmem:[%s1001_s16 + $0x38] sm:$0xff]  ;;  %347 = vmatpush.bf16.msra.mxu0 %v790_v1  ;;  %v781_v5 = vld [vmem:[%s1001_s16 + $0x30] sm:$0xff]  ;;  %v780_v8 = vld [vmem:[%s1001_s16 + $0x28] sm:$0xff]  ;;  %v443_v32 = vpack.c.b16 %v442_v26, %v442_v26 }
  0x1e   : > { %v798_v3 = vld [vmem:[%s1001_s16 + $0xb8] sm:$0xff]  ;;  %408 = vmatpush.bf16.msra.mxu1 %v782_v2  ;;  %v797_v6 = vld [vmem:[%s1001_s16 + $0xb0] sm:$0xff]  ;;  %v796_v9 = vld [vmem:[%s1001_s16 + $0xa8] sm:$0xff]  ;;  %v294_v23 = vshll.u32 %v290_v18, 16  ;;  %v292_v28 = vshrl.u32 %v290_v18, 16 }
  0x1f   : > { %494 = vmatpush.bf16.msra.mxu2 %v798_v3  ;;  %v787_v10 = vld [vmem:[%s1001_s16 + $0x60] sm:$0xff]  ;;  %v786_v15 = vld [vmem:[%s1001_s16 + $0x58] sm:$0xff]  ;;  %v785_v19 = vld [vmem:[%s1001_s16 + $0x50] sm:$0xff]  ;;  %v444_v36 = vrot.slane %v443_v32, 1 }
  0x20   : > { %v779_v11 = vld [vmem:[%s1001_s16 + $0x20] sm:$0xff]  ;;  %v778_v16 = vld [vmem:[%s1001_s16 + $0x18] sm:$0xff]  ;;  %v777_v20 = vld [vmem:[%s1001_s16 + $0x10] sm:$0xff]  ;;  %v296_v29 = vrot.slane %v294_v23, 1 }
  0x21   : > { %348 = vmatpush.bf16.msra.mxu0 %v789_v4  ;;  %v795_v13 = vld [vmem:[%s1001_s16 + $0xa0] sm:$0xff]  ;;  %v794_v17 = vld [vmem:[%s1001_s16 + $0x98] sm:$0xff]  ;;  %v793_v21 = vld [vmem:[%s1001_s16 + $0x90] sm:$0xff] }
  0x22   : > { %409 = vmatpush.bf16.msra.mxu1 %v781_v5  ;;  %v784_v24 = vld [vmem:[%s1001_s16 + $0x48] sm:$0xff]  ;;  %v783_v30 = vld [vmem:[%s1001_s16 + $0x40] sm:$0xff]  ;;  %v297_v34 = vor.u32 %v296_v29, %v292_v28 }
  0x23   : > { %495 = vmatpush.bf16.msra.mxu2 %v797_v6  ;;  %v776_v25 = vld [vmem:[%s1001_s16 + $0x8] sm:$0xff]  ;;  %v775_v31 = vld [vmem:[%s1001_s16] sm:$0xff] }
  0x24   : > { %v792_v27 = vld [vmem:[%s1001_s16 + $0x88] sm:$0xff]  ;;  %v791_v33 = vld [vmem:[%s1001_s16 + $0x80] sm:$0xff] }
  0x25   : > { %349 = vmatpush.bf16.msra.mxu0 %v788_v7  ;;  %v508_v41 = vld [vmem:[#allocation2] sm:$0xf] }
  0x26   : > { %410 = vmatpush.bf16.msra.mxu1 %v780_v8 }
  0x27   : > { %496 = vmatpush.bf16.msra.mxu2 %v796_v9 }
  0x29   : > { %350 = vmatpush.bf16.msra.mxu0 %v787_v10 }
  0x2a   : > { %411 = vmatpush.bf16.msra.mxu1 %v779_v11 }
  0x2b   : > { %497 = vmatpush.bf16.msra.mxu2 %v795_v13 }
  0x2d   : > { %351 = vmatpush.bf16.msra.mxu0 %v786_v15 }
  0x2e   : > { %412 = vmatpush.bf16.msra.mxu1 %v778_v16 }
  0x2f   : > { %498 = vmatpush.bf16.msra.mxu2 %v794_v17 }
  0x31   : > { %352 = vmatpush.bf16.msra.mxu0 %v785_v19 }
  0x32   : > { %413 = vmatpush.bf16.msra.mxu1 %v777_v20 }
  0x33   : > { %499 = vmatpush.bf16.msra.mxu2 %v793_v21 }
  0x35   : > { %353 = vmatpush.bf16.msra.mxu0 %v784_v24 }
  0x36   : > { %414 = vmatpush.bf16.msra.mxu1 %v776_v25 }
  0x37   : > { %500 = vmatpush.bf16.msra.mxu2 %v792_v27 }
  0x39   : > { %354 = vmatpush.bf16.msra.mxu0 %v783_v30 }
  0x3a   : > { %415 = vmatpush.bf16.msra.mxu1 %v775_v31 }
  0x3b   : > { %501 = vmatpush.bf16.msra.mxu2 %v791_v33 }
  0x3c   : > { %355 = vmatmul.bf16.vlgmr.msra.gmra.mxu0 %v297_v34 }
  0x3d   : > { %416 = vmatmul.bf16.vlgmr.msra.gmra.mxu1 %v248_v35 }
  0x3e   : > { %502 = vmatmul.bf16.vlgmr.msra.gmra.mxu2 %v444_v36 }
  0xb9   : > { %v356_v37 = vpop.f32.mrf.mxu0 }
  0xba   : > { %v417_v38 = vpop.f32.mrf.mxu1 }
  0xbb   : > { %v418_v39 = vadd.f32 %v417_v38, %v356_v37 }
  0xc1   : > { %v503_v40 = vpop.f32.mrf.mxu2  ;;  %v358_v43 = vpop.f32.mrf.mxu0 }
  0xc2   : > { %v507_v42 = vadd.f32 %v503_v40, %v418_v39  ;;  %v419_v44 = vpop.f32.mrf.mxu1 }
  0xc4   : > { %v509_v45 = vadd.f32 %v508_v41, %v507_v42 }
  0xc5   : > { %514 = sbr.rel (%p771_p10) target bundleno = 215 (0xd7), region = 44 }
  0xc6   : > { %510 = vst [vmem:[#allocation2] sm:$0xf] %v509_v45 }
  0xc9   : > { %v505_v46 = vpop.f32.mrf.mxu2 }
  0xca   : > { %v857_v48 = vld [vmem:[%s1061_s2] ss:$0 sm:$0xff] }
  0xcb   : > { %v858_v49 = vld [vmem:[%s1062_s3] ss:$0 sm:$0xff] }
  0xcd   : > { %v515_v47 = vld [vmem:[#allocation2] sm:$0xf] }
  0xce   : > { %v520_v50 = vmul.f32 %v857_v48, %v515_v47 }
  0xd0   : > { %v525_v51 = vadd.f32 %v858_v49, %v520_v50 }
  0xd2   : > { %v526_v52 = vmax.f32 %v525_v51, 0.0 }
  0xd4   : > { %v527_v53 = vpack.c.bf16 %v526_v52, %v526_v52 }
  0xd6   : > { %528 = vst [vmem:[%s994_s11] sm:$0x3] %v527_v53 }
  0xd7 PF: > { %s14_s21 = sadd.s32 1, %s913_s21   ;;  %s1064_s15 = smov %s901_s18 }
  0xd8   : > { %p11_p11 = scmp.ge.s32.totalorder %s14_s21, 74   ;;  %s1065_s16 = smov %s905_s19 }
  0xd9   : > { %s1066_s17 = smov %s909_s20  ;;  %s1067_s18 = smov %s1071_s22 }
  0xda   : > { %s1068_s19 = smov %s1075_s23  ;;  %s1069_s20 = smov %s1079_s24 }
  0xdb   :  { %13 = sbr.rel (!%p11_p11) target bundleno = 4 (0x4), region = 77 }

// kernel: simpleview_forward.25
= control target key start
LH: loop header
LB: loop body
LE: loop exit
PB: predicated region body
PF: predicated region fallthrough
CT: control target
= control target key end

     0   :  { %s1027_s18 = smov 0   ;;  %s1029_s19 = smov 0   ;;  %s1151_s0 = inlined_call_operand.vmem [shape: bf16[6,6,1,6,128], index: 0, kind: input, shape index: {}]   ;;  %s1152_s1 = inlined_call_operand.vmem [shape: bf16[3,3,128,128], index: 1, kind: input, shape index: {}]   ;;  %s1153_s2 = inlined_call_operand.vmem [shape: f32[1,128], index: 2, kind: input, shape index: {}]   ;;  %s1154_s3 = inlined_call_operand.vmem [shape: f32[1,128], index: 3, kind: input, shape index: {}]   ;;  %s1155_s4 = inlined_call_operand.vmem [shape: bf16[6,4,4,128], index: 4, kind: input, shape index: {}]   ;;  %s1156_s5 = inlined_call_operand.vmem [shape: bf16[6,4,4,128], index: 5, kind: output, shape index: {}]  }
   0x1   :  { %s1031_s20 = smov 0   ;;  %s1033_s21 = smov 0  }
   0x2   :  { %s1035_s22 = smov 0   ;;  %s1037_s23 = smov 0  }
   0x3   :  { %s1039_s24 = smov 0  }
   0x4 LB: > { %s27_s25 = sadd.s32 1, %s982_s21  ;;  %s30_s26 = sadd.s32 1, %s986_s22  ;;  %s994_s24 = sphi %s1039_s24, %s15_s24   ;;  %s990_s23 = sphi %s1037_s23, %s1164_s23   ;;  %s986_s22 = sphi %s1035_s22, %s1163_s22   ;;  %s982_s21 = sphi %s1033_s21, %s1162_s21   ;;  %s978_s20 = sphi %s1031_s20, %s1161_s20   ;;  %s974_s19 = sphi %s1029_s19, %s1160_s19   ;;  %s970_s18 = sphi %s1027_s18, %s1159_s18  }
   0x5   : > { %p28_p0 = scmp.ge.s32.totalorder %s27_s25, 3  ;;  %p714_p1 = scmp.ge.s32.totalorder %s994_s24, 1 }
   0x6   : > { %p232_p2 = scmp.lt.s32.totalorder %s994_s24, 73  ;;  %s34_s27 = sadd.s32 1, %s990_s23 }
   0x7   : > { %s1166_s25 = smov (%p28_p0, %s27_s25), 0  ;;  %s1168_s26 = smov (!%p28_p0, %s30_s26), %s986_s22 }
   0x8   : > { %p233_p3 = pnand %p714_p1, %p232_p2  ;;  %p32_p4 = scmp.ge.s32.totalorder %s1168_s26, 4 }
   0x9   : > { %s275_s28 = sadd.s32 (!%p233_p3), %s970_s18, %s974_s19  ;;  %p276_p6 = scmp.lt.s32.totalorder (!%p233_p3), %s978_s20, 5 }
   0xa   : > { %s1170_s26 = smov (%p32_p4, %s1168_s26), 0  ;;  %s1172_s27 = smov (!%p32_p4, %s34_s27), %s990_s23 }
   0xb   : > { %p36_p5 = scmp.ge.s32.totalorder %s1172_s27, 6  ;;  %236 = sbr.rel (%p233_p3) target bundleno = 217 (0xd9), region = 40 }
   0xc   : > { %p278_p7 = scmp.lt.s32.totalorder (!%p233_p3), %s275_s28, 5  ;;  %p287_p8 = scmp.lt.s32.totalorder (!%p233_p3), %s974_s19, 3 }
   0xd   : > { %s1174_s27 = smov (%p36_p5, %s1172_s27), 0  ;;  %p720_p9 = scmp.ne.s32.totalorder (!%p233_p3), %s970_s18, 0 }
   0xe   : > { %1157 = sst [smem:[#allocation3_spill]] %s1174_s27 }
  0x10   : > { %s1176_s20 = smov (!%p276_p6, %s978_s20), 5  ;;  %s1178_s28 = smov (!%p278_p7, %s275_s28), 5 }
  0x11   : > { %s880_s29 = smul.u32 6, %s1176_s20  ;;  %s716_s30 = sshll.u32 %s1176_s20, 2 }
  0x12   : > { %s1180_s19 = smov (!%p287_p8, %s974_s19), 3  ;;  %304 = sbr.rel (%p720_p9) target bundleno = 25 (0x19), region = 44 }
  0x13   : > { %s281_s6 = sadd.s32 %s880_s29, %s1178_s28  ;;  %s290_s8 = sadd.s32 %s716_s30, %s1180_s19 }
  0x14   : > { %s715_s7 = sshll.u32 %s281_s6, 2  ;;  %s717_s12 = sshll.u32 %s290_s8, 1 }
  0x15   : > { %s1075_s11 = scalar_lea.vmem %s1151_s0, %s715_s7  ;;  %s1080_s15 = scalar_lea.vmem %s1155_s4, %s717_s12 }
  0x16   : > { %s1085_s27 = scalar_lea.vmem %s1156_s5, %s717_s12 }
  0x17   : > { %v996_v0 = vmov 0.0  }
  0x18   : > { %305 = vst [vmem:[#allocation2] sm:$0xf] %v996_v0 }
  0x19 PF: > { %s855_s19 = smul.u32 192, %s970_s18  ;;  %v326_v12 = vld [vmem:[%s1075_s11] sm:$0x7]  ;;  %p852_p10 = scmp.ne.s32.totalorder %s970_s18, 2 }
  0x1a   : > { %v347_v14 = vunpack.c.l.b16 %v326_v12  ;;  %v479_v22 = vld [vmem:[%s1075_s11] sm:$0x6] }
  0x1b   : > { %s1092_s29 = scalar_lea.vmem %s1152_s1, %s855_s19  ;;  %v500_v26 = vunpack.c.l.b16 %v479_v22  ;;  %v306_v35 = vld [vmem:[%s1075_s11] sm:$0x3] }
  0x1c   : > { %v871_v1 = vld [vmem:[%s1092_s29 + $0x78] sm:$0xff]  ;;  %v870_v4 = vld [vmem:[%s1092_s29 + $0x70] sm:$0xff]  ;;  %v869_v7 = vld [vmem:[%s1092_s29 + $0x68] sm:$0xff]  ;;  %v348_v18 = vpack.c.b16 %v347_v14, %v347_v14 }
  0x1d   : > { %v863_v2 = vld [vmem:[%s1092_s29 + $0x38] sm:$0xff]  ;;  %405 = vmatpush.bf16.msra.mxu0 %v871_v1  ;;  %v862_v5 = vld [vmem:[%s1092_s29 + $0x30] sm:$0xff]  ;;  %v861_v8 = vld [vmem:[%s1092_s29 + $0x28] sm:$0xff]  ;;  %v501_v32 = vpack.c.b16 %v500_v26, %v500_v26 }
  0x1e   : > { %v879_v3 = vld [vmem:[%s1092_s29 + $0xb8] sm:$0xff]  ;;  %466 = vmatpush.bf16.msra.mxu1 %v863_v2  ;;  %v878_v6 = vld [vmem:[%s1092_s29 + $0xb0] sm:$0xff]  ;;  %v877_v9 = vld [vmem:[%s1092_s29 + $0xa8] sm:$0xff]  ;;  %v352_v23 = vshll.u32 %v348_v18, 16  ;;  %v350_v28 = vshrl.u32 %v348_v18, 16 }
  0x1f   : > { %552 = vmatpush.bf16.msra.mxu2 %v879_v3  ;;  %v868_v10 = vld [vmem:[%s1092_s29 + $0x60] sm:$0xff]  ;;  %v867_v15 = vld [vmem:[%s1092_s29 + $0x58] sm:$0xff]  ;;  %v866_v19 = vld [vmem:[%s1092_s29 + $0x50] sm:$0xff]  ;;  %v502_v36 = vrot.slane %v501_v32, 1 }
  0x20   : > { %v860_v11 = vld [vmem:[%s1092_s29 + $0x20] sm:$0xff]  ;;  %v859_v16 = vld [vmem:[%s1092_s29 + $0x18] sm:$0xff]  ;;  %v858_v20 = vld [vmem:[%s1092_s29 + $0x10] sm:$0xff]  ;;  %v354_v29 = vrot.slane %v352_v23, 1 }
  0x21   : > { %406 = vmatpush.bf16.msra.mxu0 %v870_v4  ;;  %v876_v13 = vld [vmem:[%s1092_s29 + $0xa0] sm:$0xff]  ;;  %v875_v17 = vld [vmem:[%s1092_s29 + $0x98] sm:$0xff]  ;;  %v874_v21 = vld [vmem:[%s1092_s29 + $0x90] sm:$0xff] }
  0x22   : > { %467 = vmatpush.bf16.msra.mxu1 %v862_v5  ;;  %v865_v24 = vld [vmem:[%s1092_s29 + $0x48] sm:$0xff]  ;;  %v864_v30 = vld [vmem:[%s1092_s29 + $0x40] sm:$0xff]  ;;  %v355_v34 = vor.u32 %v354_v29, %v350_v28 }
  0x23   : > { %553 = vmatpush.bf16.msra.mxu2 %v878_v6  ;;  %v857_v25 = vld [vmem:[%s1092_s29 + $0x8] sm:$0xff]  ;;  %v856_v31 = vld [vmem:[%s1092_s29] sm:$0xff] }
  0x24   : > { %v873_v27 = vld [vmem:[%s1092_s29 + $0x88] sm:$0xff]  ;;  %v872_v33 = vld [vmem:[%s1092_s29 + $0x80] sm:$0xff] }
  0x25   : > { %407 = vmatpush.bf16.msra.mxu0 %v869_v7  ;;  %v566_v41 = vld [vmem:[#allocation2] sm:$0xf] }
  0x26   : > { %468 = vmatpush.bf16.msra.mxu1 %v861_v8 }
  0x27   : > { %554 = vmatpush.bf16.msra.mxu2 %v877_v9 }
  0x29   : > { %408 = vmatpush.bf16.msra.mxu0 %v868_v10 }
  0x2a   : > { %469 = vmatpush.bf16.msra.mxu1 %v860_v11 }
  0x2b   : > { %555 = vmatpush.bf16.msra.mxu2 %v876_v13 }
  0x2d   : > { %409 = vmatpush.bf16.msra.mxu0 %v867_v15 }
  0x2e   : > { %470 = vmatpush.bf16.msra.mxu1 %v859_v16 }
  0x2f   : > { %556 = vmatpush.bf16.msra.mxu2 %v875_v17 }
  0x31   : > { %410 = vmatpush.bf16.msra.mxu0 %v866_v19 }
  0x32   : > { %471 = vmatpush.bf16.msra.mxu1 %v858_v20 }
  0x33   : > { %557 = vmatpush.bf16.msra.mxu2 %v874_v21 }
  0x35   : > { %411 = vmatpush.bf16.msra.mxu0 %v865_v24 }
  0x36   : > { %472 = vmatpush.bf16.msra.mxu1 %v857_v25 }
  0x37   : > { %558 = vmatpush.bf16.msra.mxu2 %v873_v27 }
  0x39   : > { %412 = vmatpush.bf16.msra.mxu0 %v864_v30 }
  0x3a   : > { %473 = vmatpush.bf16.msra.mxu1 %v856_v31 }
  0x3b   : > { %559 = vmatpush.bf16.msra.mxu2 %v872_v33 }
  0x3c   : > { %413 = vmatmul.bf16.vlgmr.msra.gmra.mxu0 %v355_v34 }
  0x3d   : > { %474 = vmatmul.bf16.vlgmr.msra.gmra.mxu1 %v306_v35 }
  0x3e   : > { %560 = vmatmul.bf16.vlgmr.msra.gmra.mxu2 %v502_v36 }
  0xb9   : > { %v414_v37 = vpop.f32.mrf.mxu0 }
  0xba   : > { %v475_v38 = vpop.f32.mrf.mxu1 }
  0xbb   : > { %v476_v39 = vadd.f32 %v475_v38, %v414_v37 }
  0xc1   : > { %v561_v40 = vpop.f32.mrf.mxu2  ;;  %v416_v43 = vpop.f32.mrf.mxu0 }
  0xc2   : > { %v565_v42 = vadd.f32 %v561_v40, %v476_v39  ;;  %v477_v44 = vpop.f32.mrf.mxu1 }
  0xc4   : > { %v567_v45 = vadd.f32 %v566_v41, %v565_v42 }
  0xc5   : > { %572 = sbr.rel (%p852_p10) target bundleno = 217 (0xd9), region = 48 }
  0xc6   : > { %568 = vst [vmem:[#allocation2] sm:$0xf] %v567_v45 }
  0xc9   : > { %v563_v46 = vpop.f32.mrf.mxu2 }
  0xca   : > { %v938_v48 = vld [vmem:[%s1153_s2] ss:$0 sm:$0xff] }
  0xcb   : > { %v939_v49 = vld [vmem:[%s1154_s3] ss:$0 sm:$0xff] }
  0xcc   : > { %v584_v50 = vld [vmem:[%s1080_s15] sm:$0x3] }
  0xcd   : > { %v573_v47 = vld [vmem:[#allocation2] sm:$0xf]  ;;  %v585_v52 = vunpack.c.l.bf16 %v584_v50 }
  0xce   : > { %v578_v51 = vmul.f32 %v938_v48, %v573_v47 }
  0xd0   : > { %v583_v53 = vadd.f32 %v939_v49, %v578_v51 }
  0xd2   : > { %v586_v54 = vadd.f32 %v585_v52, %v583_v53 }
  0xd4   : > { %v587_v55 = vmax.f32 %v586_v54, 0.0 }
  0xd6   : > { %v588_v56 = vpack.c.bf16 %v587_v55, %v587_v55 }
  0xd8   : > { %589 = vst [vmem:[%s1085_s27] sm:$0x3] %v588_v56 }
  0xd9 PF: > { %s15_s24 = sadd.s32 1, %s994_s24   ;;  %s1158_s9 = sld [smem:[#allocation3_spill]] }
  0xda   : > { %p12_p11 = scmp.ge.s32.totalorder %s15_s24, 74   ;;  %s1159_s18 = smov %s982_s21 }
  0xdb   : > { %s1160_s19 = smov %s986_s22  ;;  %s1161_s20 = smov %s990_s23 }
  0xdc   : > { %s1162_s21 = smov %s1166_s25  ;;  %s1163_s22 = smov %s1170_s26 }
  0xdd   :  { %14 = sbr.rel (!%p12_p11) target bundleno = 4 (0x4), region = 84 }
  0xdf   : > { %s1164_s23 = smov %s1158_s9 }

// kernel: simpleview_forward.29
= control target key start
LH: loop header
LB: loop body
LE: loop exit
PB: predicated region body
PF: predicated region fallthrough
CT: control target
= control target key end

     0   :  { %s945_s15 = smov 0   ;;  %s947_s16 = smov 0   ;;  %s1073_s0 = inlined_call_operand.vmem [shape: bf16[6,6,2,3,128], index: 0, kind: input, shape index: {}]   ;;  %s1074_s1 = inlined_call_operand.vmem [shape: bf16[3,3,128,128], index: 1, kind: input, shape index: {}]   ;;  %s1075_s2 = inlined_call_operand.vmem [shape: f32[1,128], index: 2, kind: input, shape index: {}]   ;;  %s1076_s3 = inlined_call_operand.vmem [shape: f32[1,128], index: 3, kind: input, shape index: {}]   ;;  %s1077_s4 = inlined_call_operand.vmem [shape: bf16[6,2,2,128], index: 4, kind: output, shape index: {}]  }
   0x1   :  { %s949_s17 = smov 0   ;;  %s951_s18 = smov 0  }
   0x2   :  { %s953_s19 = smov 0   ;;  %s955_s20 = smov 0  }
   0x3   :  { %s957_s21 = smov 0  }
   0x4 LB: > { %s26_s22 = sadd.s32 1, %s905_s18  ;;  %s29_s23 = sadd.s32 1, %s909_s19  ;;  %s917_s21 = sphi %s957_s21, %s14_s21   ;;  %s913_s20 = sphi %s955_s20, %s1083_s20   ;;  %s909_s19 = sphi %s953_s19, %s1082_s19   ;;  %s905_s18 = sphi %s951_s18, %s1081_s18   ;;  %s901_s17 = sphi %s949_s17, %s1080_s17   ;;  %s897_s16 = sphi %s947_s16, %s1079_s16   ;;  %s893_s15 = sphi %s945_s15, %s1078_s15  }
   0x5   : > { %p27_p0 = scmp.ge.s32.totalorder %s26_s22, 3  ;;  %p637_p1 = scmp.ge.s32.totalorder %s917_s21, 1 }
   0x6   : > { %p197_p2 = scmp.lt.s32.totalorder %s917_s21, 37  ;;  %s33_s24 = sadd.s32 1, %s913_s20 }
   0x7   : > { %s1085_s22 = smov (%p27_p0, %s26_s22), 0  ;;  %s1087_s23 = smov (!%p27_p0, %s29_s23), %s909_s19 }
   0x8   : > { %p198_p3 = pnand %p637_p1, %p197_p2  ;;  %p31_p4 = scmp.ge.s32.totalorder %s1087_s23, 2 }
   0x9   : > { %s638_s25 = sshll.u32 (!%p198_p3), %s897_s16, 1  ;;  %p233_p6 = scmp.lt.s32.totalorder (!%p198_p3), %s901_s17, 5 }
   0xa   : > { %s1089_s23 = smov (%p31_p4, %s1087_s23), 0  ;;  %s1091_s24 = smov (!%p31_p4, %s33_s24), %s913_s20 }
   0xb   : > { %p35_p5 = scmp.ge.s32.totalorder %s1091_s24, 6  ;;  %201 = sbr.rel (%p198_p3) target bundleno = 218 (0xda), region = 36 }
   0xc   : > { %s232_s26 = sadd.s32 (!%p198_p3), %s893_s15, %s638_s25  ;;  %p246_p7 = scmp.lt.s32.totalorder (!%p198_p3), %s897_s16, 1 }
   0xd   : > { %s1093_s24 = smov (%p35_p5, %s1091_s24), 0  ;;  %p235_p8 = scmp.lt.s32.totalorder (!%p198_p3), %s232_s26, 5 }
   0xe   : > { %p642_p9 = scmp.ne.s32.totalorder (!%p198_p3), %s893_s15, 0 }
  0x10   : > { %s1095_s17 = smov (!%p233_p6, %s901_s17), 5  ;;  %s1097_s26 = smov (!%p235_p8, %s232_s26), 5 }
  0x11   : > { %s803_s27 = smul.u32 12, %s1095_s17  ;;  %s641_s28 = sshll.u32 %s1095_s17, 1 }
  0x12   : > { %s1099_s16 = smov (!%p246_p7, %s897_s16), 1  ;;  %s639_s29 = sshll.u32 %s1097_s26, 1 }
  0x13   : > { %s239_s30 = sadd.s32 %s803_s27, %s639_s29  ;;  %s995_s5 = sadd.s32 %s641_s28, %s1099_s16 }
  0x14   : > { %s640_s6 = sshll.u32 %s239_s30, 1  ;;  %s250_s9 = scalar_lea.vmem %s1077_s4, %s995_s5 }
  0x15   : > { %s1004_s12 = scalar_lea.vmem %s1073_s0, %s640_s6  ;;  %254 = sbr.rel (%p642_p9) target bundleno = 28 (0x1c), region = 40 }
  0x1a   : > { %v919_v0 = vmov 0.0  }
  0x1b   : > { %255 = vst [vmem:[#allocation2] sm:$0x3] %v919_v0 }
  0x1c PF: > { %s778_s13 = smul.u32 192, %s893_s15  ;;  %v419_v1 = vld [vmem:[%s1004_s12] sm:$0x3]  ;;  %v644_v30 = vld [vmem:[%s1004_s12 + $0x2] sm:$0x1]  ;;  %p775_p10 = scmp.ne.s32.totalorder %s893_s15, 2 }
  0x1d   : > { %440 = vst [vmem:[#allocation1] ss:$4 sm:$0xff] %v419_v1  ;;  %v256_v31 = vld [vmem:[%s1004_s12] sm:$0x1] }
  0x1e   : > { %s1012_s17 = scalar_lea.vmem %s1074_s1, %s778_s13 }
  0x1f   : > { %v794_v2 = vld [vmem:[%s1012_s17 + $0x78] sm:$0xff]  ;;  %v793_v5 = vld [vmem:[%s1012_s17 + $0x70] sm:$0xff]  ;;  %v792_v8 = vld [vmem:[%s1012_s17 + $0x68] sm:$0xff] }
  0x20   : > { %v786_v3 = vld [vmem:[%s1012_s17 + $0x38] sm:$0xff]  ;;  %345 = vmatpush.bf16.msra.mxu0 %v794_v2  ;;  %v785_v6 = vld [vmem:[%s1012_s17 + $0x30] sm:$0xff]  ;;  %v784_v9 = vld [vmem:[%s1012_s17 + $0x28] sm:$0xff] }
  0x21   : > { %v802_v4 = vld [vmem:[%s1012_s17 + $0xb8] sm:$0xff]  ;;  %406 = vmatpush.bf16.msra.mxu1 %v786_v3  ;;  %v801_v7 = vld [vmem:[%s1012_s17 + $0xb0] sm:$0xff]  ;;  %v800_v10 = vld [vmem:[%s1012_s17 + $0xa8] sm:$0xff] }
  0x22   : > { %497 = vmatpush.bf16.msra.mxu2 %v802_v4  ;;  %v791_v11 = vld [vmem:[%s1012_s17 + $0x60] sm:$0xff]  ;;  %v790_v14 = vld [vmem:[%s1012_s17 + $0x58] sm:$0xff]  ;;  %v789_v17 = vld [vmem:[%s1012_s17 + $0x50] sm:$0xff] }
  0x23   : > { %v783_v12 = vld [vmem:[%s1012_s17 + $0x20] sm:$0xff]  ;;  %v782_v15 = vld [vmem:[%s1012_s17 + $0x18] sm:$0xff]  ;;  %v781_v18 = vld [vmem:[%s1012_s17 + $0x10] sm:$0xff] }
  0x24   : > { %346 = vmatpush.bf16.msra.mxu0 %v793_v5  ;;  %v799_v13 = vld [vmem:[%s1012_s17 + $0xa0] sm:$0xff]  ;;  %v798_v16 = vld [vmem:[%s1012_s17 + $0x98] sm:$0xff]  ;;  %v797_v19 = vld [vmem:[%s1012_s17 + $0x90] sm:$0xff] }
  0x25   : > { %407 = vmatpush.bf16.msra.mxu1 %v785_v6  ;;  %v441_v20 = vld.sshfl [vmem:[#allocation1] sm:$0xff pattern:$0x73625140]  ;;  %v788_v21 = vld [vmem:[%s1012_s17 + $0x48] sm:$0xff] }
  0x26   : > { %498 = vmatpush.bf16.msra.mxu2 %v801_v7  ;;  %v780_v22 = vld [vmem:[%s1012_s17 + $0x8] sm:$0xff]  ;;  %v444_v23 = vshll.u32 %v441_v20, 16  ;;  %v787_v25 = vld [vmem:[%s1012_s17 + $0x40] sm:$0xff]  ;;  %v442_v27 = vshrl.u32 %v441_v20, 16 }
  0x27   : > { %v796_v24 = vld [vmem:[%s1012_s17 + $0x88] sm:$0xff]  ;;  %v779_v26 = vld [vmem:[%s1012_s17] sm:$0xff] }
  0x28   : > { %347 = vmatpush.bf16.msra.mxu0 %v792_v8  ;;  %v446_v28 = vrot.slane %v444_v23, 1  ;;  %v795_v29 = vld [vmem:[%s1012_s17 + $0x80] sm:$0xff]  ;;  %v511_v37 = vld [vmem:[#allocation2] sm:$0x3] }
  0x29   : > { %408 = vmatpush.bf16.msra.mxu1 %v784_v9 }
  0x2a   : > { %499 = vmatpush.bf16.msra.mxu2 %v800_v10  ;;  %v447_v32 = vor.u32 %v446_v28, %v442_v27 }
  0x2c   : > { %348 = vmatpush.bf16.msra.mxu0 %v791_v11 }
  0x2d   : > { %409 = vmatpush.bf16.msra.mxu1 %v783_v12 }
  0x2e   : > { %500 = vmatpush.bf16.msra.mxu2 %v799_v13 }
  0x30   : > { %349 = vmatpush.bf16.msra.mxu0 %v790_v14 }
  0x31   : > { %410 = vmatpush.bf16.msra.mxu1 %v782_v15 }
  0x32   : > { %501 = vmatpush.bf16.msra.mxu2 %v798_v16 }
  0x34   : > { %350 = vmatpush.bf16.msra.mxu0 %v789_v17 }
  0x35   : > { %411 = vmatpush.bf16.msra.mxu1 %v781_v18 }
  0x36   : > { %502 = vmatpush.bf16.msra.mxu2 %v797_v19 }
  0x38   : > { %351 = vmatpush.bf16.msra.mxu0 %v788_v21 }
  0x39   : > { %412 = vmatpush.bf16.msra.mxu1 %v780_v22 }
  0x3a   : > { %503 = vmatpush.bf16.msra.mxu2 %v796_v24 }
  0x3c   : > { %352 = vmatpush.bf16.msra.mxu0 %v787_v25 }
  0x3d   : > { %413 = vmatpush.bf16.msra.mxu1 %v779_v26 }
  0x3e   : > { %504 = vmatpush.bf16.msra.mxu2 %v795_v29 }
  0x3f   : > { %353 = vmatmul.bf16.vlgmr.msra.gmra.mxu0 %v644_v30 }
  0x40   : > { %414 = vmatmul.bf16.vlgmr.msra.gmra.mxu1 %v256_v31 }
  0x41   : > { %505 = vmatmul.bf16.vlgmr.msra.gmra.mxu2 %v447_v32 }
  0xbc   : > { %v354_v33 = vpop.f32.mrf.mxu0 }
  0xbd   : > { %v415_v34 = vpop.f32.mrf.mxu1 }
  0xbe   : > { %v416_v35 = vadd.f32 %v415_v34, %v354_v33 }
  0xc4   : > { %v506_v36 = vpop.f32.mrf.mxu2  ;;  %v356_v39 = vpop.f32.mrf.mxu0 }
  0xc5   : > { %v510_v38 = vadd.f32 %v506_v36, %v416_v35  ;;  %v417_v40 = vpop.f32.mrf.mxu1 }
  0xc7   : > { %v512_v41 = vadd.f32 %v511_v37, %v510_v38 }
  0xc8   : > { %517 = sbr.rel (%p775_p10) target bundleno = 218 (0xda), region = 44 }
  0xc9   : > { %513 = vst [vmem:[#allocation2] sm:$0x3] %v512_v41 }
  0xcc   : > { %v508_v42 = vpop.f32.mrf.mxu2 }
  0xcd   : > { %v861_v44 = vld [vmem:[%s1075_s2] ss:$0 sm:$0xff] }
  0xce   : > { %v862_v45 = vld [vmem:[%s1076_s3] ss:$0 sm:$0xff] }
  0xd0   : > { %v518_v43 = vld [vmem:[#allocation2] sm:$0x3] }
  0xd1   : > { %v523_v46 = vmul.f32 %v861_v44, %v518_v43 }
  0xd3   : > { %v528_v47 = vadd.f32 %v862_v45, %v523_v46 }
  0xd5   : > { %v529_v48 = vmax.f32 %v528_v47, 0.0 }
  0xd7   : > { %v530_v49 = vpack.c.bf16 %v529_v48, %v529_v48 }
  0xd9   : > { %531 = vst [vmem:[%s250_s9] sm:$0x1] %v530_v49 }
  0xda PF: > { %s14_s21 = sadd.s32 1, %s917_s21   ;;  %s1078_s15 = smov %s905_s18 }
  0xdb   : > { %p11_p11 = scmp.ge.s32.totalorder %s14_s21, 38   ;;  %s1079_s16 = smov %s909_s19 }
  0xdc   : > { %s1080_s17 = smov %s913_s20  ;;  %s1081_s18 = smov %s1085_s22 }
  0xdd   : > { %s1082_s19 = smov %s1089_s23  ;;  %s1083_s20 = smov %s1093_s24 }
  0xde   :  { %13 = sbr.rel (!%p11_p11) target bundleno = 4 (0x4), region = 78 }

// kernel: simpleview_forward.28
= control target key start
LH: loop header
LB: loop body
LE: loop exit
PB: predicated region body
PF: predicated region fallthrough
CT: control target
= control target key end

     0   :  { %s463_s15 = smov 0   ;;  %s510_s0 = inlined_call_operand.vmem [shape: bf16[32,128], index: 0, kind: input, shape index: {}]   ;;  %s511_s1 = inlined_call_operand.vmem [shape: bf16[128,128], index: 1, kind: input, shape index: {}]   ;;  %s512_s2 = inlined_call_operand.vmem [shape: f32[1,128], index: 2, kind: input, shape index: {}]   ;;  %s513_s3 = inlined_call_operand.vmem [shape: f32[1,128], index: 3, kind: input, shape index: {}]   ;;  %s514_s4 = inlined_call_operand.vmem [shape: bf16[32,128], index: 4, kind: output, shape index: {}]  }
   0x1 LB: > { %s359_s16 = sadd.s32 4294967295, %s436_s15   ;;  %p363_p0 = scmp.ge.s32.totalorder %s436_s15, 1  ;;  %s436_s15 = sphi %s463_s15, %s14_s15  }
   0x2   : > { %p163_p1 = scmp.lt.s32.totalorder %s436_s15, 3 }
   0x4   : > { %p164_p2 = pnand %p363_p0, %p163_p1 }
   0x5   : > { %s364_s25 = sshll.u32 (!%p164_p2), %s359_s16, 1 }
   0x6   : > { %167 = sbr.rel (%p164_p2) target bundleno = 184 (0xb8), region = 36  ;;  %p190_p3 = scmp.lt.s32.totalorder (!%p164_p2), %s364_s25, 3 }
   0xb   : > { %v414_v0 = vld [vmem:[%s511_s1 + $0x38] sm:$0xff]  ;;  %v413_v1 = vld [vmem:[%s511_s1 + $0x30] sm:$0xff]  ;;  %v412_v2 = vld [vmem:[%s511_s1 + $0x28] sm:$0xff]  ;;  %s516_s25 = smov (!%p190_p3, %s364_s25), 3 }
   0xc   : > { %273 = vmatpush.bf16.msra.mxu0 %v414_v0  ;;  %v411_v3 = vld [vmem:[%s511_s1 + $0x20] sm:$0xff]  ;;  %v410_v4 = vld [vmem:[%s511_s1 + $0x18] sm:$0xff]  ;;  %v409_v5 = vld [vmem:[%s511_s1 + $0x10] sm:$0xff]  ;;  %s365_s6 = sshll.u32 %s516_s25, 2 }
   0xd   : > { %v408_v6 = vld [vmem:[%s511_s1 + $0x8] sm:$0xff]  ;;  %v407_v7 = vld [vmem:[%s511_s1] sm:$0xff]  ;;  %s193_s11 = scalar_lea.vmem %s510_s0, %s365_s6  ;;  %s199_s19 = scalar_lea.vmem %s514_s4, %s365_s6 }
   0xe   : > { %v406_v8 = vld [vmem:[%s193_s11] sm:$0xff] }
   0xf   : > { %v428_v10 = vld [vmem:[%s512_s2] ss:$0 sm:$0xff] }
  0x10   : > { %274 = vmatpush.bf16.msra.mxu0 %v413_v1  ;;  %v429_v12 = vld [vmem:[%s513_s3] ss:$0 sm:$0xff] }
  0x14   : > { %275 = vmatpush.bf16.msra.mxu0 %v412_v2 }
  0x18   : > { %276 = vmatpush.bf16.msra.mxu0 %v411_v3 }
  0x1c   : > { %277 = vmatpush.bf16.msra.mxu0 %v410_v4 }
  0x20   : > { %278 = vmatpush.bf16.msra.mxu0 %v409_v5 }
  0x24   : > { %279 = vmatpush.bf16.msra.mxu0 %v408_v6 }
  0x28   : > { %280 = vmatpush.bf16.msra.mxu0 %v407_v7 }
  0x2b   : > { %281 = vmatmul.bf16.vlgmr.msra.gmra.mxu0 %v406_v8 }
  0xa8   : > { %v282_v9 = vpop.f32.mrf.mxu0 }
  0xa9   : > { %v291_v11 = vmul.f32 %v428_v10, %v282_v9 }
  0xab   : > { %v297_v15 = vadd.f32 %v429_v12, %v291_v11 }
  0xb0   : > { %v284_v13 = vpop.f32.mrf.mxu0 }
  0xb1   : > { %v292_v14 = vmul.f32 %v428_v10, %v284_v13 }
  0xb3   : > { %v298_v16 = vadd.f32 %v429_v12, %v292_v14 }
  0xb5   : > { %v418_v17 = vpack.c.bf16 %v298_v16, %v297_v15 }
  0xb7   : > { %419 = vst [vmem:[%s199_s19] sm:$0xff] %v418_v17  }
  0xb8 PF: > { %s14_s15 = sadd.s32 1, %s436_s15  }
  0xb9   : > { %p11_p4 = scmp.ge.s32.totalorder %s14_s15, 4  }
  0xbb   :  { %13 = sbr.rel (!%p11_p4) target bundleno = 1 (0x1), region = 66 }

// kernel: simpleview_forward.30
= control target key start
LH: loop header
LB: loop body
LE: loop exit
PB: predicated region body
PF: predicated region fallthrough
CT: control target
= control target key end

     0   :  { %s1011_s18 = smov 0   ;;  %s1013_s19 = smov 0   ;;  %s1148_s0 = inlined_call_operand.vmem [shape: bf16[6,4,1,4,128], index: 0, kind: input, shape index: {}]   ;;  %s1149_s1 = inlined_call_operand.vmem [shape: bf16[3,3,128,128], index: 1, kind: input, shape index: {}]   ;;  %s1150_s2 = inlined_call_operand.vmem [shape: f32[1,128], index: 2, kind: input, shape index: {}]   ;;  %s1151_s3 = inlined_call_operand.vmem [shape: f32[1,128], index: 3, kind: input, shape index: {}]   ;;  %s1152_s4 = inlined_call_operand.vmem [shape: bf16[6,2,2,128], index: 4, kind: input, shape index: {}]   ;;  %s1153_s5 = inlined_call_operand.vmem [shape: bf16[6,2,2,128], index: 5, kind: output, shape index: {}]  }
   0x1   :  { %s1015_s20 = smov 0   ;;  %s1017_s21 = smov 0  }
   0x2   :  { %s1019_s22 = smov 0   ;;  %s1021_s23 = smov 0  }
   0x3   :  { %s1023_s24 = smov 0  }
   0x4 LB: > { %s27_s25 = sadd.s32 1, %s966_s21  ;;  %s30_s26 = sadd.s32 1, %s970_s22  ;;  %s978_s24 = sphi %s1023_s24, %s15_s24   ;;  %s974_s23 = sphi %s1021_s23, %s1159_s23   ;;  %s970_s22 = sphi %s1019_s22, %s1158_s22   ;;  %s966_s21 = sphi %s1017_s21, %s1157_s21   ;;  %s962_s20 = sphi %s1015_s20, %s1156_s20   ;;  %s958_s19 = sphi %s1013_s19, %s1155_s19   ;;  %s954_s18 = sphi %s1011_s18, %s1154_s18  }
   0x5   : > { %p28_p0 = scmp.ge.s32.totalorder %s27_s25, 3  ;;  %p700_p1 = scmp.ge.s32.totalorder %s978_s24, 1 }
   0x6   : > { %p231_p2 = scmp.lt.s32.totalorder %s978_s24, 37  ;;  %s34_s27 = sadd.s32 1, %s974_s23 }
   0x7   : > { %s1161_s25 = smov (%p28_p0, %s27_s25), 0  ;;  %s1163_s26 = smov (!%p28_p0, %s30_s26), %s970_s22 }
   0x8   : > { %p232_p3 = pnand %p700_p1, %p231_p2  ;;  %p32_p4 = scmp.ge.s32.totalorder %s1163_s26, 2 }
   0x9   : > { %s272_s28 = sadd.s32 (!%p232_p3), %s954_s18, %s958_s19  ;;  %p273_p6 = scmp.lt.s32.totalorder (!%p232_p3), %s962_s20, 5 }
   0xa   : > { %s1165_s26 = smov (%p32_p4, %s1163_s26), 0  ;;  %s1167_s27 = smov (!%p32_p4, %s34_s27), %s974_s23 }
   0xb   : > { %p36_p5 = scmp.ge.s32.totalorder %s1167_s27, 6  ;;  %235 = sbr.rel (%p232_p3) target bundleno = 220 (0xdc), region = 40 }
   0xc   : > { %p275_p7 = scmp.lt.s32.totalorder (!%p232_p3), %s272_s28, 3  ;;  %p284_p8 = scmp.lt.s32.totalorder (!%p232_p3), %s958_s19, 1 }
   0xd   : > { %s1169_s27 = smov (%p36_p5, %s1167_s27), 0  ;;  %p705_p9 = scmp.ne.s32.totalorder (!%p232_p3), %s954_s18, 0 }
  0x10   : > { %s1171_s20 = smov (!%p273_p6, %s962_s20), 5  ;;  %s1173_s28 = smov (!%p275_p7, %s272_s28), 3 }
  0x11   : > { %s701_s29 = sshll.u32 %s1171_s20, 2  ;;  %s703_s10 = sshll.u32 %s1171_s20, 1 }
  0x12   : > { %s278_s30 = sadd.s32 %s701_s29, %s1173_s28  ;;  %s1175_s19 = smov (!%p284_p8, %s958_s19), 1 }
  0x13   : > { %s702_s6 = sshll.u32 %s278_s30, 1  ;;  %s1066_s11 = sadd.s32 %s703_s10, %s1175_s19 }
  0x14   : > { %s1063_s9 = scalar_lea.vmem %s1148_s0, %s702_s6  ;;  %s288_s14 = scalar_lea.vmem %s1152_s4, %s1066_s11 }
  0x15   : > { %s295_s17 = scalar_lea.vmem %s1153_s5, %s1066_s11  ;;  %299 = sbr.rel (%p705_p9) target bundleno = 28 (0x1c), region = 44 }
  0x1a   : > { %v980_v0 = vmov 0.0  }
  0x1b   : > { %300 = vst [vmem:[#allocation2] sm:$0x3] %v980_v0 }
  0x1c PF: > { %s840_s19 = smul.u32 192, %s954_s18  ;;  %v321_v1 = vld [vmem:[%s1063_s9] sm:$0x3]  ;;  %p837_p10 = scmp.ne.s32.totalorder %s954_s18, 2 }
  0x1d   : > { %342 = vst [vmem:[#allocation1] ss:$4 sm:$0xff] %v321_v1  ;;  %v473_v10 = vld [vmem:[%s1063_s9] sm:$0x2]  ;;  %v301_v33 = vld [vmem:[%s1063_s9] sm:$0x1] }
  0x1e   : > { %s1082_s29 = scalar_lea.vmem %s1149_s1, %s840_s19 }
  0x1f   : > { %v856_v2 = vld [vmem:[%s1082_s29 + $0x78] sm:$0xff]  ;;  %v855_v5 = vld [vmem:[%s1082_s29 + $0x70] sm:$0xff]  ;;  %v854_v8 = vld [vmem:[%s1082_s29 + $0x68] sm:$0xff] }
  0x20   : > { %v848_v3 = vld [vmem:[%s1082_s29 + $0x38] sm:$0xff]  ;;  %399 = vmatpush.bf16.msra.mxu0 %v856_v2  ;;  %v847_v6 = vld [vmem:[%s1082_s29 + $0x30] sm:$0xff]  ;;  %v846_v9 = vld [vmem:[%s1082_s29 + $0x28] sm:$0xff] }
  0x21   : > { %v864_v4 = vld [vmem:[%s1082_s29 + $0xb8] sm:$0xff]  ;;  %460 = vmatpush.bf16.msra.mxu1 %v848_v3  ;;  %v863_v7 = vld [vmem:[%s1082_s29 + $0xb0] sm:$0xff]  ;;  %v862_v11 = vld [vmem:[%s1082_s29 + $0xa8] sm:$0xff] }
  0x22   : > { %547 = vmatpush.bf16.msra.mxu2 %v864_v4  ;;  %v853_v13 = vld [vmem:[%s1082_s29 + $0x60] sm:$0xff]  ;;  %v852_v16 = vld [vmem:[%s1082_s29 + $0x58] sm:$0xff]  ;;  %v851_v19 = vld [vmem:[%s1082_s29 + $0x50] sm:$0xff] }
  0x23   : > { %v845_v14 = vld [vmem:[%s1082_s29 + $0x20] sm:$0xff]  ;;  %v844_v17 = vld [vmem:[%s1082_s29 + $0x18] sm:$0xff]  ;;  %v843_v20 = vld [vmem:[%s1082_s29 + $0x10] sm:$0xff] }
  0x24   : > { %400 = vmatpush.bf16.msra.mxu0 %v855_v5  ;;  %v343_v12 = vld.sshfl [vmem:[#allocation1] sm:$0xff pattern:$0x73625140]  ;;  %v860_v18 = vld [vmem:[%s1082_s29 + $0x98] sm:$0xff]  ;;  %v859_v21 = vld [vmem:[%s1082_s29 + $0x90] sm:$0xff] }
  0x25   : > { %461 = vmatpush.bf16.msra.mxu1 %v847_v6  ;;  %494 = vst [vmem:[#allocation1] ss:$4 sm:$0xff] %v473_v10  ;;  %v861_v15 = vld [vmem:[%s1082_s29 + $0xa0] sm:$0xff]  ;;  %v346_v22 = vshll.u32 %v343_v12, 16  ;;  %v850_v23 = vld [vmem:[%s1082_s29 + $0x48] sm:$0xff]  ;;  %v344_v26 = vshrl.u32 %v343_v12, 16 }
  0x26   : > { %548 = vmatpush.bf16.msra.mxu2 %v863_v7  ;;  %v842_v24 = vld [vmem:[%s1082_s29 + $0x8] sm:$0xff]  ;;  %v849_v28 = vld [vmem:[%s1082_s29 + $0x40] sm:$0xff] }
  0x27   : > { %v858_v25 = vld [vmem:[%s1082_s29 + $0x88] sm:$0xff]  ;;  %v348_v27 = vrot.slane %v346_v22, 1  ;;  %v841_v29 = vld [vmem:[%s1082_s29] sm:$0xff] }
  0x28   : > { %401 = vmatpush.bf16.msra.mxu0 %v854_v8  ;;  %v857_v30 = vld [vmem:[%s1082_s29 + $0x80] sm:$0xff]  ;;  %v561_v39 = vld [vmem:[#allocation2] sm:$0x3] }
  0x29   : > { %462 = vmatpush.bf16.msra.mxu1 %v846_v9  ;;  %v349_v32 = vor.u32 %v348_v27, %v344_v26 }
  0x2a   : > { %549 = vmatpush.bf16.msra.mxu2 %v862_v11 }
  0x2c   : > { %402 = vmatpush.bf16.msra.mxu0 %v853_v13  ;;  %v495_v31 = vld.sshfl [vmem:[#allocation1] sm:$0xff pattern:$0x73625140] }
  0x2d   : > { %463 = vmatpush.bf16.msra.mxu1 %v845_v14  ;;  %v497_v34 = vrot.slane %v495_v31, 1 }
  0x2e   : > { %550 = vmatpush.bf16.msra.mxu2 %v861_v15 }
  0x30   : > { %403 = vmatpush.bf16.msra.mxu0 %v852_v16 }
  0x31   : > { %464 = vmatpush.bf16.msra.mxu1 %v844_v17 }
  0x32   : > { %551 = vmatpush.bf16.msra.mxu2 %v860_v18 }
  0x34   : > { %404 = vmatpush.bf16.msra.mxu0 %v851_v19 }
  0x35   : > { %465 = vmatpush.bf16.msra.mxu1 %v843_v20 }
  0x36   : > { %552 = vmatpush.bf16.msra.mxu2 %v859_v21 }
  0x38   : > { %405 = vmatpush.bf16.msra.mxu0 %v850_v23 }
  0x39   : > { %466 = vmatpush.bf16.msra.mxu1 %v842_v24 }
  0x3a   : > { %553 = vmatpush.bf16.msra.mxu2 %v858_v25 }
  0x3c   : > { %406 = vmatpush.bf16.msra.mxu0 %v849_v28 }
  0x3d   : > { %467 = vmatpush.bf16.msra.mxu1 %v841_v29 }
  0x3e   : > { %554 = vmatpush.bf16.msra.mxu2 %v857_v30 }
  0x3f   : > { %407 = vmatmul.bf16.vlgmr.msra.gmra.mxu0 %v349_v32 }
  0x40   : > { %468 = vmatmul.bf16.vlgmr.msra.gmra.mxu1 %v301_v33 }
  0x41   : > { %555 = vmatmul.bf16.vlgmr.msra.gmra.mxu2 %v497_v34 }
  0xbc   : > { %v408_v35 = vpop.f32.mrf.mxu0 }
  0xbd   : > { %v469_v36 = vpop.f32.mrf.mxu1 }
  0xbe   : > { %v470_v37 = vadd.f32 %v469_v36, %v408_v35 }
  0xc4   : > { %v556_v38 = vpop.f32.mrf.mxu2  ;;  %v410_v41 = vpop.f32.mrf.mxu0 }
  0xc5   : > { %v560_v40 = vadd.f32 %v556_v38, %v470_v37  ;;  %v471_v42 = vpop.f32.mrf.mxu1 }
  0xc7   : > { %v562_v43 = vadd.f32 %v561_v39, %v560_v40 }
  0xc8   : > { %567 = sbr.rel (%p837_p10) target bundleno = 220 (0xdc), region = 48 }
  0xc9   : > { %563 = vst [vmem:[#allocation2] sm:$0x3] %v562_v43 }
  0xcc   : > { %v558_v44 = vpop.f32.mrf.mxu2 }
  0xcd   : > { %v922_v46 = vld [vmem:[%s1150_s2] ss:$0 sm:$0xff] }
  0xce   : > { %v923_v47 = vld [vmem:[%s1151_s3] ss:$0 sm:$0xff] }
  0xcf   : > { %v579_v48 = vld [vmem:[%s288_s14] sm:$0x1] }
  0xd0   : > { %v568_v45 = vld [vmem:[#allocation2] sm:$0x3]  ;;  %v580_v50 = vunpack.c.l.bf16 %v579_v48 }
  0xd1   : > { %v573_v49 = vmul.f32 %v922_v46, %v568_v45 }
  0xd3   : > { %v578_v51 = vadd.f32 %v923_v47, %v573_v49 }
  0xd5   : > { %v581_v52 = vadd.f32 %v580_v50, %v578_v51 }
  0xd7   : > { %v582_v53 = vmax.f32 %v581_v52, 0.0 }
  0xd9   : > { %v583_v54 = vpack.c.bf16 %v582_v53, %v582_v53 }
  0xdb   : > { %584 = vst [vmem:[%s295_s17] sm:$0x1] %v583_v54 }
  0xdc PF: > { %s15_s24 = sadd.s32 1, %s978_s24   ;;  %s1154_s18 = smov %s966_s21 }
  0xdd   : > { %p12_p11 = scmp.ge.s32.totalorder %s15_s24, 38   ;;  %s1155_s19 = smov %s970_s22 }
  0xde   : > { %s1156_s20 = smov %s974_s23  ;;  %s1157_s21 = smov %s1161_s25 }
  0xdf   : > { %s1158_s22 = smov %s1165_s26  ;;  %s1159_s23 = smov %s1169_s27 }
  0xe0   :  { %14 = sbr.rel (!%p12_p11) target bundleno = 4 (0x4), region = 84 }

// kernel: simpleview_forward.31
= control target key start
LH: loop header
LB: loop body
LE: loop exit
PB: predicated region body
PF: predicated region fallthrough
CT: control target
= control target key end

     0   :  { %s932_s15 = smov 0   ;;  %s934_s16 = smov 0   ;;  %s1060_s0 = inlined_call_operand.vmem [shape: bf16[6,4,1,4,128], index: 0, kind: input, shape index: {}]   ;;  %s1061_s1 = inlined_call_operand.vmem [shape: bf16[3,3,128,128], index: 1, kind: input, shape index: {}]   ;;  %s1062_s2 = inlined_call_operand.vmem [shape: f32[1,128], index: 2, kind: input, shape index: {}]   ;;  %s1063_s3 = inlined_call_operand.vmem [shape: f32[1,128], index: 3, kind: input, shape index: {}]   ;;  %s1064_s4 = inlined_call_operand.vmem [shape: bf16[6,2,2,128], index: 4, kind: output, shape index: {}]  }
   0x1   :  { %s936_s17 = smov 0   ;;  %s938_s18 = smov 0  }
   0x2   :  { %s940_s19 = smov 0   ;;  %s942_s20 = smov 0  }
   0x3   :  { %s944_s21 = smov 0  }
   0x4 LB: > { %s26_s22 = sadd.s32 1, %s892_s18  ;;  %s29_s23 = sadd.s32 1, %s896_s19  ;;  %s904_s21 = sphi %s944_s21, %s14_s21   ;;  %s900_s20 = sphi %s942_s20, %s1070_s20   ;;  %s896_s19 = sphi %s940_s19, %s1069_s19   ;;  %s892_s18 = sphi %s938_s18, %s1068_s18   ;;  %s888_s17 = sphi %s936_s17, %s1067_s17   ;;  %s884_s16 = sphi %s934_s16, %s1066_s16   ;;  %s880_s15 = sphi %s932_s15, %s1065_s15  }
   0x5   : > { %p27_p0 = scmp.ge.s32.totalorder %s26_s22, 3  ;;  %p627_p1 = scmp.ge.s32.totalorder %s904_s21, 1 }
   0x6   : > { %p192_p2 = scmp.lt.s32.totalorder %s904_s21, 37  ;;  %s33_s24 = sadd.s32 1, %s900_s20 }
   0x7   : > { %s1072_s22 = smov (%p27_p0, %s26_s22), 0  ;;  %s1074_s23 = smov (!%p27_p0, %s29_s23), %s896_s19 }
   0x8   : > { %p193_p3 = pnand %p627_p1, %p192_p2  ;;  %p31_p4 = scmp.ge.s32.totalorder %s1074_s23, 2 }
   0x9   : > { %s224_s25 = sadd.s32 (!%p193_p3), %s880_s15, %s884_s16  ;;  %p225_p6 = scmp.lt.s32.totalorder (!%p193_p3), %s888_s17, 5 }
   0xa   : > { %s1076_s23 = smov (%p31_p4, %s1074_s23), 0  ;;  %s1078_s24 = smov (!%p31_p4, %s33_s24), %s900_s20 }
   0xb   : > { %p35_p5 = scmp.ge.s32.totalorder %s1078_s24, 6  ;;  %196 = sbr.rel (%p193_p3) target bundleno = 218 (0xda), region = 36 }
   0xc   : > { %p227_p7 = scmp.lt.s32.totalorder (!%p193_p3), %s224_s25, 3  ;;  %p236_p8 = scmp.lt.s32.totalorder (!%p193_p3), %s884_s16, 1 }
   0xd   : > { %s1080_s24 = smov (%p35_p5, %s1078_s24), 0  ;;  %p631_p9 = scmp.ne.s32.totalorder (!%p193_p3), %s880_s15, 0 }
  0x10   : > { %s1082_s17 = smov (!%p225_p6, %s888_s17), 5  ;;  %s1084_s25 = smov (!%p227_p7, %s224_s25), 3 }
  0x11   : > { %s628_s26 = sshll.u32 %s1082_s17, 2  ;;  %s630_s6 = sshll.u32 %s1082_s17, 1 }
  0x12   : > { %s230_s27 = sadd.s32 %s628_s26, %s1084_s25  ;;  %s1086_s16 = smov (!%p236_p8, %s884_s16), 1 }
  0x13   : > { %s629_s28 = sshll.u32 %s230_s27, 1  ;;  %s987_s7 = sadd.s32 %s630_s6, %s1086_s16 }
  0x14   : > { %s984_s5 = scalar_lea.vmem %s1060_s0, %s629_s28  ;;  %s240_s10 = scalar_lea.vmem %s1064_s4, %s987_s7 }
  0x15   : > { %244 = sbr.rel (%p631_p9) target bundleno = 28 (0x1c), region = 40 }
  0x1a   : > { %v906_v0 = vmov 0.0  }
  0x1b   : > { %245 = vst [vmem:[#allocation2] sm:$0x3] %v906_v0 }
  0x1c PF: > { %s766_s11 = smul.u32 192, %s880_s15  ;;  %v266_v1 = vld [vmem:[%s984_s5] sm:$0x3]  ;;  %p763_p10 = scmp.ne.s32.totalorder %s880_s15, 2 }
  0x1d   : > { %287 = vst [vmem:[#allocation1] ss:$4 sm:$0xff] %v266_v1  ;;  %v418_v10 = vld [vmem:[%s984_s5] sm:$0x2]  ;;  %v246_v33 = vld [vmem:[%s984_s5] sm:$0x1] }
  0x1e   : > { %s999_s14 = scalar_lea.vmem %s1061_s1, %s766_s11 }
  0x1f   : > { %v782_v2 = vld [vmem:[%s999_s14 + $0x78] sm:$0xff]  ;;  %v781_v5 = vld [vmem:[%s999_s14 + $0x70] sm:$0xff]  ;;  %v780_v8 = vld [vmem:[%s999_s14 + $0x68] sm:$0xff] }
  0x20   : > { %v774_v3 = vld [vmem:[%s999_s14 + $0x38] sm:$0xff]  ;;  %344 = vmatpush.bf16.msra.mxu0 %v782_v2  ;;  %v773_v6 = vld [vmem:[%s999_s14 + $0x30] sm:$0xff]  ;;  %v772_v9 = vld [vmem:[%s999_s14 + $0x28] sm:$0xff] }
  0x21   : > { %v790_v4 = vld [vmem:[%s999_s14 + $0xb8] sm:$0xff]  ;;  %405 = vmatpush.bf16.msra.mxu1 %v774_v3  ;;  %v789_v7 = vld [vmem:[%s999_s14 + $0xb0] sm:$0xff]  ;;  %v788_v11 = vld [vmem:[%s999_s14 + $0xa8] sm:$0xff] }
  0x22   : > { %492 = vmatpush.bf16.msra.mxu2 %v790_v4  ;;  %v779_v13 = vld [vmem:[%s999_s14 + $0x60] sm:$0xff]  ;;  %v778_v16 = vld [vmem:[%s999_s14 + $0x58] sm:$0xff]  ;;  %v777_v19 = vld [vmem:[%s999_s14 + $0x50] sm:$0xff] }
  0x23   : > { %v771_v14 = vld [vmem:[%s999_s14 + $0x20] sm:$0xff]  ;;  %v770_v17 = vld [vmem:[%s999_s14 + $0x18] sm:$0xff]  ;;  %v769_v20 = vld [vmem:[%s999_s14 + $0x10] sm:$0xff] }
  0x24   : > { %345 = vmatpush.bf16.msra.mxu0 %v781_v5  ;;  %v288_v12 = vld.sshfl [vmem:[#allocation1] sm:$0xff pattern:$0x73625140]  ;;  %v786_v18 = vld [vmem:[%s999_s14 + $0x98] sm:$0xff]  ;;  %v785_v21 = vld [vmem:[%s999_s14 + $0x90] sm:$0xff] }
  0x25   : > { %406 = vmatpush.bf16.msra.mxu1 %v773_v6  ;;  %439 = vst [vmem:[#allocation1] ss:$4 sm:$0xff] %v418_v10  ;;  %v787_v15 = vld [vmem:[%s999_s14 + $0xa0] sm:$0xff]  ;;  %v291_v22 = vshll.u32 %v288_v12, 16  ;;  %v776_v23 = vld [vmem:[%s999_s14 + $0x48] sm:$0xff]  ;;  %v289_v26 = vshrl.u32 %v288_v12, 16 }
  0x26   : > { %493 = vmatpush.bf16.msra.mxu2 %v789_v7  ;;  %v768_v24 = vld [vmem:[%s999_s14 + $0x8] sm:$0xff]  ;;  %v775_v28 = vld [vmem:[%s999_s14 + $0x40] sm:$0xff] }
  0x27   : > { %v784_v25 = vld [vmem:[%s999_s14 + $0x88] sm:$0xff]  ;;  %v293_v27 = vrot.slane %v291_v22, 1  ;;  %v767_v29 = vld [vmem:[%s999_s14] sm:$0xff] }
  0x28   : > { %346 = vmatpush.bf16.msra.mxu0 %v780_v8  ;;  %v783_v30 = vld [vmem:[%s999_s14 + $0x80] sm:$0xff]  ;;  %v506_v39 = vld [vmem:[#allocation2] sm:$0x3] }
  0x29   : > { %407 = vmatpush.bf16.msra.mxu1 %v772_v9  ;;  %v294_v32 = vor.u32 %v293_v27, %v289_v26 }
  0x2a   : > { %494 = vmatpush.bf16.msra.mxu2 %v788_v11 }
  0x2c   : > { %347 = vmatpush.bf16.msra.mxu0 %v779_v13  ;;  %v440_v31 = vld.sshfl [vmem:[#allocation1] sm:$0xff pattern:$0x73625140] }
  0x2d   : > { %408 = vmatpush.bf16.msra.mxu1 %v771_v14  ;;  %v442_v34 = vrot.slane %v440_v31, 1 }
  0x2e   : > { %495 = vmatpush.bf16.msra.mxu2 %v787_v15 }
  0x30   : > { %348 = vmatpush.bf16.msra.mxu0 %v778_v16 }
  0x31   : > { %409 = vmatpush.bf16.msra.mxu1 %v770_v17 }
  0x32   : > { %496 = vmatpush.bf16.msra.mxu2 %v786_v18 }
  0x34   : > { %349 = vmatpush.bf16.msra.mxu0 %v777_v19 }
  0x35   : > { %410 = vmatpush.bf16.msra.mxu1 %v769_v20 }
  0x36   : > { %497 = vmatpush.bf16.msra.mxu2 %v785_v21 }
  0x38   : > { %350 = vmatpush.bf16.msra.mxu0 %v776_v23 }
  0x39   : > { %411 = vmatpush.bf16.msra.mxu1 %v768_v24 }
  0x3a   : > { %498 = vmatpush.bf16.msra.mxu2 %v784_v25 }
  0x3c   : > { %351 = vmatpush.bf16.msra.mxu0 %v775_v28 }
  0x3d   : > { %412 = vmatpush.bf16.msra.mxu1 %v767_v29 }
  0x3e   : > { %499 = vmatpush.bf16.msra.mxu2 %v783_v30 }
  0x3f   : > { %352 = vmatmul.bf16.vlgmr.msra.gmra.mxu0 %v294_v32 }
  0x40   : > { %413 = vmatmul.bf16.vlgmr.msra.gmra.mxu1 %v246_v33 }
  0x41   : > { %500 = vmatmul.bf16.vlgmr.msra.gmra.mxu2 %v442_v34 }
  0xbc   : > { %v353_v35 = vpop.f32.mrf.mxu0 }
  0xbd   : > { %v414_v36 = vpop.f32.mrf.mxu1 }
  0xbe   : > { %v415_v37 = vadd.f32 %v414_v36, %v353_v35 }
  0xc4   : > { %v501_v38 = vpop.f32.mrf.mxu2  ;;  %v355_v41 = vpop.f32.mrf.mxu0 }
  0xc5   : > { %v505_v40 = vadd.f32 %v501_v38, %v415_v37  ;;  %v416_v42 = vpop.f32.mrf.mxu1 }
  0xc7   : > { %v507_v43 = vadd.f32 %v506_v39, %v505_v40 }
  0xc8   : > { %512 = sbr.rel (%p763_p10) target bundleno = 218 (0xda), region = 44 }
  0xc9   : > { %508 = vst [vmem:[#allocation2] sm:$0x3] %v507_v43 }
  0xcc   : > { %v503_v44 = vpop.f32.mrf.mxu2 }
  0xcd   : > { %v848_v46 = vld [vmem:[%s1062_s2] ss:$0 sm:$0xff] }
  0xce   : > { %v849_v47 = vld [vmem:[%s1063_s3] ss:$0 sm:$0xff] }
  0xd0   : > { %v513_v45 = vld [vmem:[#allocation2] sm:$0x3] }
  0xd1   : > { %v518_v48 = vmul.f32 %v848_v46, %v513_v45 }
  0xd3   : > { %v523_v49 = vadd.f32 %v849_v47, %v518_v48 }
  0xd5   : > { %v524_v50 = vmax.f32 %v523_v49, 0.0 }
  0xd7   : > { %v525_v51 = vpack.c.bf16 %v524_v50, %v524_v50 }
  0xd9   : > { %526 = vst [vmem:[%s240_s10] sm:$0x1] %v525_v51 }
  0xda PF: > { %s14_s21 = sadd.s32 1, %s904_s21   ;;  %s1065_s15 = smov %s892_s18 }
  0xdb   : > { %p11_p11 = scmp.ge.s32.totalorder %s14_s21, 38   ;;  %s1066_s16 = smov %s896_s19 }
  0xdc   : > { %s1067_s17 = smov %s900_s20  ;;  %s1068_s18 = smov %s1072_s22 }
  0xdd   : > { %s1069_s19 = smov %s1076_s23  ;;  %s1070_s20 = smov %s1080_s24 }
  0xde   :  { %13 = sbr.rel (!%p11_p11) target bundleno = 4 (0x4), region = 77 }

// kernel: simpleview_forward.34
= control target key start
LH: loop header
LB: loop body
LE: loop exit
PB: predicated region body
PF: predicated region fallthrough
CT: control target
= control target key end

     0   :  { %s883_s15 = smov 0   ;;  %s885_s16 = smov 0   ;;  %s984_s0 = inlined_call_operand.vmem [shape: bf16[6,4,2,2,128], index: 0, kind: input, shape index: {}]   ;;  %s985_s1 = inlined_call_operand.vmem [shape: bf16[3,3,128,128], index: 1, kind: input, shape index: {}]   ;;  %s986_s2 = inlined_call_operand.vmem [shape: f32[1,128], index: 2, kind: input, shape index: {}]   ;;  %s987_s3 = inlined_call_operand.vmem [shape: f32[1,128], index: 3, kind: input, shape index: {}]   ;;  %s988_s4 = inlined_call_operand.vmem [shape: bf16[6,1,1,128], index: 4, kind: output, shape index: {}]  }
   0x1   :  { %s887_s17 = smov 0   ;;  %s889_s18 = smov 0  }
   0x2   :  { %s891_s19 = smov 0  }
   0x3 LB: > { %s26_s20 = sadd.s32 1, %s847_s17  ;;  %s33_s21 = sadd.s32 1, %s851_s18  ;;  %s855_s19 = sphi %s891_s19, %s14_s19   ;;  %s851_s18 = sphi %s889_s18, %s992_s18   ;;  %s847_s17 = sphi %s887_s17, %s991_s17   ;;  %s843_s16 = sphi %s885_s16, %s990_s16   ;;  %s839_s15 = sphi %s883_s15, %s989_s15  }
   0x4   : > { %p27_p0 = scmp.ge.s32.totalorder %s26_s20, 3  ;;  %p612_p1 = scmp.ge.s32.totalorder %s855_s19, 1 }
   0x5   : > { %p196_p2 = scmp.lt.s32.totalorder %s855_s19, 19 }
   0x6   : > { %s994_s20 = smov (%p27_p0, %s26_s20), 0  ;;  %s996_s21 = smov (!%p27_p0, %s33_s21), %s851_s18 }
   0x7   : > { %p197_p3 = pnand %p612_p1, %p196_p2  ;;  %p35_p4 = scmp.ge.s32.totalorder %s996_s21, 6 }
   0x8   : > { %p230_p5 = scmp.lt.s32.totalorder (!%p197_p3), %s843_s16, 5  ;;  %p232_p6 = scmp.lt.s32.totalorder (!%p197_p3), %s839_s15, 3 }
   0x9   : > { %s998_s21 = smov (%p35_p4, %s996_s21), 0  ;;  %200 = sbr.rel (%p197_p3) target bundleno = 215 (0xd7), region = 36 }
   0xa   : > { %p615_p7 = scmp.ne.s32.totalorder (!%p197_p3), %s839_s15, 0 }
   0xe   : > { %s1000_s16 = smov (!%p230_p5, %s843_s16), 5 }
   0xf   : > { %s233_s22 = scalar_select %p232_p6, %s839_s15, 3 }
  0x10   : > { %s614_s23 = sshll.u32 %s1000_s16, 3  ;;  %s920_s26 = scalar_lea.vmem %s988_s4, %s1000_s16 }
  0x11   : > { %s613_s27 = sshll.u32 %s233_s22, 1  ;;  %249 = sbr.rel (%p615_p7) target bundleno = 24 (0x18), region = 40 }
  0x12   : > { %s236_s28 = sadd.s32 %s614_s23, %s613_s27 }
  0x13   : > { %s925_s5 = scalar_lea.vmem %s984_s0, %s236_s28 }
  0x16   : > { %v857_v0 = vmov 0.0  }
  0x17   : > { %250 = vst [vmem:[#allocation2] sm:$0x1] %v857_v0 }
  0x18 PF: > { %s751_s6 = smul.u32 192, %s839_s15  ;;  %v251_v1 = vld [vmem:[%s925_s5] sm:$0x1]  ;;  %v617_v27 = vld [vmem:[%s925_s5 + $0x1] sm:$0x1]  ;;  %p748_p8 = scmp.ne.s32.totalorder %s839_s15, 2 }
  0x19   : > { %434 = vst [vmem:[#allocation1] ss:$9 sm:$0xff] %v251_v1 }
  0x1a   : > { %s933_s9 = scalar_lea.vmem %s985_s1, %s751_s6 }
  0x1b   : > { %v767_v2 = vld [vmem:[%s933_s9 + $0x78] sm:$0xff]  ;;  %v766_v5 = vld [vmem:[%s933_s9 + $0x70] sm:$0xff]  ;;  %v765_v8 = vld [vmem:[%s933_s9 + $0x68] sm:$0xff] }
  0x1c   : > { %v759_v3 = vld [vmem:[%s933_s9 + $0x38] sm:$0xff]  ;;  %340 = vmatpush.bf16.msra.mxu0 %v767_v2  ;;  %v758_v6 = vld [vmem:[%s933_s9 + $0x30] sm:$0xff]  ;;  %v757_v9 = vld [vmem:[%s933_s9 + $0x28] sm:$0xff] }
  0x1d   : > { %v775_v4 = vld [vmem:[%s933_s9 + $0xb8] sm:$0xff]  ;;  %401 = vmatpush.bf16.msra.mxu1 %v759_v3  ;;  %v774_v7 = vld [vmem:[%s933_s9 + $0xb0] sm:$0xff]  ;;  %v773_v10 = vld [vmem:[%s933_s9 + $0xa8] sm:$0xff] }
  0x1e   : > { %487 = vmatpush.bf16.msra.mxu2 %v775_v4  ;;  %v764_v11 = vld [vmem:[%s933_s9 + $0x60] sm:$0xff]  ;;  %v763_v14 = vld [vmem:[%s933_s9 + $0x58] sm:$0xff]  ;;  %v762_v17 = vld [vmem:[%s933_s9 + $0x50] sm:$0xff] }
  0x1f   : > { %v756_v12 = vld [vmem:[%s933_s9 + $0x20] sm:$0xff]  ;;  %v755_v15 = vld [vmem:[%s933_s9 + $0x18] sm:$0xff]  ;;  %v754_v18 = vld [vmem:[%s933_s9 + $0x10] sm:$0xff] }
  0x20   : > { %341 = vmatpush.bf16.msra.mxu0 %v766_v5  ;;  %v772_v13 = vld [vmem:[%s933_s9 + $0xa0] sm:$0xff]  ;;  %v771_v16 = vld [vmem:[%s933_s9 + $0x98] sm:$0xff]  ;;  %v770_v19 = vld [vmem:[%s933_s9 + $0x90] sm:$0xff] }
  0x21   : > { %402 = vmatpush.bf16.msra.mxu1 %v758_v6  ;;  %v761_v20 = vld [vmem:[%s933_s9 + $0x48] sm:$0xff]  ;;  %v760_v23 = vld [vmem:[%s933_s9 + $0x40] sm:$0xff] }
  0x22   : > { %488 = vmatpush.bf16.msra.mxu2 %v774_v7  ;;  %v753_v21 = vld [vmem:[%s933_s9 + $0x8] sm:$0xff]  ;;  %v752_v24 = vld [vmem:[%s933_s9] sm:$0xff] }
  0x23   : > { %v769_v22 = vld [vmem:[%s933_s9 + $0x88] sm:$0xff]  ;;  %v768_v25 = vld [vmem:[%s933_s9 + $0x80] sm:$0xff] }
  0x24   : > { %342 = vmatpush.bf16.msra.mxu0 %v765_v8  ;;  %v435_v26 = vld [vmem:[#allocation1] sm:$0xff]  ;;  %v501_v33 = vld [vmem:[#allocation2] sm:$0x1] }
  0x25   : > { %403 = vmatpush.bf16.msra.mxu1 %v757_v9  ;;  %v436_v28 = vshrl.u32 %v435_v26, 16 }
  0x26   : > { %489 = vmatpush.bf16.msra.mxu2 %v773_v10 }
  0x28   : > { %343 = vmatpush.bf16.msra.mxu0 %v764_v11 }
  0x29   : > { %404 = vmatpush.bf16.msra.mxu1 %v756_v12 }
  0x2a   : > { %490 = vmatpush.bf16.msra.mxu2 %v772_v13 }
  0x2c   : > { %344 = vmatpush.bf16.msra.mxu0 %v763_v14 }
  0x2d   : > { %405 = vmatpush.bf16.msra.mxu1 %v755_v15 }
  0x2e   : > { %491 = vmatpush.bf16.msra.mxu2 %v771_v16 }
  0x30   : > { %345 = vmatpush.bf16.msra.mxu0 %v762_v17 }
  0x31   : > { %406 = vmatpush.bf16.msra.mxu1 %v754_v18 }
  0x32   : > { %492 = vmatpush.bf16.msra.mxu2 %v770_v19 }
  0x34   : > { %346 = vmatpush.bf16.msra.mxu0 %v761_v20 }
  0x35   : > { %407 = vmatpush.bf16.msra.mxu1 %v753_v21 }
  0x36   : > { %493 = vmatpush.bf16.msra.mxu2 %v769_v22 }
  0x38   : > { %347 = vmatpush.bf16.msra.mxu0 %v760_v23 }
  0x39   : > { %408 = vmatpush.bf16.msra.mxu1 %v752_v24 }
  0x3a   : > { %494 = vmatpush.bf16.msra.mxu2 %v768_v25 }
  0x3b   : > { %348 = vmatmul.bf16.vlgmr.msra.gmra.mxu0 %v617_v27 }
  0x3c   : > { %409 = vmatmul.bf16.vlgmr.msra.gmra.mxu1 %v251_v1 }
  0x3d   : > { %495 = vmatmul.bf16.vlgmr.msra.gmra.mxu2 %v436_v28 }
  0xb8   : > { %v349_v29 = vpop.f32.mrf.mxu0 }
  0xb9   : > { %v410_v30 = vpop.f32.mrf.mxu1 }
  0xba   : > { %v411_v31 = vadd.f32 %v410_v30, %v349_v29 }
  0xc0   : > { %v496_v32 = vpop.f32.mrf.mxu2  ;;  %v351_v35 = vpop.f32.mrf.mxu0 }
  0xc1   : > { %v500_v34 = vadd.f32 %v496_v32, %v411_v31  ;;  %v412_v36 = vpop.f32.mrf.mxu1 }
  0xc3   : > { %v502_v37 = vadd.f32 %v501_v33, %v500_v34 }
  0xc4   : > { %507 = sbr.rel (%p748_p8) target bundleno = 215 (0xd7), region = 44 }
  0xc5   : > { %503 = vst [vmem:[#allocation2] sm:$0x1] %v502_v37 }
  0xc8   : > { %v498_v38 = vpop.f32.mrf.mxu2 }
  0xc9   : > { %v509_v40 = vld [vmem:[%s986_s2] sm:$0x1]  ;;  %vm515_vm0 = vcmask 1040384   ;;  %vm516_vm1 = vsmask.f32 256 }
  0xca   : > { %v511_v41 = vld [vmem:[%s987_s3] sm:$0x1]  ;;  %vm517_vm2 = vmand %vm515_vm0, %vm516_vm1 }
  0xcb   : > { %v518_v45 = vld [vmem:[%s920_s26] sm:$0x1] }
  0xcc   : > { %v508_v39 = vld [vmem:[#allocation2] sm:$0x1] }
  0xcd   : > { %v510_v42 = vmul.f32 %v509_v40, %v508_v39 }
  0xcf   : > { %v512_v43 = vadd.f32 %v511_v41, %v510_v42 }
  0xd1   : > { %v513_v44 = vmax.f32 %v512_v43, 0.0 }
  0xd3   : > { %v514_v46 = vpack.c.bf16 %v513_v44, %v513_v44 }
  0xd5   : > { %v519_v47 = vsel %vm517_vm2, %v514_v46, %v518_v45 }
  0xd6   : > { %520 = vst [vmem:[%s920_s26] sm:$0x1] %v519_v47 }
  0xd7 PF: > { %s14_s19 = sadd.s32 1, %s855_s19   ;;  %s989_s15 = smov %s847_s17 }
  0xd8   : > { %p11_p9 = scmp.ge.s32.totalorder %s14_s19, 20   ;;  %s990_s16 = smov %s851_s18 }
  0xd9   : > { %s991_s17 = smov %s994_s20  ;;  %s992_s18 = smov %s998_s21 }
  0xda   :  { %13 = sbr.rel (!%p11_p9) target bundleno = 3 (0x3), region = 78 }

// kernel: simpleview_forward.33
= control target key start
LH: loop header
LB: loop body
LE: loop exit
PB: predicated region body
PF: predicated region fallthrough
CT: control target
= control target key end

     0   :  { %s214_s1 = inlined_call_operand.vmem [shape: bf16[128,128], index: 1, kind: input, shape index: {}]   ;;  %s215_s2 = inlined_call_operand.vmem [shape: f32[1,128], index: 2, kind: input, shape index: {}]   ;;  %s216_s3 = inlined_call_operand.vmem [shape: f32[1,128], index: 3, kind: input, shape index: {}]   ;;  %s217_s0 = inlined_call_operand.vmem [shape: bf16[8,128], index: 0, kind: input, shape index: {}]   ;;  %s218_s4 = inlined_call_operand.vmem [shape: bf16[8,128], index: 4, kind: output, shape index: {}]  }
   0x1   :  { %v150_v0 = vld [vmem:[%s214_s1 + $0x38] sm:$0xff]  ;;  %v149_v1 = vld [vmem:[%s214_s1 + $0x30] sm:$0xff]  ;;  %v148_v2 = vld [vmem:[%s214_s1 + $0x28] sm:$0xff] }
   0x2   :  { %82 = vmatpush.bf16.msra.mxu0 %v150_v0  ;;  %v147_v3 = vld [vmem:[%s214_s1 + $0x20] sm:$0xff]  ;;  %v146_v4 = vld [vmem:[%s214_s1 + $0x18] sm:$0xff]  ;;  %v145_v5 = vld [vmem:[%s214_s1 + $0x10] sm:$0xff] }
   0x3   :  { %v144_v6 = vld [vmem:[%s214_s1 + $0x8] sm:$0xff]  ;;  %v143_v7 = vld [vmem:[%s214_s1] sm:$0xff] }
   0x4   :  { %v17_v8 = vld [vmem:[%s217_s0] sm:$0xf] }
   0x5   :  { %v151_v9 = vld [vmem:[%s215_s2] ss:$0 sm:$0xff] }
   0x6   :  { %83 = vmatpush.bf16.msra.mxu0 %v149_v1  ;;  %v152_v10 = vld [vmem:[%s216_s3] ss:$0 sm:$0xff] }
   0xa   :  { %84 = vmatpush.bf16.msra.mxu0 %v148_v2 }
   0xe   :  { %85 = vmatpush.bf16.msra.mxu0 %v147_v3 }
  0x12   :  { %86 = vmatpush.bf16.msra.mxu0 %v146_v4 }
  0x16   :  { %87 = vmatpush.bf16.msra.mxu0 %v145_v5 }
  0x1a   :  { %88 = vmatpush.bf16.msra.mxu0 %v144_v6 }
  0x1e   :  { %89 = vmatpush.bf16.msra.mxu0 %v143_v7 }
  0x21   :  { %90 = vmatmul.bf16.vlgmr.msra.gmra.mxu0 %v17_v8 }
  0x9e   :  { %v91_v11 = vpop.f32.mrf.mxu0 }
  0x9f   :  { %v99_v12 = vmul.f32 %v151_v9, %v91_v11 }
  0xa1   :  { %v104_v13 = vadd.f32 %v152_v10, %v99_v12 }
  0xa3   :  { %v105_v14 = vpack.c.bf16 %v104_v13, %v104_v13 }
  0xa5   :  { %106 = vst [vmem:[%s218_s4] sm:$0xf] %v105_v14 }
  0xa6   :  { %v93_v15 = vpop.f32.mrf.mxu0 }

// kernel: simpleview_forward.35
= control target key start
LH: loop header
LB: loop body
LE: loop exit
PB: predicated region body
PF: predicated region fallthrough
CT: control target
= control target key end

     0   :  { %s952_s18 = smov 0   ;;  %s954_s19 = smov 0   ;;  %s1062_s0 = inlined_call_operand.vmem [shape: bf16[6,3,1,3,128], index: 0, kind: input, shape index: {}]   ;;  %s1063_s1 = inlined_call_operand.vmem [shape: bf16[3,3,128,128], index: 1, kind: input, shape index: {}]   ;;  %s1064_s2 = inlined_call_operand.vmem [shape: f32[1,128], index: 2, kind: input, shape index: {}]   ;;  %s1065_s3 = inlined_call_operand.vmem [shape: f32[1,128], index: 3, kind: input, shape index: {}]   ;;  %s1066_s4 = inlined_call_operand.vmem [shape: bf16[6,1,1,128], index: 4, kind: input, shape index: {}]   ;;  %s1067_s5 = inlined_call_operand.vmem [shape: bf16[6,1,1,128], index: 5, kind: output, shape index: {}]  }
   0x1   :  { %s956_s20 = smov 0   ;;  %s958_s21 = smov 0  }
   0x2   :  { %s960_s22 = smov 0  }
   0x3 LB: > { %s27_s23 = sadd.s32 1, %s911_s20  ;;  %s34_s24 = sadd.s32 1, %s915_s21  ;;  %s919_s22 = sphi %s960_s22, %s15_s22   ;;  %s915_s21 = sphi %s958_s21, %s1071_s21   ;;  %s911_s20 = sphi %s956_s20, %s1070_s20   ;;  %s907_s19 = sphi %s954_s19, %s1069_s19   ;;  %s903_s18 = sphi %s952_s18, %s1068_s18  }
   0x4   : > { %p28_p0 = scmp.ge.s32.totalorder %s27_s23, 3  ;;  %p677_p1 = scmp.ge.s32.totalorder %s919_s22, 1 }
   0x5   : > { %p230_p2 = scmp.lt.s32.totalorder %s919_s22, 19 }
   0x6   : > { %s1073_s23 = smov (%p28_p0, %s27_s23), 0  ;;  %s1075_s24 = smov (!%p28_p0, %s34_s24), %s915_s21 }
   0x7   : > { %p231_p3 = pnand %p677_p1, %p230_p2  ;;  %p36_p4 = scmp.ge.s32.totalorder %s1075_s24, 6 }
   0x8   : > { %p270_p5 = scmp.lt.s32.totalorder (!%p231_p3), %s907_s19, 5  ;;  %p272_p6 = scmp.lt.s32.totalorder (!%p231_p3), %s903_s18, 2 }
   0x9   : > { %s1077_s24 = smov (%p36_p4, %s1075_s24), 0  ;;  %234 = sbr.rel (%p231_p3) target bundleno = 217 (0xd9), region = 40 }
   0xa   : > { %p679_p7 = scmp.ne.s32.totalorder (!%p231_p3), %s903_s18, 0 }
   0xe   : > { %s1079_s19 = smov (!%p270_p5, %s907_s19), 5 }
   0xf   : > { %s273_s25 = scalar_select %p272_p6, %s903_s18, 2 }
  0x10   : > { %s839_s26 = smul.u32 3, %s1079_s19  ;;  %s284_s29 = scalar_lea.vmem %s1066_s4, %s1079_s19 }
  0x11   : > { %s997_s7 = scalar_lea.vmem %s1067_s5, %s1079_s19  ;;  %294 = sbr.rel (%p679_p7) target bundleno = 24 (0x18), region = 44 }
  0x12   : > { %s275_s8 = sadd.s32 %s839_s26, %s273_s25 }
  0x13   : > { %s678_s9 = sshll.u32 %s275_s8, 1 }
  0x14   : > { %s277_s12 = scalar_lea.vmem %s1062_s0, %s678_s9 }
  0x16   : > { %v921_v0 = vmov 0.0  }
  0x17   : > { %295 = vst [vmem:[#allocation2] sm:$0x1] %v921_v0 }
  0x18 PF: > { %s814_s13 = smul.u32 192, %s903_s18  ;;  %v296_v1 = vld [vmem:[%s277_s12] sm:$0x1]  ;;  %v463_v10 = vld [vmem:[%s277_s12] sm:$0x2]  ;;  %p811_p8 = scmp.ne.s32.totalorder %s903_s18, 2 }
  0x19   : > { %336 = vst [vmem:[#allocation1] ss:$4 sm:$0xff] %v296_v1 }
  0x1a   : > { %s1007_s16 = scalar_lea.vmem %s1063_s1, %s814_s13 }
  0x1b   : > { %v830_v2 = vld [vmem:[%s1007_s16 + $0x78] sm:$0xff]  ;;  %v829_v5 = vld [vmem:[%s1007_s16 + $0x70] sm:$0xff]  ;;  %v828_v8 = vld [vmem:[%s1007_s16 + $0x68] sm:$0xff] }
  0x1c   : > { %v822_v3 = vld [vmem:[%s1007_s16 + $0x38] sm:$0xff]  ;;  %389 = vmatpush.bf16.msra.mxu0 %v830_v2  ;;  %v821_v6 = vld [vmem:[%s1007_s16 + $0x30] sm:$0xff]  ;;  %v820_v9 = vld [vmem:[%s1007_s16 + $0x28] sm:$0xff] }
  0x1d   : > { %v838_v4 = vld [vmem:[%s1007_s16 + $0xb8] sm:$0xff]  ;;  %450 = vmatpush.bf16.msra.mxu1 %v822_v3  ;;  %v837_v7 = vld [vmem:[%s1007_s16 + $0xb0] sm:$0xff]  ;;  %v836_v11 = vld [vmem:[%s1007_s16 + $0xa8] sm:$0xff] }
  0x1e   : > { %537 = vmatpush.bf16.msra.mxu2 %v838_v4  ;;  %v827_v13 = vld [vmem:[%s1007_s16 + $0x60] sm:$0xff]  ;;  %v826_v16 = vld [vmem:[%s1007_s16 + $0x58] sm:$0xff]  ;;  %v825_v19 = vld [vmem:[%s1007_s16 + $0x50] sm:$0xff] }
  0x1f   : > { %v819_v14 = vld [vmem:[%s1007_s16 + $0x20] sm:$0xff]  ;;  %v818_v17 = vld [vmem:[%s1007_s16 + $0x18] sm:$0xff]  ;;  %v817_v20 = vld [vmem:[%s1007_s16 + $0x10] sm:$0xff] }
  0x20   : > { %390 = vmatpush.bf16.msra.mxu0 %v829_v5  ;;  %v337_v12 = vld.sshfl [vmem:[#allocation1] sm:$0xff pattern:$0x73625140]  ;;  %v834_v18 = vld [vmem:[%s1007_s16 + $0x98] sm:$0xff]  ;;  %v833_v21 = vld [vmem:[%s1007_s16 + $0x90] sm:$0xff] }
  0x21   : > { %451 = vmatpush.bf16.msra.mxu1 %v821_v6  ;;  %484 = vst [vmem:[#allocation1] ss:$4 sm:$0xff] %v463_v10  ;;  %v835_v15 = vld [vmem:[%s1007_s16 + $0xa0] sm:$0xff]  ;;  %v824_v22 = vld [vmem:[%s1007_s16 + $0x48] sm:$0xff]  ;;  %v338_v29 = vshrl.u32 %v337_v12, 16 }
  0x22   : > { %538 = vmatpush.bf16.msra.mxu2 %v837_v7  ;;  %v816_v23 = vld [vmem:[%s1007_s16 + $0x8] sm:$0xff]  ;;  %v823_v25 = vld [vmem:[%s1007_s16 + $0x40] sm:$0xff] }
  0x23   : > { %v832_v24 = vld [vmem:[%s1007_s16 + $0x88] sm:$0xff]  ;;  %v815_v26 = vld [vmem:[%s1007_s16] sm:$0xff] }
  0x24   : > { %391 = vmatpush.bf16.msra.mxu0 %v828_v8  ;;  %v831_v27 = vld [vmem:[%s1007_s16 + $0x80] sm:$0xff]  ;;  %v551_v35 = vld [vmem:[#allocation2] sm:$0x1] }
  0x25   : > { %452 = vmatpush.bf16.msra.mxu1 %v820_v9 }
  0x26   : > { %539 = vmatpush.bf16.msra.mxu2 %v836_v11 }
  0x28   : > { %392 = vmatpush.bf16.msra.mxu0 %v827_v13  ;;  %v485_v28 = vld.sshfl [vmem:[#allocation1] sm:$0xff pattern:$0x73625140] }
  0x29   : > { %453 = vmatpush.bf16.msra.mxu1 %v819_v14  ;;  %v487_v30 = vrot.slane %v485_v28, 1 }
  0x2a   : > { %540 = vmatpush.bf16.msra.mxu2 %v835_v15 }
  0x2c   : > { %393 = vmatpush.bf16.msra.mxu0 %v826_v16 }
  0x2d   : > { %454 = vmatpush.bf16.msra.mxu1 %v818_v17 }
  0x2e   : > { %541 = vmatpush.bf16.msra.mxu2 %v834_v18 }
  0x30   : > { %394 = vmatpush.bf16.msra.mxu0 %v825_v19 }
  0x31   : > { %455 = vmatpush.bf16.msra.mxu1 %v817_v20 }
  0x32   : > { %542 = vmatpush.bf16.msra.mxu2 %v833_v21 }
  0x34   : > { %395 = vmatpush.bf16.msra.mxu0 %v824_v22 }
  0x35   : > { %456 = vmatpush.bf16.msra.mxu1 %v816_v23 }
  0x36   : > { %543 = vmatpush.bf16.msra.mxu2 %v832_v24 }
  0x38   : > { %396 = vmatpush.bf16.msra.mxu0 %v823_v25 }
  0x39   : > { %457 = vmatpush.bf16.msra.mxu1 %v815_v26 }
  0x3a   : > { %544 = vmatpush.bf16.msra.mxu2 %v831_v27 }
  0x3b   : > { %397 = vmatmul.bf16.vlgmr.msra.gmra.mxu0 %v338_v29 }
  0x3c   : > { %458 = vmatmul.bf16.vlgmr.msra.gmra.mxu1 %v296_v1 }
  0x3d   : > { %545 = vmatmul.bf16.vlgmr.msra.gmra.mxu2 %v487_v30 }
  0xb8   : > { %v398_v31 = vpop.f32.mrf.mxu0 }
  0xb9   : > { %v459_v32 = vpop.f32.mrf.mxu1 }
  0xba   : > { %v460_v33 = vadd.f32 %v459_v32, %v398_v31 }
  0xc0   : > { %v546_v34 = vpop.f32.mrf.mxu2  ;;  %v400_v37 = vpop.f32.mrf.mxu0 }
  0xc1   : > { %v550_v36 = vadd.f32 %v546_v34, %v460_v33  ;;  %v461_v38 = vpop.f32.mrf.mxu1 }
  0xc3   : > { %v552_v39 = vadd.f32 %v551_v35, %v550_v36 }
  0xc4   : > { %557 = sbr.rel (%p811_p8) target bundleno = 217 (0xd9), region = 48 }
  0xc5   : > { %553 = vst [vmem:[#allocation2] sm:$0x1] %v552_v39 }
  0xc8   : > { %v548_v40 = vpop.f32.mrf.mxu2 }
  0xc9   : > { %v559_v42 = vld [vmem:[%s1064_s2] sm:$0x1]  ;;  %vm568_vm0 = vcmask 1040384   ;;  %vm569_vm1 = vsmask.f32 256 }
  0xca   : > { %v561_v43 = vld [vmem:[%s1065_s3] sm:$0x1]  ;;  %vm570_vm2 = vmand %vm568_vm0, %vm569_vm1 }
  0xcb   : > { %v563_v45 = vld [vmem:[%s284_s29] sm:$0x1] }
  0xcc   : > { %v558_v41 = vld [vmem:[#allocation2] sm:$0x1]  ;;  %v564_v46 = vunpack.c.l.bf16 %v563_v45  ;;  %v571_v50 = vld [vmem:[%s997_s7] sm:$0x1] }
  0xcd   : > { %v560_v44 = vmul.f32 %v559_v42, %v558_v41 }
  0xcf   : > { %v562_v47 = vadd.f32 %v561_v43, %v560_v44 }
  0xd1   : > { %v565_v48 = vadd.f32 %v564_v46, %v562_v47 }
  0xd3   : > { %v566_v49 = vmax.f32 %v565_v48, 0.0 }
  0xd5   : > { %v567_v51 = vpack.c.bf16 %v566_v49, %v566_v49 }
  0xd7   : > { %v572_v52 = vsel %vm570_vm2, %v567_v51, %v571_v50 }
  0xd8   : > { %573 = vst [vmem:[%s997_s7] sm:$0x1] %v572_v52 }
  0xd9 PF: > { %s15_s22 = sadd.s32 1, %s919_s22   ;;  %s1068_s18 = smov %s911_s20 }
  0xda   : > { %p12_p9 = scmp.ge.s32.totalorder %s15_s22, 20   ;;  %s1069_s19 = smov %s915_s21 }
  0xdb   : > { %s1070_s20 = smov %s1073_s23  ;;  %s1071_s21 = smov %s1077_s24 }
  0xdc   :  { %14 = sbr.rel (!%p12_p9) target bundleno = 3 (0x3), region = 84 }

// kernel: simpleview_forward.36
= control target key start
LH: loop header
LB: loop body
LE: loop exit
PB: predicated region body
PF: predicated region fallthrough
CT: control target
= control target key end

     0   :  { %s880_s15 = smov 0   ;;  %s882_s16 = smov 0   ;;  %s977_s0 = inlined_call_operand.vmem [shape: bf16[6,3,1,3,128], index: 0, kind: input, shape index: {}]   ;;  %s978_s1 = inlined_call_operand.vmem [shape: bf16[3,3,128,128], index: 1, kind: input, shape index: {}]   ;;  %s979_s2 = inlined_call_operand.vmem [shape: f32[1,128], index: 2, kind: input, shape index: {}]   ;;  %s980_s3 = inlined_call_operand.vmem [shape: f32[1,128], index: 3, kind: input, shape index: {}]   ;;  %s981_s4 = inlined_call_operand.vmem [shape: bf16[6,1,1,128], index: 4, kind: output, shape index: {}]  }
   0x1   :  { %s884_s17 = smov 0   ;;  %s886_s18 = smov 0  }
   0x2   :  { %s888_s19 = smov 0  }
   0x3 LB: > { %s26_s20 = sadd.s32 1, %s844_s17  ;;  %s33_s21 = sadd.s32 1, %s848_s18  ;;  %s852_s19 = sphi %s888_s19, %s14_s19   ;;  %s848_s18 = sphi %s886_s18, %s985_s18   ;;  %s844_s17 = sphi %s884_s17, %s984_s17   ;;  %s840_s16 = sphi %s882_s16, %s983_s16   ;;  %s836_s15 = sphi %s880_s15, %s982_s15  }
   0x4   : > { %p27_p0 = scmp.ge.s32.totalorder %s26_s20, 3  ;;  %p610_p1 = scmp.ge.s32.totalorder %s852_s19, 1 }
   0x5   : > { %p192_p2 = scmp.lt.s32.totalorder %s852_s19, 19 }
   0x6   : > { %s987_s20 = smov (%p27_p0, %s26_s20), 0  ;;  %s989_s21 = smov (!%p27_p0, %s33_s21), %s848_s18 }
   0x7   : > { %p193_p3 = pnand %p610_p1, %p192_p2  ;;  %p35_p4 = scmp.ge.s32.totalorder %s989_s21, 6 }
   0x8   : > { %p224_p5 = scmp.lt.s32.totalorder (!%p193_p3), %s840_s16, 5  ;;  %p226_p6 = scmp.lt.s32.totalorder (!%p193_p3), %s836_s15, 2 }
   0x9   : > { %s991_s21 = smov (%p35_p4, %s989_s21), 0  ;;  %196 = sbr.rel (%p193_p3) target bundleno = 215 (0xd7), region = 36 }
   0xa   : > { %p612_p7 = scmp.ne.s32.totalorder (!%p193_p3), %s836_s15, 0 }
   0xe   : > { %s993_s16 = smov (!%p224_p5, %s840_s16), 5 }
   0xf   : > { %s227_s22 = scalar_select %p226_p6, %s836_s15, 2 }
  0x10   : > { %s772_s23 = smul.u32 3, %s993_s16  ;;  %s917_s26 = scalar_lea.vmem %s981_s4, %s993_s16 }
  0x11   : > { %242 = sbr.rel (%p612_p7) target bundleno = 24 (0x18), region = 40 }
  0x12   : > { %s229_s27 = sadd.s32 %s772_s23, %s227_s22 }
  0x13   : > { %s611_s28 = sshll.u32 %s229_s27, 1 }
  0x14   : > { %s231_s5 = scalar_lea.vmem %s977_s0, %s611_s28 }
  0x16   : > { %v854_v0 = vmov 0.0  }
  0x17   : > { %243 = vst [vmem:[#allocation2] sm:$0x1] %v854_v0 }
  0x18 PF: > { %s747_s6 = smul.u32 192, %s836_s15  ;;  %v244_v1 = vld [vmem:[%s231_s5] sm:$0x1]  ;;  %v411_v10 = vld [vmem:[%s231_s5] sm:$0x2]  ;;  %p744_p8 = scmp.ne.s32.totalorder %s836_s15, 2 }
  0x19   : > { %284 = vst [vmem:[#allocation1] ss:$4 sm:$0xff] %v244_v1 }
  0x1a   : > { %s927_s9 = scalar_lea.vmem %s978_s1, %s747_s6 }
  0x1b   : > { %v763_v2 = vld [vmem:[%s927_s9 + $0x78] sm:$0xff]  ;;  %v762_v5 = vld [vmem:[%s927_s9 + $0x70] sm:$0xff]  ;;  %v761_v8 = vld [vmem:[%s927_s9 + $0x68] sm:$0xff] }
  0x1c   : > { %v755_v3 = vld [vmem:[%s927_s9 + $0x38] sm:$0xff]  ;;  %337 = vmatpush.bf16.msra.mxu0 %v763_v2  ;;  %v754_v6 = vld [vmem:[%s927_s9 + $0x30] sm:$0xff]  ;;  %v753_v9 = vld [vmem:[%s927_s9 + $0x28] sm:$0xff] }
  0x1d   : > { %v771_v4 = vld [vmem:[%s927_s9 + $0xb8] sm:$0xff]  ;;  %398 = vmatpush.bf16.msra.mxu1 %v755_v3  ;;  %v770_v7 = vld [vmem:[%s927_s9 + $0xb0] sm:$0xff]  ;;  %v769_v11 = vld [vmem:[%s927_s9 + $0xa8] sm:$0xff] }
  0x1e   : > { %485 = vmatpush.bf16.msra.mxu2 %v771_v4  ;;  %v760_v13 = vld [vmem:[%s927_s9 + $0x60] sm:$0xff]  ;;  %v759_v16 = vld [vmem:[%s927_s9 + $0x58] sm:$0xff]  ;;  %v758_v19 = vld [vmem:[%s927_s9 + $0x50] sm:$0xff] }
  0x1f   : > { %v752_v14 = vld [vmem:[%s927_s9 + $0x20] sm:$0xff]  ;;  %v751_v17 = vld [vmem:[%s927_s9 + $0x18] sm:$0xff]  ;;  %v750_v20 = vld [vmem:[%s927_s9 + $0x10] sm:$0xff] }
  0x20   : > { %338 = vmatpush.bf16.msra.mxu0 %v762_v5  ;;  %v285_v12 = vld.sshfl [vmem:[#allocation1] sm:$0xff pattern:$0x73625140]  ;;  %v767_v18 = vld [vmem:[%s927_s9 + $0x98] sm:$0xff]  ;;  %v766_v21 = vld [vmem:[%s927_s9 + $0x90] sm:$0xff] }
  0x21   : > { %399 = vmatpush.bf16.msra.mxu1 %v754_v6  ;;  %432 = vst [vmem:[#allocation1] ss:$4 sm:$0xff] %v411_v10  ;;  %v768_v15 = vld [vmem:[%s927_s9 + $0xa0] sm:$0xff]  ;;  %v757_v22 = vld [vmem:[%s927_s9 + $0x48] sm:$0xff]  ;;  %v286_v29 = vshrl.u32 %v285_v12, 16 }
  0x22   : > { %486 = vmatpush.bf16.msra.mxu2 %v770_v7  ;;  %v749_v23 = vld [vmem:[%s927_s9 + $0x8] sm:$0xff]  ;;  %v756_v25 = vld [vmem:[%s927_s9 + $0x40] sm:$0xff] }
  0x23   : > { %v765_v24 = vld [vmem:[%s927_s9 + $0x88] sm:$0xff]  ;;  %v748_v26 = vld [vmem:[%s927_s9] sm:$0xff] }
  0x24   : > { %339 = vmatpush.bf16.msra.mxu0 %v761_v8  ;;  %v764_v27 = vld [vmem:[%s927_s9 + $0x80] sm:$0xff]  ;;  %v499_v35 = vld [vmem:[#allocation2] sm:$0x1] }
  0x25   : > { %400 = vmatpush.bf16.msra.mxu1 %v753_v9 }
  0x26   : > { %487 = vmatpush.bf16.msra.mxu2 %v769_v11 }
  0x28   : > { %340 = vmatpush.bf16.msra.mxu0 %v760_v13  ;;  %v433_v28 = vld.sshfl [vmem:[#allocation1] sm:$0xff pattern:$0x73625140] }
  0x29   : > { %401 = vmatpush.bf16.msra.mxu1 %v752_v14  ;;  %v435_v30 = vrot.slane %v433_v28, 1 }
  0x2a   : > { %488 = vmatpush.bf16.msra.mxu2 %v768_v15 }
  0x2c   : > { %341 = vmatpush.bf16.msra.mxu0 %v759_v16 }
  0x2d   : > { %402 = vmatpush.bf16.msra.mxu1 %v751_v17 }
  0x2e   : > { %489 = vmatpush.bf16.msra.mxu2 %v767_v18 }
  0x30   : > { %342 = vmatpush.bf16.msra.mxu0 %v758_v19 }
  0x31   : > { %403 = vmatpush.bf16.msra.mxu1 %v750_v20 }
  0x32   : > { %490 = vmatpush.bf16.msra.mxu2 %v766_v21 }
  0x34   : > { %343 = vmatpush.bf16.msra.mxu0 %v757_v22 }
  0x35   : > { %404 = vmatpush.bf16.msra.mxu1 %v749_v23 }
  0x36   : > { %491 = vmatpush.bf16.msra.mxu2 %v765_v24 }
  0x38   : > { %344 = vmatpush.bf16.msra.mxu0 %v756_v25 }
  0x39   : > { %405 = vmatpush.bf16.msra.mxu1 %v748_v26 }
  0x3a   : > { %492 = vmatpush.bf16.msra.mxu2 %v764_v27 }
  0x3b   : > { %345 = vmatmul.bf16.vlgmr.msra.gmra.mxu0 %v286_v29 }
  0x3c   : > { %406 = vmatmul.bf16.vlgmr.msra.gmra.mxu1 %v244_v1 }
  0x3d   : > { %493 = vmatmul.bf16.vlgmr.msra.gmra.mxu2 %v435_v30 }
  0xb8   : > { %v346_v31 = vpop.f32.mrf.mxu0 }
  0xb9   : > { %v407_v32 = vpop.f32.mrf.mxu1 }
  0xba   : > { %v408_v33 = vadd.f32 %v407_v32, %v346_v31 }
  0xc0   : > { %v494_v34 = vpop.f32.mrf.mxu2  ;;  %v348_v37 = vpop.f32.mrf.mxu0 }
  0xc1   : > { %v498_v36 = vadd.f32 %v494_v34, %v408_v33  ;;  %v409_v38 = vpop.f32.mrf.mxu1 }
  0xc3   : > { %v500_v39 = vadd.f32 %v499_v35, %v498_v36 }
  0xc4   : > { %505 = sbr.rel (%p744_p8) target bundleno = 215 (0xd7), region = 44 }
  0xc5   : > { %501 = vst [vmem:[#allocation2] sm:$0x1] %v500_v39 }
  0xc8   : > { %v496_v40 = vpop.f32.mrf.mxu2 }
  0xc9   : > { %v507_v42 = vld [vmem:[%s979_s2] sm:$0x1]  ;;  %vm513_vm0 = vcmask 1040384   ;;  %vm514_vm1 = vsmask.f32 256 }
  0xca   : > { %v509_v43 = vld [vmem:[%s980_s3] sm:$0x1]  ;;  %vm515_vm2 = vmand %vm513_vm0, %vm514_vm1 }
  0xcb   : > { %v516_v47 = vld [vmem:[%s917_s26] sm:$0x1] }
  0xcc   : > { %v506_v41 = vld [vmem:[#allocation2] sm:$0x1] }
  0xcd   : > { %v508_v44 = vmul.f32 %v507_v42, %v506_v41 }
  0xcf   : > { %v510_v45 = vadd.f32 %v509_v43, %v508_v44 }
  0xd1   : > { %v511_v46 = vmax.f32 %v510_v45, 0.0 }
  0xd3   : > { %v512_v48 = vpack.c.bf16 %v511_v46, %v511_v46 }
  0xd5   : > { %v517_v49 = vsel %vm515_vm2, %v512_v48, %v516_v47 }
  0xd6   : > { %518 = vst [vmem:[%s917_s26] sm:$0x1] %v517_v49 }
  0xd7 PF: > { %s14_s19 = sadd.s32 1, %s852_s19   ;;  %s982_s15 = smov %s844_s17 }
  0xd8   : > { %p11_p9 = scmp.ge.s32.totalorder %s14_s19, 20   ;;  %s983_s16 = smov %s848_s18 }
  0xd9   : > { %s984_s17 = smov %s987_s20  ;;  %s985_s18 = smov %s991_s21 }
  0xda   :  { %13 = sbr.rel (!%p11_p9) target bundleno = 3 (0x3), region = 77 }

// kernel: simpleview_forward.39
= control target key start
LH: loop header
LB: loop body
LE: loop exit
PB: predicated region body
PF: predicated region fallthrough
CT: control target
= control target key end

     0   :  { %s883_s15 = smov 0   ;;  %s885_s16 = smov 0   ;;  %s984_s0 = inlined_call_operand.vmem [shape: bf16[6,3,2,2,128], index: 0, kind: input, shape index: {}]   ;;  %s985_s1 = inlined_call_operand.vmem [shape: bf16[3,3,128,128], index: 1, kind: input, shape index: {}]   ;;  %s986_s2 = inlined_call_operand.vmem [shape: f32[1,128], index: 2, kind: input, shape index: {}]   ;;  %s987_s3 = inlined_call_operand.vmem [shape: f32[1,128], index: 3, kind: input, shape index: {}]   ;;  %s988_s4 = inlined_call_operand.vmem [shape: bf16[6,1,1,128], index: 4, kind: output, shape index: {}]  }
   0x1   :  { %s887_s17 = smov 0   ;;  %s889_s18 = smov 0  }
   0x2   :  { %s891_s19 = smov 0  }
   0x3 LB: > { %s26_s20 = sadd.s32 1, %s847_s17  ;;  %s33_s21 = sadd.s32 1, %s851_s18  ;;  %s855_s19 = sphi %s891_s19, %s14_s19   ;;  %s851_s18 = sphi %s889_s18, %s992_s18   ;;  %s847_s17 = sphi %s887_s17, %s991_s17   ;;  %s843_s16 = sphi %s885_s16, %s990_s16   ;;  %s839_s15 = sphi %s883_s15, %s989_s15  }
   0x4   : > { %p27_p0 = scmp.ge.s32.totalorder %s26_s20, 3  ;;  %p612_p1 = scmp.ge.s32.totalorder %s855_s19, 1 }
   0x5   : > { %p196_p2 = scmp.lt.s32.totalorder %s855_s19, 19 }
   0x6   : > { %s994_s20 = smov (%p27_p0, %s26_s20), 0  ;;  %s996_s21 = smov (!%p27_p0, %s33_s21), %s851_s18 }
   0x7   : > { %p197_p3 = pnand %p612_p1, %p196_p2  ;;  %p35_p4 = scmp.ge.s32.totalorder %s996_s21, 6 }
   0x8   : > { %p230_p5 = scmp.lt.s32.totalorder (!%p197_p3), %s843_s16, 5  ;;  %p232_p6 = scmp.lt.s32.totalorder (!%p197_p3), %s839_s15, 2 }
   0x9   : > { %s998_s21 = smov (%p35_p4, %s996_s21), 0  ;;  %200 = sbr.rel (%p197_p3) target bundleno = 215 (0xd7), region = 36 }
   0xa   : > { %p614_p7 = scmp.ne.s32.totalorder (!%p197_p3), %s839_s15, 0 }
   0xe   : > { %s1000_s16 = smov (!%p230_p5, %s843_s16), 5 }
   0xf   : > { %s233_s22 = scalar_select %p232_p6, %s839_s15, 2 }
  0x10   : > { %s775_s23 = smul.u32 6, %s1000_s16  ;;  %s920_s26 = scalar_lea.vmem %s988_s4, %s1000_s16 }
  0x11   : > { %s613_s27 = sshll.u32 %s233_s22, 1  ;;  %249 = sbr.rel (%p614_p7) target bundleno = 24 (0x18), region = 40 }
  0x12   : > { %s236_s28 = sadd.s32 %s775_s23, %s613_s27 }
  0x13   : > { %s925_s5 = scalar_lea.vmem %s984_s0, %s236_s28 }
  0x16   : > { %v857_v0 = vmov 0.0  }
  0x17   : > { %250 = vst [vmem:[#allocation2] sm:$0x1] %v857_v0 }
  0x18 PF: > { %s750_s6 = smul.u32 192, %s839_s15  ;;  %v251_v1 = vld [vmem:[%s925_s5] sm:$0x1]  ;;  %v616_v27 = vld [vmem:[%s925_s5 + $0x1] sm:$0x1]  ;;  %p747_p8 = scmp.ne.s32.totalorder %s839_s15, 2 }
  0x19   : > { %434 = vst [vmem:[#allocation1] ss:$9 sm:$0xff] %v251_v1 }
  0x1a   : > { %s933_s9 = scalar_lea.vmem %s985_s1, %s750_s6 }
  0x1b   : > { %v766_v2 = vld [vmem:[%s933_s9 + $0x78] sm:$0xff]  ;;  %v765_v5 = vld [vmem:[%s933_s9 + $0x70] sm:$0xff]  ;;  %v764_v8 = vld [vmem:[%s933_s9 + $0x68] sm:$0xff] }
  0x1c   : > { %v758_v3 = vld [vmem:[%s933_s9 + $0x38] sm:$0xff]  ;;  %340 = vmatpush.bf16.msra.mxu0 %v766_v2  ;;  %v757_v6 = vld [vmem:[%s933_s9 + $0x30] sm:$0xff]  ;;  %v756_v9 = vld [vmem:[%s933_s9 + $0x28] sm:$0xff] }
  0x1d   : > { %v774_v4 = vld [vmem:[%s933_s9 + $0xb8] sm:$0xff]  ;;  %401 = vmatpush.bf16.msra.mxu1 %v758_v3  ;;  %v773_v7 = vld [vmem:[%s933_s9 + $0xb0] sm:$0xff]  ;;  %v772_v10 = vld [vmem:[%s933_s9 + $0xa8] sm:$0xff] }
  0x1e   : > { %487 = vmatpush.bf16.msra.mxu2 %v774_v4  ;;  %v763_v11 = vld [vmem:[%s933_s9 + $0x60] sm:$0xff]  ;;  %v762_v14 = vld [vmem:[%s933_s9 + $0x58] sm:$0xff]  ;;  %v761_v17 = vld [vmem:[%s933_s9 + $0x50] sm:$0xff] }
  0x1f   : > { %v755_v12 = vld [vmem:[%s933_s9 + $0x20] sm:$0xff]  ;;  %v754_v15 = vld [vmem:[%s933_s9 + $0x18] sm:$0xff]  ;;  %v753_v18 = vld [vmem:[%s933_s9 + $0x10] sm:$0xff] }
  0x20   : > { %341 = vmatpush.bf16.msra.mxu0 %v765_v5  ;;  %v771_v13 = vld [vmem:[%s933_s9 + $0xa0] sm:$0xff]  ;;  %v770_v16 = vld [vmem:[%s933_s9 + $0x98] sm:$0xff]  ;;  %v769_v19 = vld [vmem:[%s933_s9 + $0x90] sm:$0xff] }
  0x21   : > { %402 = vmatpush.bf16.msra.mxu1 %v757_v6  ;;  %v760_v20 = vld [vmem:[%s933_s9 + $0x48] sm:$0xff]  ;;  %v759_v23 = vld [vmem:[%s933_s9 + $0x40] sm:$0xff] }
  0x22   : > { %488 = vmatpush.bf16.msra.mxu2 %v773_v7  ;;  %v752_v21 = vld [vmem:[%s933_s9 + $0x8] sm:$0xff]  ;;  %v751_v24 = vld [vmem:[%s933_s9] sm:$0xff] }
  0x23   : > { %v768_v22 = vld [vmem:[%s933_s9 + $0x88] sm:$0xff]  ;;  %v767_v25 = vld [vmem:[%s933_s9 + $0x80] sm:$0xff] }
  0x24   : > { %342 = vmatpush.bf16.msra.mxu0 %v764_v8  ;;  %v435_v26 = vld [vmem:[#allocation1] sm:$0xff]  ;;  %v501_v33 = vld [vmem:[#allocation2] sm:$0x1] }
  0x25   : > { %403 = vmatpush.bf16.msra.mxu1 %v756_v9  ;;  %v436_v28 = vshrl.u32 %v435_v26, 16 }
  0x26   : > { %489 = vmatpush.bf16.msra.mxu2 %v772_v10 }
  0x28   : > { %343 = vmatpush.bf16.msra.mxu0 %v763_v11 }
  0x29   : > { %404 = vmatpush.bf16.msra.mxu1 %v755_v12 }
  0x2a   : > { %490 = vmatpush.bf16.msra.mxu2 %v771_v13 }
  0x2c   : > { %344 = vmatpush.bf16.msra.mxu0 %v762_v14 }
  0x2d   : > { %405 = vmatpush.bf16.msra.mxu1 %v754_v15 }
  0x2e   : > { %491 = vmatpush.bf16.msra.mxu2 %v770_v16 }
  0x30   : > { %345 = vmatpush.bf16.msra.mxu0 %v761_v17 }
  0x31   : > { %406 = vmatpush.bf16.msra.mxu1 %v753_v18 }
  0x32   : > { %492 = vmatpush.bf16.msra.mxu2 %v769_v19 }
  0x34   : > { %346 = vmatpush.bf16.msra.mxu0 %v760_v20 }
  0x35   : > { %407 = vmatpush.bf16.msra.mxu1 %v752_v21 }
  0x36   : > { %493 = vmatpush.bf16.msra.mxu2 %v768_v22 }
  0x38   : > { %347 = vmatpush.bf16.msra.mxu0 %v759_v23 }
  0x39   : > { %408 = vmatpush.bf16.msra.mxu1 %v751_v24 }
  0x3a   : > { %494 = vmatpush.bf16.msra.mxu2 %v767_v25 }
  0x3b   : > { %348 = vmatmul.bf16.vlgmr.msra.gmra.mxu0 %v616_v27 }
  0x3c   : > { %409 = vmatmul.bf16.vlgmr.msra.gmra.mxu1 %v251_v1 }
  0x3d   : > { %495 = vmatmul.bf16.vlgmr.msra.gmra.mxu2 %v436_v28 }
  0xb8   : > { %v349_v29 = vpop.f32.mrf.mxu0 }
  0xb9   : > { %v410_v30 = vpop.f32.mrf.mxu1 }
  0xba   : > { %v411_v31 = vadd.f32 %v410_v30, %v349_v29 }
  0xc0   : > { %v496_v32 = vpop.f32.mrf.mxu2  ;;  %v351_v35 = vpop.f32.mrf.mxu0 }
  0xc1   : > { %v500_v34 = vadd.f32 %v496_v32, %v411_v31  ;;  %v412_v36 = vpop.f32.mrf.mxu1 }
  0xc3   : > { %v502_v37 = vadd.f32 %v501_v33, %v500_v34 }
  0xc4   : > { %507 = sbr.rel (%p747_p8) target bundleno = 215 (0xd7), region = 44 }
  0xc5   : > { %503 = vst [vmem:[#allocation2] sm:$0x1] %v502_v37 }
  0xc8   : > { %v498_v38 = vpop.f32.mrf.mxu2 }
  0xc9   : > { %v509_v40 = vld [vmem:[%s986_s2] sm:$0x1]  ;;  %vm515_vm0 = vcmask 1040384   ;;  %vm516_vm1 = vsmask.f32 256 }
  0xca   : > { %v511_v41 = vld [vmem:[%s987_s3] sm:$0x1]  ;;  %vm517_vm2 = vmand %vm515_vm0, %vm516_vm1 }
  0xcb   : > { %v518_v45 = vld [vmem:[%s920_s26] sm:$0x1] }
  0xcc   : > { %v508_v39 = vld [vmem:[#allocation2] sm:$0x1] }
  0xcd   : > { %v510_v42 = vmul.f32 %v509_v40, %v508_v39 }
  0xcf   : > { %v512_v43 = vadd.f32 %v511_v41, %v510_v42 }
  0xd1   : > { %v513_v44 = vmax.f32 %v512_v43, 0.0 }
  0xd3   : > { %v514_v46 = vpack.c.bf16 %v513_v44, %v513_v44 }
  0xd5   : > { %v519_v47 = vsel %vm517_vm2, %v514_v46, %v518_v45 }
  0xd6   : > { %520 = vst [vmem:[%s920_s26] sm:$0x1] %v519_v47 }
  0xd7 PF: > { %s14_s19 = sadd.s32 1, %s855_s19   ;;  %s989_s15 = smov %s847_s17 }
  0xd8   : > { %p11_p9 = scmp.ge.s32.totalorder %s14_s19, 20   ;;  %s990_s16 = smov %s851_s18 }
  0xd9   : > { %s991_s17 = smov %s994_s20  ;;  %s992_s18 = smov %s998_s21 }
  0xda   :  { %13 = sbr.rel (!%p11_p9) target bundleno = 3 (0x3), region = 78 }

// kernel: simpleview_forward.43
= control target key start
LH: loop header
LB: loop body
LE: loop exit
PB: predicated region body
PF: predicated region fallthrough
CT: control target
= control target key end

     0   :  { %s510_s1 = inlined_call_operand.vmem [shape: bf16[384,128], index: 1, kind: input, shape index: {}]   ;;  %s511_s0 = inlined_call_operand.vmem [shape: bf16[8,384], index: 0, kind: input, shape index: {}]   ;;  %s512_s2 = inlined_call_operand.vmem [shape: f32[1,128], index: 2, kind: input, shape index: {}]   ;;  %s513_s3 = inlined_call_operand.vmem [shape: f32[1,128], index: 3, kind: input, shape index: {}]   ;;  %s514_s4 = inlined_call_operand.vmem [shape: f32[8,128], index: 4, kind: output, shape index: {}]  }
   0x1   :  { %v379_v0 = vld [vmem:[%s510_s1 + $0x38] sm:$0xff]  ;;  %v378_v3 = vld [vmem:[%s510_s1 + $0x30] sm:$0xff]  ;;  %v377_v6 = vld [vmem:[%s510_s1 + $0x28] sm:$0xff] }
   0x2   :  { %v387_v1 = vld [vmem:[%s510_s1 + $0x78] sm:$0xff]  ;;  %222 = vmatpush.bf16.msra.mxu0 %v379_v0  ;;  %v386_v4 = vld [vmem:[%s510_s1 + $0x70] sm:$0xff]  ;;  %v385_v7 = vld [vmem:[%s510_s1 + $0x68] sm:$0xff] }
   0x3   :  { %v395_v2 = vld [vmem:[%s510_s1 + $0xb8] sm:$0xff]  ;;  %235 = vmatpush.bf16.msra.mxu1 %v387_v1  ;;  %v394_v5 = vld [vmem:[%s510_s1 + $0xb0] sm:$0xff]  ;;  %v393_v8 = vld [vmem:[%s510_s1 + $0xa8] sm:$0xff] }
   0x4   :  { %248 = vmatpush.bf16.msra.mxu2 %v395_v2  ;;  %v376_v9 = vld [vmem:[%s510_s1 + $0x20] sm:$0xff]  ;;  %v375_v12 = vld [vmem:[%s510_s1 + $0x18] sm:$0xff]  ;;  %v374_v15 = vld [vmem:[%s510_s1 + $0x10] sm:$0xff] }
   0x5   :  { %v384_v10 = vld [vmem:[%s510_s1 + $0x60] sm:$0xff]  ;;  %v383_v13 = vld [vmem:[%s510_s1 + $0x58] sm:$0xff]  ;;  %v382_v16 = vld [vmem:[%s510_s1 + $0x50] sm:$0xff] }
   0x6   :  { %223 = vmatpush.bf16.msra.mxu0 %v378_v3  ;;  %v392_v11 = vld [vmem:[%s510_s1 + $0xa0] sm:$0xff]  ;;  %v391_v14 = vld [vmem:[%s510_s1 + $0x98] sm:$0xff]  ;;  %v390_v17 = vld [vmem:[%s510_s1 + $0x90] sm:$0xff] }
   0x7   :  { %236 = vmatpush.bf16.msra.mxu1 %v386_v4  ;;  %v373_v18 = vld [vmem:[%s510_s1 + $0x8] sm:$0xff]  ;;  %v17_v20 = vld [vmem:[%s511_s0] sm:$0xff] }
   0x8   :  { %249 = vmatpush.bf16.msra.mxu2 %v394_v5  ;;  %v381_v19 = vld [vmem:[%s510_s1 + $0x48] sm:$0xff]  ;;  %v69_v23 = vunpack.c.l.b16 %v17_v20  ;;  %v70_v24 = vunpack.c.h.b16 %v17_v20  ;;  %v372_v25 = vld [vmem:[%s510_s1] sm:$0xff] }
   0x9   :  { %v389_v21 = vld [vmem:[%s510_s1 + $0x88] sm:$0xff]  ;;  %v380_v26 = vld [vmem:[%s510_s1 + $0x40] sm:$0xff] }
   0xa   :  { %224 = vmatpush.bf16.msra.mxu0 %v377_v6  ;;  %v18_v22 = vld [vmem:[%s511_s0 + $0x8] sm:$0xf]  ;;  %v388_v28 = vld [vmem:[%s510_s1 + $0x80] sm:$0xff]  ;;  %v72_v29 = vpack.c.b16 %v69_v23, %v69_v23  ;;  %v73_v30 = vpack.c.b16 %v70_v24, %v70_v24 }
   0xb   :  { %237 = vmatpush.bf16.msra.mxu1 %v385_v7  ;;  %v71_v27 = vunpack.c.l.b16 %v18_v22  ;;  %v396_v35 = vld [vmem:[%s512_s2] ss:$0 sm:$0xff] }
   0xc   :  { %250 = vmatpush.bf16.msra.mxu2 %v393_v8  ;;  %v397_v38 = vld [vmem:[%s513_s3] ss:$0 sm:$0xff] }
   0xd   :  { %v74_v31 = vpack.c.b16 %v71_v27, %v71_v27 }
   0xe   :  { %225 = vmatpush.bf16.msra.mxu0 %v376_v9 }
   0xf   :  { %238 = vmatpush.bf16.msra.mxu1 %v384_v10 }
  0x10   :  { %251 = vmatpush.bf16.msra.mxu2 %v392_v11 }
  0x12   :  { %226 = vmatpush.bf16.msra.mxu0 %v375_v12 }
  0x13   :  { %239 = vmatpush.bf16.msra.mxu1 %v383_v13 }
  0x14   :  { %252 = vmatpush.bf16.msra.mxu2 %v391_v14 }
  0x16   :  { %227 = vmatpush.bf16.msra.mxu0 %v374_v15 }
  0x17   :  { %240 = vmatpush.bf16.msra.mxu1 %v382_v16 }
  0x18   :  { %253 = vmatpush.bf16.msra.mxu2 %v390_v17 }
  0x1a   :  { %228 = vmatpush.bf16.msra.mxu0 %v373_v18 }
  0x1b   :  { %241 = vmatpush.bf16.msra.mxu1 %v381_v19 }
  0x1c   :  { %254 = vmatpush.bf16.msra.mxu2 %v389_v21 }
  0x1e   :  { %229 = vmatpush.bf16.msra.mxu0 %v372_v25 }
  0x1f   :  { %242 = vmatpush.bf16.msra.mxu1 %v380_v26 }
  0x20   :  { %255 = vmatpush.bf16.msra.mxu2 %v388_v28 }
  0x21   :  { %230 = vmatmul.bf16.vlgmr.msra.gmra.mxu0 %v72_v29 }
  0x22   :  { %243 = vmatmul.bf16.vlgmr.msra.gmra.mxu1 %v73_v30 }
  0x23   :  { %256 = vmatmul.bf16.vlgmr.msra.gmra.mxu2 %v74_v31 }
  0x9e   :  { %v231_v32 = vpop.f32.mrf.mxu0 }
  0x9f   :  { %v244_v33 = vpop.f32.mrf.mxu1 }
  0xa0   :  { %v245_v34 = vadd.f32 %v244_v33, %v231_v32 }
  0xa6   :  { %v257_v36 = vpop.f32.mrf.mxu2  ;;  %v233_v39 = vpop.f32.mrf.mxu0 }
  0xa7   :  { %v258_v37 = vadd.f32 %v257_v36, %v245_v34  ;;  %v246_v40 = vpop.f32.mrf.mxu1 }
  0xa9   :  { %v265_v41 = vmul.f32 %v396_v35, %v258_v37 }
  0xab   :  { %v270_v42 = vadd.f32 %v397_v38, %v265_v41 }
  0xad   :  { %271 = vst [vmem:[%s514_s4] sm:$0xff] %v270_v42 }
  0xae   :  { %v259_v43 = vpop.f32.mrf.mxu2 }

</bundles_post_ra>
